<compile_context>
chip_gen: v5e
topology: v5e:2x2
jax: 0.10.0
libtpu: 0.0.40
codegen_flags: <defaults>
</compile_context>

<pallas_src>
import jax
import jax.numpy as jnp
from jax.experimental import pallas as pl
from jax.experimental.pallas import tpu as pltpu


def symmetric_conv3d(x, weight, stride, padding, weight_norm=False):
    """Equivalent of SymmetricConv3d.forward.

    x:      (N, C_in, D, H, W)   float32
    weight: (OC, C_in, kD, kH, kW) float32  (requires kH == kW)
    returns (N, 4*OC, D_out, H_out, W_out)  float32
    """
    OC, C, kD, kH, kW = weight.shape
    assert kH == kW, "rot90 over (kH, kW) requires a square in-plane kernel"
    N, Cx, D, H, W = x.shape
    assert Cx == C
    sd, sh, sw = stride
    pd, ph, pw = padding

    # Symmetric weight: 4 in-plane rotations concatenated along OC.
    w4 = jnp.concatenate(
        [jnp.rot90(weight, k, axes=(3, 4)) for k in range(4)], axis=0)
    if weight_norm:
        # PyTorch: (w**2).sum(1,keepdims=True).sum(2,keepdims=True).sum(3,keepdims=True)
        # -> reduces axes (C, kD, kH) of the 5-D weight, kW is deliberately kept
        #    (denominator broadcasts over kW).  This matches that exactly.
        denom = jnp.sqrt((w4 ** 2).sum(axis=(1, 2, 3), keepdims=True))
        w4 = w4 / denom

    OC4 = 4 * OC

    # Padded / output geometry.
    Dp, Hp, Wp = D + 2 * pd, H + 2 * ph, W + 2 * pw
    Do = (Dp - kD) // sd + 1
    Ho = (Hp - kH) // sh + 1
    Wo = (Wp - kW) // sw + 1
    HWp = Hp * Wp                 # one padded depth slice, flattened row-major
    sHWp = sd * HWp               # flat distance between consecutive output depths

    # Channel / contraction padding -> aligned sublane row blocks per tap.
    Cp = -(-C // 8) * 8
    n_taps = kD * kH * kW
    K = n_taps * Cp
    Kpad = -(-K // 16) * 16       # bf16 sublane tile multiple (no ragged tail)

    # Weight matrix (OC4, Kpad): tap-major, channel-minor (matches patch layout).
    wmat = jnp.transpose(w4, (0, 2, 3, 4, 1))                 # (OC4,kD,kH,kW,C)
    wmat = jnp.pad(wmat, ((0, 0),) * 4 + ((0, Cp - C),))      # zero-pad channels
    wmat = wmat.reshape(OC4, K)
    wmat = jnp.pad(wmat, ((0, 0), (0, Kpad - K))).astype(jnp.bfloat16)

    # ---- output-depth tiling so patch + output block stay under a VMEM budget ----
    bytes_per_depth = sHWp * (2 * Kpad + 2 * 4 * OC4)
    DO_BUDGET = 24 * 1024 * 1024
    Do_t = int(max(1, min(Do, DO_BUDGET // max(bytes_per_depth, 1))))
    nT = -(-Do // Do_t)
    Do_pad = nT * Do_t
    Jt = Do_t * sHWp              # patch / output columns per depth tile

    # ---- input: bf16, channels padded to Cp, conv zero padding, fully flattened ----
    # Patch column j (within depth tile t) of tap (a,b,c) reads
    #   xf[:, t*Jt + a*HWp + b*Wp + c + j]       -- one contiguous lane slice per tap.
    flat_len = (kD - 1) * HWp + (kH - 1) * Wp + (kW - 1) + Do_pad * sHWp
    xp = jnp.pad(x.astype(jnp.bfloat16),
                 ((0, 0), (0, Cp - C), (pd, pd), (ph, ph), (pw, pw)))
    xf = xp.reshape(N, Cp, Dp * HWp)
    xf = jnp.pad(xf, ((0, 0), (0, 0), (0, flat_len - Dp * HWp)))

    JC = 1024                     # matmul column chunk (bounds f32 result vreg pressure)

    def kernel(x_ref, w_ref, o_ref, patch_ref):
        # x_ref:     (1, Cp, flat_len)  bf16  whole padded sample (resident across tiles)
        # w_ref:     (OC4, Kpad)        bf16
        # o_ref:     (1, 1, OC4, Jt)    f32   lane-dense output slab for this depth tile
        # patch_ref: (Kpad, Jt)         bf16  fused-im2col scratch
        t_off = pl.program_id(1) * Jt if nT > 1 else 0

        if Kpad > K:
            # Zero the K padding rows: uninitialized scratch * zero weight could
            # otherwise produce NaN (0 * NaN).
            patch_ref[K:, :] = jnp.zeros((Kpad - K, Jt), jnp.bfloat16)

        # Fused im2col: one wide slab copy per tap, covering every output depth of
        # this tile at once (27 copies per tile instead of 27 per output depth).
        for a in range(kD):
            for b in range(kH):
                base = a * HWp + b * Wp + t_off
                for c in range(kW):
                    t = (a * kH + b) * kW + c
                    patch_ref[t * Cp:(t + 1) * Cp, :] = x_ref[
                        0, :, pl.ds(base + c, Jt)]

        # One streaming MXU matmul over the whole tile, chunked along the lane axis
        # only to bound the f32 accumulator's vreg footprint.
        w = w_ref[...]
        for j0 in range(0, Jt, JC):
            jl = min(JC, Jt - j0)
            o_ref[0, 0, :, j0:j0 + jl] = jnp.dot(
                w, patch_ref[:, j0:j0 + jl], preferred_element_type=jnp.float32)

    vmem_est = (Kpad * Jt * 2              # patch scratch
                + 2 * OC4 * Jt * 4         # double-buffered output block
                + 2 * Cp * flat_len * 2    # input sample (conservatively x2)
                + 2 * OC4 * Kpad * 2
                + (2 << 20))
    vmem_limit = int(min(max(2 * vmem_est, 16 * 1024 * 1024), 60 * 1024 * 1024))

    out_flat = pl.pallas_call(
        kernel,
        out_shape=jax.ShapeDtypeStruct((N, nT, OC4, Jt), jnp.float32),
        grid_spec=pltpu.PrefetchScalarGridSpec(
            num_scalar_prefetch=0,
            grid=(N, nT),
            in_specs=[
                # Whole sample; index map independent of the depth-tile axis so it
                # stays VMEM-resident across depth tiles of the same sample.
                pl.BlockSpec((1, Cp, flat_len), lambda n, t: (n, 0, 0)),
                pl.BlockSpec((OC4, Kpad), lambda n, t: (0, 0)),
            ],
            out_specs=pl.BlockSpec((1, 1, OC4, Jt), lambda n, t: (n, t, 0, 0)),
            scratch_shapes=[pltpu.VMEM((Kpad, Jt), jnp.bfloat16)],
        ),
        compiler_params=pltpu.CompilerParams(
            # Depth tiles write disjoint outputs -> both axes parallel (v7x megacore).
            dimension_semantics=("parallel", "parallel"),
            vmem_limit_bytes=vmem_limit,
        ),
        cost_estimate=pl.CostEstimate(
            flops=2 * N * nT * Jt * Kpad * OC4,
            transcendentals=0,
            bytes_accessed=xf.size * 2 + wmat.size * 2 + N * nT * OC4 * Jt * 4,
        ),
    )(xf, wmat)

    # (N, nT, OC4, Do_t, sd*Hp, Wp): keep valid depths / in-plane rows, apply the
    # in-plane strides.  Already channel-major, so no transpose unless depth tiling
    # actually split the depth axis.
    out = out_flat.reshape(N, nT, OC4, Do_t, sd * Hp, Wp)
    if nT > 1:
        out = jnp.transpose(out, (0, 2, 1, 3, 4, 5))
    out = out.reshape(N, OC4, Do_pad, sd * Hp, Wp)
    out = out[:, :, :Do, :(Ho - 1) * sh + 1:sh, :(Wo - 1) * sw + 1:sw]
    return out
    # TODO(synk): if downstream tolerates it, store the output in bf16 inside the
    # kernel to halve the dominant HBM write stream.


if __name__ == "__main__":
    key = jax.random.PRNGKey(0)
    k_w, k_x = jax.random.split(key)

    # Small shapes consistent with the module (rot90 over (kH,kW) needs kH==kW).
    in_channels, out_channels = 4, 4
    kernel_size = (3, 3, 3)
    stride = (1, 1, 1)
    padding = (1, 1, 1)
    N, D, H, W = 2, 8, 16, 16

    # Deterministic init matching: 2*sqrt(k)*(rand-0.5), k=1/(Cin*kD*kH*kW)
    kfan = 1.0 / (in_channels * kernel_size[0] * kernel_size[1] * kernel_size[2])
    weight = 2.0 * jnp.sqrt(kfan) * (
        jax.random.uniform(
            k_w, (out_channels, in_channels) + kernel_size, jnp.float32) - 0.5)
    x = jax.random.normal(k_x, (N, in_channels, D, H, W), jnp.float32)

    out = symmetric_conv3d(x, weight, stride, padding, weight_norm=False)
    out = jax.block_until_ready(out)

    # Silent correctness check against XLA's conv (same bf16-in / f32-acc math).
    w4 = jnp.concatenate(
        [jnp.rot90(weight, k, axes=(3, 4)) for k in range(4)], axis=0)

    def ref_conv(w):
        return jax.lax.conv_general_dilated(
            x.astype(jnp.bfloat16), w.astype(jnp.bfloat16),
            window_strides=stride,
            padding=[(padding[0], padding[0]),
                     (padding[1], padding[1]),
                     (padding[2], padding[2])],
            dimension_numbers=("NCDHW", "OIDHW", "NCDHW"),
            preferred_element_type=jnp.float32)

    ref = ref_conv(w4)
    assert out.shape == (N, 4 * out_channels, D, H, W), out.shape
    assert jnp.allclose(out, ref, atol=2e-2, rtol=2e-2), \
        float(jnp.max(jnp.abs(out - ref)))

    # weight_norm path (kW deliberately excluded from the norm, as in the module).
    out_n = symmetric_conv3d(x, weight, stride, padding, weight_norm=True)
    out_n = jax.block_until_ready(out_n)
    w4n = w4 / jnp.sqrt((w4 ** 2).sum(axis=(1, 2, 3), keepdims=True))
    ref_n = ref_conv(w4n)
    assert jnp.allclose(out_n, ref_n, atol=2e-2, rtol=2e-2), \
        float(jnp.max(jnp.abs(out_n - ref_n)))

    print("KERNEL_OK")
</pallas_src>

<mosaic_0001>
module attributes {stable_mosaic.version = 11 : i64} {
  func.func @kernel(%arg0: i32, %arg1: i32, %arg2: memref<1x8x3278xbf16, #tpu.memory_space<vmem>>, %arg3: memref<16x224xbf16, #tpu.memory_space<vmem>>, %arg4: memref<1x1x16x2592xf32, #tpu.memory_space<vmem>>, %arg5: memref<224x2592xbf16, #tpu.memory_space<vmem>>) attributes {dimension_semantics = [#tpu.dimension_semantics<parallel>, #tpu.dimension_semantics<parallel>], iteration_bounds = array<i64: 2, 1>, scalar_prefetch = 0 : i64, scratch_operands = 1 : i64, tpu.core_type = #tpu.core_type<tc>, window_params = [{transform_indices = @transform_0, window_bounds = array<i64: 1, 8, 3278>}, {pipeline_mode = #tpu.pipeline_mode<synchronous>, transform_indices = @transform_1, window_bounds = array<i64: 16, 224>}, {transform_indices = @transform_2, window_bounds = array<i64: 1, 1, 16, 2592>}]} {
    %cst = arith.constant 0.000000e+00 : bf16
    %0 = vector.broadcast %cst : bf16 to vector<8x2592xbf16>
    %c216 = arith.constant 216 : index
    %c0 = arith.constant 0 : index
    %1 = vector.load %arg5[%c216, %c0] : memref<224x2592xbf16, #tpu.memory_space<vmem>>, vector<8x2592xbf16>
    tpu.vector_store %arg5[%c216, %c0], %0 {strides = array<i32>} : memref<224x2592xbf16, #tpu.memory_space<vmem>>, vector<8x2592xbf16>,
    %c0_0 = arith.constant 0 : index
    %c0_1 = arith.constant 0 : index
    %c0_2 = arith.constant 0 : index
    %2 = vector.load %arg2[%c0_0, %c0_1, %c0_2] : memref<1x8x3278xbf16, #tpu.memory_space<vmem>>, vector<1x8x2592xbf16>
    %3 = vector.shape_cast %2 : vector<1x8x2592xbf16> to vector<8x2592xbf16>
    %c0_3 = arith.constant 0 : index
    %c0_4 = arith.constant 0 : index
    %4 = vector.load %arg5[%c0_3, %c0_4] : memref<224x2592xbf16, #tpu.memory_space<vmem>>, vector<8x2592xbf16>
    tpu.vector_store %arg5[%c0_3, %c0_4], %3 {strides = array<i32>} : memref<224x2592xbf16, #tpu.memory_space<vmem>>, vector<8x2592xbf16>,
    %c0_5 = arith.constant 0 : index
    %c0_6 = arith.constant 0 : index
    %c1 = arith.constant 1 : index
    %5 = vector.load %arg2[%c0_5, %c0_6, %c1] : memref<1x8x3278xbf16, #tpu.memory_space<vmem>>, vector<1x8x2592xbf16>
    %6 = vector.shape_cast %5 : vector<1x8x2592xbf16> to vector<8x2592xbf16>
    %c8 = arith.constant 8 : index
    %c0_7 = arith.constant 0 : index
    %7 = vector.load %arg5[%c8, %c0_7] : memref<224x2592xbf16, #tpu.memory_space<vmem>>, vector<8x2592xbf16>
    tpu.vector_store %arg5[%c8, %c0_7], %6 {strides = array<i32>} : memref<224x2592xbf16, #tpu.memory_space<vmem>>, vector<8x2592xbf16>,
    %c0_8 = arith.constant 0 : index
    %c0_9 = arith.constant 0 : index
    %c2 = arith.constant 2 : index
    %8 = vector.load %arg2[%c0_8, %c0_9, %c2] : memref<1x8x3278xbf16, #tpu.memory_space<vmem>>, vector<1x8x2592xbf16>
    %9 = vector.shape_cast %8 : vector<1x8x2592xbf16> to vector<8x2592xbf16>
    %c16 = arith.constant 16 : index
    %c0_10 = arith.constant 0 : index
    %10 = vector.load %arg5[%c16, %c0_10] : memref<224x2592xbf16, #tpu.memory_space<vmem>>, vector<8x2592xbf16>
    tpu.vector_store %arg5[%c16, %c0_10], %9 {strides = array<i32>} : memref<224x2592xbf16, #tpu.memory_space<vmem>>, vector<8x2592xbf16>,
    %c0_11 = arith.constant 0 : index
    %c0_12 = arith.constant 0 : index
    %c18 = arith.constant 18 : index
    %11 = vector.load %arg2[%c0_11, %c0_12, %c18] : memref<1x8x3278xbf16, #tpu.memory_space<vmem>>, vector<1x8x2592xbf16>
    %12 = vector.shape_cast %11 : vector<1x8x2592xbf16> to vector<8x2592xbf16>
    %c24 = arith.constant 24 : index
    %c0_13 = arith.constant 0 : index
    %13 = vector.load %arg5[%c24, %c0_13] : memref<224x2592xbf16, #tpu.memory_space<vmem>>, vector<8x2592xbf16>
    tpu.vector_store %arg5[%c24, %c0_13], %12 {strides = array<i32>} : memref<224x2592xbf16, #tpu.memory_space<vmem>>, vector<8x2592xbf16>,
    %c0_14 = arith.constant 0 : index
    %c0_15 = arith.constant 0 : index
    %c19 = arith.constant 19 : index
    %14 = vector.load %arg2[%c0_14, %c0_15, %c19] : memref<1x8x3278xbf16, #tpu.memory_space<vmem>>, vector<1x8x2592xbf16>
    %15 = vector.shape_cast %14 : vector<1x8x2592xbf16> to vector<8x2592xbf16>
    %c32 = arith.constant 32 : index
    %c0_16 = arith.constant 0 : index
    %16 = vector.load %arg5[%c32, %c0_16] : memref<224x2592xbf16, #tpu.memory_space<vmem>>, vector<8x2592xbf16>
    tpu.vector_store %arg5[%c32, %c0_16], %15 {strides = array<i32>} : memref<224x2592xbf16, #tpu.memory_space<vmem>>, vector<8x2592xbf16>,
    %c0_17 = arith.constant 0 : index
    %c0_18 = arith.constant 0 : index
    %c20 = arith.constant 20 : index
    %17 = vector.load %arg2[%c0_17, %c0_18, %c20] : memref<1x8x3278xbf16, #tpu.memory_space<vmem>>, vector<1x8x2592xbf16>
    %18 = vector.shape_cast %17 : vector<1x8x2592xbf16> to vector<8x2592xbf16>
    %c40 = arith.constant 40 : index
    %c0_19 = arith.constant 0 : index
    %19 = vector.load %arg5[%c40, %c0_19] : memref<224x2592xbf16, #tpu.memory_space<vmem>>, vector<8x2592xbf16>
    tpu.vector_store %arg5[%c40, %c0_19], %18 {strides = array<i32>} : memref<224x2592xbf16, #tpu.memory_space<vmem>>, vector<8x2592xbf16>,
    %c0_20 = arith.constant 0 : index
    %c0_21 = arith.constant 0 : index
    %c36 = arith.constant 36 : index
    %20 = vector.load %arg2[%c0_20, %c0_21, %c36] : memref<1x8x3278xbf16, #tpu.memory_space<vmem>>, vector<1x8x2592xbf16>
    %21 = vector.shape_cast %20 : vector<1x8x2592xbf16> to vector<8x2592xbf16>
    %c48 = arith.constant 48 : index
    %c0_22 = arith.constant 0 : index
    %22 = vector.load %arg5[%c48, %c0_22] : memref<224x2592xbf16, #tpu.memory_space<vmem>>, vector<8x2592xbf16>
    tpu.vector_store %arg5[%c48, %c0_22], %21 {strides = array<i32>} : memref<224x2592xbf16, #tpu.memory_space<vmem>>, vector<8x2592xbf16>,
    %c0_23 = arith.constant 0 : index
    %c0_24 = arith.constant 0 : index
    %c37 = arith.constant 37 : index
    %23 = vector.load %arg2[%c0_23, %c0_24, %c37] : memref<1x8x3278xbf16, #tpu.memory_space<vmem>>, vector<1x8x2592xbf16>
    %24 = vector.shape_cast %23 : vector<1x8x2592xbf16> to vector<8x2592xbf16>
    %c56 = arith.constant 56 : index
    %c0_25 = arith.constant 0 : index
    %25 = vector.load %arg5[%c56, %c0_25] : memref<224x2592xbf16, #tpu.memory_space<vmem>>, vector<8x2592xbf16>
    tpu.vector_store %arg5[%c56, %c0_25], %24 {strides = array<i32>} : memref<224x2592xbf16, #tpu.memory_space<vmem>>, vector<8x2592xbf16>,
    %c0_26 = arith.constant 0 : index
    %c0_27 = arith.constant 0 : index
    %c38 = arith.constant 38 : index
    %26 = vector.load %arg2[%c0_26, %c0_27, %c38] : memref<1x8x3278xbf16, #tpu.memory_space<vmem>>, vector<1x8x2592xbf16>
    %27 = vector.shape_cast %26 : vector<1x8x2592xbf16> to vector<8x2592xbf16>
    %c64 = arith.constant 64 : index
    %c0_28 = arith.constant 0 : index
    %28 = vector.load %arg5[%c64, %c0_28] : memref<224x2592xbf16, #tpu.memory_space<vmem>>, vector<8x2592xbf16>
    tpu.vector_store %arg5[%c64, %c0_28], %27 {strides = array<i32>} : memref<224x2592xbf16, #tpu.memory_space<vmem>>, vector<8x2592xbf16>,
    %c0_29 = arith.constant 0 : index
    %c0_30 = arith.constant 0 : index
    %c324 = arith.constant 324 : index
    %29 = vector.load %arg2[%c0_29, %c0_30, %c324] : memref<1x8x3278xbf16, #tpu.memory_space<vmem>>, vector<1x8x2592xbf16>
    %30 = vector.shape_cast %29 : vector<1x8x2592xbf16> to vector<8x2592xbf16>
    %c72 = arith.constant 72 : index
    %c0_31 = arith.constant 0 : index
    %31 = vector.load %arg5[%c72, %c0_31] : memref<224x2592xbf16, #tpu.memory_space<vmem>>, vector<8x2592xbf16>
    tpu.vector_store %arg5[%c72, %c0_31], %30 {strides = array<i32>} : memref<224x2592xbf16, #tpu.memory_space<vmem>>, vector<8x2592xbf16>,
    %c0_32 = arith.constant 0 : index
    %c0_33 = arith.constant 0 : index
    %c325 = arith.constant 325 : index
    %32 = vector.load %arg2[%c0_32, %c0_33, %c325] : memref<1x8x3278xbf16, #tpu.memory_space<vmem>>, vector<1x8x2592xbf16>
    %33 = vector.shape_cast %32 : vector<1x8x2592xbf16> to vector<8x2592xbf16>
    %c80 = arith.constant 80 : index
    %c0_34 = arith.constant 0 : index
    %34 = vector.load %arg5[%c80, %c0_34] : memref<224x2592xbf16, #tpu.memory_space<vmem>>, vector<8x2592xbf16>
    tpu.vector_store %arg5[%c80, %c0_34], %33 {strides = array<i32>} : memref<224x2592xbf16, #tpu.memory_space<vmem>>, vector<8x2592xbf16>,
    %c0_35 = arith.constant 0 : index
    %c0_36 = arith.constant 0 : index
    %c326 = arith.constant 326 : index
    %35 = vector.load %arg2[%c0_35, %c0_36, %c326] : memref<1x8x3278xbf16, #tpu.memory_space<vmem>>, vector<1x8x2592xbf16>
    %36 = vector.shape_cast %35 : vector<1x8x2592xbf16> to vector<8x2592xbf16>
    %c88 = arith.constant 88 : index
    %c0_37 = arith.constant 0 : index
    %37 = vector.load %arg5[%c88, %c0_37] : memref<224x2592xbf16, #tpu.memory_space<vmem>>, vector<8x2592xbf16>
    tpu.vector_store %arg5[%c88, %c0_37], %36 {strides = array<i32>} : memref<224x2592xbf16, #tpu.memory_space<vmem>>, vector<8x2592xbf16>,
    %c0_38 = arith.constant 0 : index
    %c0_39 = arith.constant 0 : index
    %c342 = arith.constant 342 : index
    %38 = vector.load %arg2[%c0_38, %c0_39, %c342] : memref<1x8x3278xbf16, #tpu.memory_space<vmem>>, vector<1x8x2592xbf16>
    %39 = vector.shape_cast %38 : vector<1x8x2592xbf16> to vector<8x2592xbf16>
    %c96 = arith.constant 96 : index
    %c0_40 = arith.constant 0 : index
    %40 = vector.load %arg5[%c96, %c0_40] : memref<224x2592xbf16, #tpu.memory_space<vmem>>, vector<8x2592xbf16>
    tpu.vector_store %arg5[%c96, %c0_40], %39 {strides = array<i32>} : memref<224x2592xbf16, #tpu.memory_space<vmem>>, vector<8x2592xbf16>,
    %c0_41 = arith.constant 0 : index
    %c0_42 = arith.constant 0 : index
    %c343 = arith.constant 343 : index
    %41 = vector.load %arg2[%c0_41, %c0_42, %c343] : memref<1x8x3278xbf16, #tpu.memory_space<vmem>>, vector<1x8x2592xbf16>
    %42 = vector.shape_cast %41 : vector<1x8x2592xbf16> to vector<8x2592xbf16>
    %c104 = arith.constant 104 : index
    %c0_43 = arith.constant 0 : index
    %43 = vector.load %arg5[%c104, %c0_43] : memref<224x2592xbf16, #tpu.memory_space<vmem>>, vector<8x2592xbf16>
    tpu.vector_store %arg5[%c104, %c0_43], %42 {strides = array<i32>} : memref<224x2592xbf16, #tpu.memory_space<vmem>>, vector<8x2592xbf16>,
    %c0_44 = arith.constant 0 : index
    %c0_45 = arith.constant 0 : index
    %c344 = arith.constant 344 : index
    %44 = vector.load %arg2[%c0_44, %c0_45, %c344] : memref<1x8x3278xbf16, #tpu.memory_space<vmem>>, vector<1x8x2592xbf16>
    %45 = vector.shape_cast %44 : vector<1x8x2592xbf16> to vector<8x2592xbf16>
    %c112 = arith.constant 112 : index
    %c0_46 = arith.constant 0 : index
    %46 = vector.load %arg5[%c112, %c0_46] : memref<224x2592xbf16, #tpu.memory_space<vmem>>, vector<8x2592xbf16>
    tpu.vector_store %arg5[%c112, %c0_46], %45 {strides = array<i32>} : memref<224x2592xbf16, #tpu.memory_space<vmem>>, vector<8x2592xbf16>,
    %c0_47 = arith.constant 0 : index
    %c0_48 = arith.constant 0 : index
    %c360 = arith.constant 360 : index
    %47 = vector.load %arg2[%c0_47, %c0_48, %c360] : memref<1x8x3278xbf16, #tpu.memory_space<vmem>>, vector<1x8x2592xbf16>
    %48 = vector.shape_cast %47 : vector<1x8x2592xbf16> to vector<8x2592xbf16>
    %c120 = arith.constant 120 : index
    %c0_49 = arith.constant 0 : index
    %49 = vector.load %arg5[%c120, %c0_49] : memref<224x2592xbf16, #tpu.memory_space<vmem>>, vector<8x2592xbf16>
    tpu.vector_store %arg5[%c120, %c0_49], %48 {strides = array<i32>} : memref<224x2592xbf16, #tpu.memory_space<vmem>>, vector<8x2592xbf16>,
    %c0_50 = arith.constant 0 : index
    %c0_51 = arith.constant 0 : index
    %c361 = arith.constant 361 : index
    %50 = vector.load %arg2[%c0_50, %c0_51, %c361] : memref<1x8x3278xbf16, #tpu.memory_space<vmem>>, vector<1x8x2592xbf16>
    %51 = vector.shape_cast %50 : vector<1x8x2592xbf16> to vector<8x2592xbf16>
    %c128 = arith.constant 128 : index
    %c0_52 = arith.constant 0 : index
    %52 = vector.load %arg5[%c128, %c0_52] : memref<224x2592xbf16, #tpu.memory_space<vmem>>, vector<8x2592xbf16>
    tpu.vector_store %arg5[%c128, %c0_52], %51 {strides = array<i32>} : memref<224x2592xbf16, #tpu.memory_space<vmem>>, vector<8x2592xbf16>,
    %c0_53 = arith.constant 0 : index
    %c0_54 = arith.constant 0 : index
    %c362 = arith.constant 362 : index
    %53 = vector.load %arg2[%c0_53, %c0_54, %c362] : memref<1x8x3278xbf16, #tpu.memory_space<vmem>>, vector<1x8x2592xbf16>
    %54 = vector.shape_cast %53 : vector<1x8x2592xbf16> to vector<8x2592xbf16>
    %c136 = arith.constant 136 : index
    %c0_55 = arith.constant 0 : index
    %55 = vector.load %arg5[%c136, %c0_55] : memref<224x2592xbf16, #tpu.memory_space<vmem>>, vector<8x2592xbf16>
    tpu.vector_store %arg5[%c136, %c0_55], %54 {strides = array<i32>} : memref<224x2592xbf16, #tpu.memory_space<vmem>>, vector<8x2592xbf16>,
    %c0_56 = arith.constant 0 : index
    %c0_57 = arith.constant 0 : index
    %c648 = arith.constant 648 : index
    %56 = vector.load %arg2[%c0_56, %c0_57, %c648] : memref<1x8x3278xbf16, #tpu.memory_space<vmem>>, vector<1x8x2592xbf16>
    %57 = vector.shape_cast %56 : vector<1x8x2592xbf16> to vector<8x2592xbf16>
    %c144 = arith.constant 144 : index
    %c0_58 = arith.constant 0 : index
    %58 = vector.load %arg5[%c144, %c0_58] : memref<224x2592xbf16, #tpu.memory_space<vmem>>, vector<8x2592xbf16>
    tpu.vector_store %arg5[%c144, %c0_58], %57 {strides = array<i32>} : memref<224x2592xbf16, #tpu.memory_space<vmem>>, vector<8x2592xbf16>,
    %c0_59 = arith.constant 0 : index
    %c0_60 = arith.constant 0 : index
    %c649 = arith.constant 649 : index
    %59 = vector.load %arg2[%c0_59, %c0_60, %c649] : memref<1x8x3278xbf16, #tpu.memory_space<vmem>>, vector<1x8x2592xbf16>
    %60 = vector.shape_cast %59 : vector<1x8x2592xbf16> to vector<8x2592xbf16>
    %c152 = arith.constant 152 : index
    %c0_61 = arith.constant 0 : index
    %61 = vector.load %arg5[%c152, %c0_61] : memref<224x2592xbf16, #tpu.memory_space<vmem>>, vector<8x2592xbf16>
    tpu.vector_store %arg5[%c152, %c0_61], %60 {strides = array<i32>} : memref<224x2592xbf16, #tpu.memory_space<vmem>>, vector<8x2592xbf16>,
    %c0_62 = arith.constant 0 : index
    %c0_63 = arith.constant 0 : index
    %c650 = arith.constant 650 : index
    %62 = vector.load %arg2[%c0_62, %c0_63, %c650] : memref<1x8x3278xbf16, #tpu.memory_space<vmem>>, vector<1x8x2592xbf16>
    %63 = vector.shape_cast %62 : vector<1x8x2592xbf16> to vector<8x2592xbf16>
    %c160 = arith.constant 160 : index
    %c0_64 = arith.constant 0 : index
    %64 = vector.load %arg5[%c160, %c0_64] : memref<224x2592xbf16, #tpu.memory_space<vmem>>, vector<8x2592xbf16>
    tpu.vector_store %arg5[%c160, %c0_64], %63 {strides = array<i32>} : memref<224x2592xbf16, #tpu.memory_space<vmem>>, vector<8x2592xbf16>,
    %c0_65 = arith.constant 0 : index
    %c0_66 = arith.constant 0 : index
    %c666 = arith.constant 666 : index
    %65 = vector.load %arg2[%c0_65, %c0_66, %c666] : memref<1x8x3278xbf16, #tpu.memory_space<vmem>>, vector<1x8x2592xbf16>
    %66 = vector.shape_cast %65 : vector<1x8x2592xbf16> to vector<8x2592xbf16>
    %c168 = arith.constant 168 : index
    %c0_67 = arith.constant 0 : index
    %67 = vector.load %arg5[%c168, %c0_67] : memref<224x2592xbf16, #tpu.memory_space<vmem>>, vector<8x2592xbf16>
    tpu.vector_store %arg5[%c168, %c0_67], %66 {strides = array<i32>} : memref<224x2592xbf16, #tpu.memory_space<vmem>>, vector<8x2592xbf16>,
    %c0_68 = arith.constant 0 : index
    %c0_69 = arith.constant 0 : index
    %c667 = arith.constant 667 : index
    %68 = vector.load %arg2[%c0_68, %c0_69, %c667] : memref<1x8x3278xbf16, #tpu.memory_space<vmem>>, vector<1x8x2592xbf16>
    %69 = vector.shape_cast %68 : vector<1x8x2592xbf16> to vector<8x2592xbf16>
    %c176 = arith.constant 176 : index
    %c0_70 = arith.constant 0 : index
    %70 = vector.load %arg5[%c176, %c0_70] : memref<224x2592xbf16, #tpu.memory_space<vmem>>, vector<8x2592xbf16>
    tpu.vector_store %arg5[%c176, %c0_70], %69 {strides = array<i32>} : memref<224x2592xbf16, #tpu.memory_space<vmem>>, vector<8x2592xbf16>,
    %c0_71 = arith.constant 0 : index
    %c0_72 = arith.constant 0 : index
    %c668 = arith.constant 668 : index
    %71 = vector.load %arg2[%c0_71, %c0_72, %c668] : memref<1x8x3278xbf16, #tpu.memory_space<vmem>>, vector<1x8x2592xbf16>
    %72 = vector.shape_cast %71 : vector<1x8x2592xbf16> to vector<8x2592xbf16>
    %c184 = arith.constant 184 : index
    %c0_73 = arith.constant 0 : index
    %73 = vector.load %arg5[%c184, %c0_73] : memref<224x2592xbf16, #tpu.memory_space<vmem>>, vector<8x2592xbf16>
    tpu.vector_store %arg5[%c184, %c0_73], %72 {strides = array<i32>} : memref<224x2592xbf16, #tpu.memory_space<vmem>>, vector<8x2592xbf16>,
    %c0_74 = arith.constant 0 : index
    %c0_75 = arith.constant 0 : index
    %c684 = arith.constant 684 : index
    %74 = vector.load %arg2[%c0_74, %c0_75, %c684] : memref<1x8x3278xbf16, #tpu.memory_space<vmem>>, vector<1x8x2592xbf16>
    %75 = vector.shape_cast %74 : vector<1x8x2592xbf16> to vector<8x2592xbf16>
    %c192 = arith.constant 192 : index
    %c0_76 = arith.constant 0 : index
    %76 = vector.load %arg5[%c192, %c0_76] : memref<224x2592xbf16, #tpu.memory_space<vmem>>, vector<8x2592xbf16>
    tpu.vector_store %arg5[%c192, %c0_76], %75 {strides = array<i32>} : memref<224x2592xbf16, #tpu.memory_space<vmem>>, vector<8x2592xbf16>,
    %c0_77 = arith.constant 0 : index
    %c0_78 = arith.constant 0 : index
    %c685 = arith.constant 685 : index
    %77 = vector.load %arg2[%c0_77, %c0_78, %c685] : memref<1x8x3278xbf16, #tpu.memory_space<vmem>>, vector<1x8x2592xbf16>
    %78 = vector.shape_cast %77 : vector<1x8x2592xbf16> to vector<8x2592xbf16>
    %c200 = arith.constant 200 : index
    %c0_79 = arith.constant 0 : index
    %79 = vector.load %arg5[%c200, %c0_79] : memref<224x2592xbf16, #tpu.memory_space<vmem>>, vector<8x2592xbf16>
    tpu.vector_store %arg5[%c200, %c0_79], %78 {strides = array<i32>} : memref<224x2592xbf16, #tpu.memory_space<vmem>>, vector<8x2592xbf16>,
    %c0_80 = arith.constant 0 : index
    %c0_81 = arith.constant 0 : index
    %c686 = arith.constant 686 : index
    %80 = vector.load %arg2[%c0_80, %c0_81, %c686] : memref<1x8x3278xbf16, #tpu.memory_space<vmem>>, vector<1x8x2592xbf16>
    %81 = vector.shape_cast %80 : vector<1x8x2592xbf16> to vector<8x2592xbf16>
    %c208 = arith.constant 208 : index
    %c0_82 = arith.constant 0 : index
    %82 = vector.load %arg5[%c208, %c0_82] : memref<224x2592xbf16, #tpu.memory_space<vmem>>, vector<8x2592xbf16>
    tpu.vector_store %arg5[%c208, %c0_82], %81 {strides = array<i32>} : memref<224x2592xbf16, #tpu.memory_space<vmem>>, vector<8x2592xbf16>,
    %c0_83 = arith.constant 0 : index
    %c0_84 = arith.constant 0 : index
    %83 = vector.load %arg3[%c0_83, %c0_84] : memref<16x224xbf16, #tpu.memory_space<vmem>>, vector<16x224xbf16>
    %c0_85 = arith.constant 0 : index
    %c0_86 = arith.constant 0 : index
    %84 = vector.load %arg5[%c0_85, %c0_86] : memref<224x2592xbf16, #tpu.memory_space<vmem>>, vector<224x1024xbf16>
    %cst_87 = arith.constant dense<0.000000e+00> : vector<16x1024xf32>
    %85 = tpu.matmul %83, %84, %cst_87 {dimension_numbers = #tpu.dot_dimension_numbers<[1], [0], [0], [1], [0, 0, 1, 1], [], []>} : vector<16x224xbf16>, vector<224x1024xbf16>, vector<16x1024xf32> -> vector<16x1024xf32>
    %c0_88 = arith.constant 0 : index
    %c0_89 = arith.constant 0 : index
    %c0_90 = arith.constant 0 : index
    %c0_91 = arith.constant 0 : index
    %86 = vector.load %arg4[%c0_88, %c0_89, %c0_90, %c0_91] : memref<1x1x16x2592xf32, #tpu.memory_space<vmem>>, vector<1x1x16x1024xf32>
    %87 = vector.shape_cast %86 : vector<1x1x16x1024xf32> to vector<16x1024xf32>
    %88 = vector.shape_cast %85 : vector<16x1024xf32> to vector<1x1x16x1024xf32>
    tpu.vector_store %arg4[%c0_88, %c0_89, %c0_90, %c0_91], %88 {strides = array<i32>} : memref<1x1x16x2592xf32, #tpu.memory_space<vmem>>, vector<1x1x16x1024xf32>,
    %c0_92 = arith.constant 0 : index
    %c1024 = arith.constant 1024 : index
    %89 = vector.load %arg5[%c0_92, %c1024] : memref<224x2592xbf16, #tpu.memory_space<vmem>>, vector<224x1024xbf16>
    %cst_93 = arith.constant dense<0.000000e+00> : vector<16x1024xf32>
    %90 = tpu.matmul %83, %89, %cst_93 {dimension_numbers = #tpu.dot_dimension_numbers<[1], [0], [0], [1], [0, 0, 1, 1], [], []>} : vector<16x224xbf16>, vector<224x1024xbf16>, vector<16x1024xf32> -> vector<16x1024xf32>
    %c0_94 = arith.constant 0 : index
    %c0_95 = arith.constant 0 : index
    %c0_96 = arith.constant 0 : index
    %c1024_97 = arith.constant 1024 : index
    %91 = vector.load %arg4[%c0_94, %c0_95, %c0_96, %c1024_97] : memref<1x1x16x2592xf32, #tpu.memory_space<vmem>>, vector<1x1x16x1024xf32>
    %92 = vector.shape_cast %91 : vector<1x1x16x1024xf32> to vector<16x1024xf32>
    %93 = vector.shape_cast %90 : vector<16x1024xf32> to vector<1x1x16x1024xf32>
    tpu.vector_store %arg4[%c0_94, %c0_95, %c0_96, %c1024_97], %93 {strides = array<i32>} : memref<1x1x16x2592xf32, #tpu.memory_space<vmem>>, vector<1x1x16x1024xf32>,
    %c0_98 = arith.constant 0 : index
    %c2048 = arith.constant 2048 : index
    %94 = vector.load %arg5[%c0_98, %c2048] : memref<224x2592xbf16, #tpu.memory_space<vmem>>, vector<224x544xbf16>
    %cst_99 = arith.constant dense<0.000000e+00> : vector<16x544xf32>
    %95 = tpu.matmul %83, %94, %cst_99 {dimension_numbers = #tpu.dot_dimension_numbers<[1], [0], [0], [1], [0, 0, 1, 1], [], []>} : vector<16x224xbf16>, vector<224x544xbf16>, vector<16x544xf32> -> vector<16x544xf32>
    %c0_100 = arith.constant 0 : index
    %c0_101 = arith.constant 0 : index
    %c0_102 = arith.constant 0 : index
    %c2048_103 = arith.constant 2048 : index
    %96 = vector.load %arg4[%c0_100, %c0_101, %c0_102, %c2048_103] : memref<1x1x16x2592xf32, #tpu.memory_space<vmem>>, vector<1x1x16x544xf32>
    %97 = vector.shape_cast %96 : vector<1x1x16x544xf32> to vector<16x544xf32>
    %98 = vector.shape_cast %95 : vector<16x544xf32> to vector<1x1x16x544xf32>
    tpu.vector_store %arg4[%c0_100, %c0_101, %c0_102, %c2048_103], %98 {strides = array<i32>} : memref<1x1x16x2592xf32, #tpu.memory_space<vmem>>, vector<1x1x16x544xf32>,
    return
  }
  func.func @transform_0(%arg0: i32, %arg1: i32) -> (i32, i32, i32) {
    %c0_i32 = arith.constant 0 : i32
    %c0_i32_0 = arith.constant 0 : i32
    %c0_i32_1 = arith.constant 0 : i32
    return %arg0, %c0_i32, %c0_i32_0 : i32, i32, i32
  }
  func.func @transform_1(%arg0: i32, %arg1: i32) -> (i32, i32) {
    %c0_i32 = arith.constant 0 : i32
    %c0_i32_0 = arith.constant 0 : i32
    %c0_i32_1 = arith.constant 0 : i32
    return %c0_i32, %c0_i32_0 : i32, i32
  }
  func.func @transform_2(%arg0: i32, %arg1: i32) -> (i32, i32, i32, i32) {
    %c0_i32 = arith.constant 0 : i32
    %c0_i32_0 = arith.constant 0 : i32
    %c0_i32_1 = arith.constant 0 : i32
    return %arg0, %arg1, %c0_i32, %c0_i32_0 : i32, i32, i32, i32
  }
}

</mosaic_0001>

<bundles_post_ra>
// kernel: tpu_custom_call.1
= control target key start
LH: loop header
LB: loop body
LE: loop exit
PB: predicated region body
PF: predicated region fallthrough
CT: control target
= control target key end

     0   :  { %7 = vsyncpa [#allocation4], 0  ;;  %s9540_s0 = inlined_call_operand.hbm [shape: bf16[2,8,3278], index: 0, kind: input, shape index: {}]   ;;  %s9541_s1 = inlined_call_operand.hbm [shape: bf16[16,224], index: 1, kind: input, shape index: {}]   ;;  %s9542_s2 = inlined_call_operand.hbm [shape: f32[2,1,16,2592], index: 2, kind: output, shape index: {}]  }
   0x1   :  { %9 = vsyncpa [#allocation4 + $0x1], 0 }
   0x2   :  { %10 = vsyncpa [#allocation7], 0 }
   0x3   :  { %11 = vsyncpa [#allocation5], 0 }
   0x4   :  { %13 = vsyncpa [#allocation5 + $0x1], 0  ;;  %s7147_s9 = smov 0   ;;  %s7149_s10 = smov 0  }
   0x5   :  { %s7151_s11 = smov 0   ;;  %s7153_s12 = smov 0  }
   0x6   :  { %s7155_s13 = smov 0   ;;  %s7157_s14 = smov 0  }
   0x7 LB: > { %s5330_s15 = sadd.s32 4294967295, %s7098_s14   ;;  %p5332_p0 = scmp.ge.s32.totalorder %s7098_s14, 1  ;;  %s7098_s14 = sphi %s7157_s14, %s19_s14   ;;  %s7094_s13 = sphi %s7155_s13, %s9553_s13   ;;  %s7090_s12 = sphi %s7153_s12, %s9552_s12   ;;  %s7086_s11 = sphi %s7151_s11, %s9551_s11   ;;  %s7082_s10 = sphi %s7149_s10, %s9550_s10   ;;  %s7078_s9 = sphi %s7147_s9, %s9549_s9  }
   0x8   : > { %p7179_p1 = scmp.eq.s32.totalorder %s5330_s15, 0  ;;  %p111_p2 = scmp.lt.s32.totalorder %s7098_s14, 3 }
   0x9   : > { %s122_s19 = sshll.u32 %s9541_s1, 4  ;;  %s7100_s21 = smov [#allocation6]   ;;  %s123_s19 = int_to_ptr.hbm [resolvable:$true] %s122_s19 }
   0xa   : > { %p7187_p3 = pnand %p5332_p0, %p111_p2  ;;  %s124_s22 = sshll.u32 %s7100_s21, 4  ;;  %s125_s22 = int_to_ptr.vmem [resolvable:$true] %s124_s22 }
   0xb   : > { %p5334_p6 = scmp.ge.s32.totalorder %s7098_s14, 2  ;;  %s7101_s23 = smov 128  }
   0xc   : > { %p6855_p4 = pneg %p7187_p3  ;;  %s7102_s24 = smov 8  }
   0xd   : > { %s5331_s25 = sadd.s32 4294967294, %s7098_s14   ;;  %s31_s26 = sadd.s32 1, %s7094_s13 }
   0xe   : > { %p6856_p5 = pnand %p6855_p4, %p7179_p1  ;;  %s38_s27 = sadd.s32 1, %s7086_s11 }
   0xf   : > { %p33_p7 = scmp.ge.s32.totalorder %s31_s26, 2  ;;  %p45_p8 = scmp.ne.s32.totalorder %s7086_s11, %s7082_s10 }
  0x10   : > { %6858 = dma.hbm_to_vmem [thread:$0]  (!%p6856_p5), %s123_s19, 256, %s125_s22, [#allocation7], %s7101_s23, %s7101_s23, %s7102_s24  }
  0x11   : > { %p46_p9 = scmp.eq.s32.totalorder %s7098_s14, 0  ;;  %p51_p10 = scmp.ne.s32.totalorder %s7082_s10, %s7078_s9 }
  0x12   : > { %s9555_s26 = smov (%p33_p7, %s31_s26), 0  ;;  %p98_p13 = scmp.eq.s32.totalorder %s5330_s15, 1 }
  0x13   : > { %p7206_p11 = por %p46_p9, %p45_p8  ;;  %p7212_p12 = por %p7179_p1, %p51_p10 }
  0x14   : > { %s35_s30 = ssub.s32 %s7094_s13, %s9555_s26  ;;  %p104_p2 = scmp.eq.s32.totalorder %s5331_s25, 1 }
  0x15   : > { %p36_p0 = scmp.eq.s32.totalorder %s35_s30, 0  ;;  %p7218_p4 = por %p98_p13, %p45_p8 }
  0x16   : > { %p6868_p5 = scmp.lt.s32.totalorder %s7098_s14, 2  ;;  %p7226_p7 = por %p104_p2, %p51_p10 }
  0x17   : > { %s7224_s4 = scalar_select %p36_p0, %s7086_s11, %s38_s27  }
  0x18   : > { %s138_s6 = sand.u32 1, %s7086_s11   ;;  %s6843_s8 = smul.u32 104, %s7094_s13 }
  0x19   : > { %s6842_s7 = smul.u32 104, %s138_s6  ;;  %p6860_p9 = pnand %p6868_p5, %p7206_p11 }
  0x1a   : > { %s147_s18 = scalar_lea.hbm %s9540_s0, %s6843_s8  ;;  %s139_s23 = scalar_lea.sflag [#allocation4], %s138_s6 }
  0x1b   : > { %s142_s19 = scalar_lea.vmem [#allocation3], %s6842_s7  ;;  %s149_s22 = sshll.u32 %s147_s18, 4  ;;  %s150_s22 = int_to_ptr.hbm [resolvable:$true] %s149_s22 }
  0x1c   : > { %s151_s21 = sshll.u32 %s142_s19, 4  ;;  %160 = sbr.rel (%p7187_p3) target bundleno = 1116 (0x45c), region = 28  ;;  %s152_s21 = int_to_ptr.vmem [resolvable:$true] %s151_s21 }
  0x1d   : > { %6862 = dma.hbm_to_vmem [thread:$0]  (!%p6860_p9), %s150_s22, 1664, %s152_s21, %s139_s23  }
  0x1e   : > { %s7240_s24 = sand.u32 (!%p7187_p3), 1, %s7082_s10  }
  0x1f   : > { %s6844_s25 = smul.u32 (!%p7187_p3), 104, %s7240_s24  ;;  %s163_s27 = scalar_lea.sflag (!%p7187_p3), [#allocation4], %s7240_s24 }
  0x21   : > { %s7244_s28 = scalar_lea.vmem [#allocation3], %s6844_s25 }
  0x22   : > { %7065 = dma.done.wait (%p7212_p12), %s163_s27, 1664  }
  0x23   : > { %7067 = vsyncadd (%p7212_p12), %s163_s27, 4294965632 }
  0x24   : > { %7069 = dma.done.wait (%p7179_p1), [#allocation7], 256  }
  0x25   : > { %7071 = vsyncadd (%p7179_p1), [#allocation7], 4294967040  ;;  %v7255_v0 = vld [vmem:[%s7244_s28 + $0x20] sm:$0xff]  ;;  %v7258_v1 = vld [vmem:[%s7244_s28 + $0x10] sm:$0xff]  ;;  %s7103_s20 = smov 127   ;;  %s7104_s16 = smov 126  }
  0x26   : > { %v7261_v2 = vld [vmem:[%s7244_s28] sm:$0xff]  ;;  %258 = vrot.lane.b32.xlu2 %v7255_v0, %s7103_s20  ;;  %254 = vrot.lane.b32.xlu1 %v7258_v1, %s7103_s20  ;;  %v7267_v3 = vld [vmem:[%s7244_s28 + $0x28] sm:$0xff]  ;;  %s7105_s29 = smov 110   ;;  %s7106_s30 = smov 109   ;;  %vm283_vm0 = vcmask 1043456   ;;  %vm285_vm1 = vcmask 1039360  }
  0x27   : > { %250 = vrot.lane.b32.xlu0 %v7261_v2, %s7103_s20  ;;  %v7270_v4 = vld [vmem:[%s7244_s28 + $0x18] sm:$0xff]  ;;  %v7273_v5 = vld [vmem:[%s7244_s28 + $0x8] sm:$0xff]  ;;  %v7279_v6 = vld [vmem:[%s7244_s28 + $0x40] sm:$0xff]  ;;  %s7107_s6 = smov 108   ;;  %vm204_vm2 = vcmask 257024   ;;  %s7108_s7 = smov 92  }
  0x28   : > { %v7282_v7 = vld [vmem:[%s7244_s28 + $0x38] sm:$0xff]  ;;  %v7285_v8 = vld [vmem:[%s7244_s28 + $0x30] sm:$0xff]  ;;  %v7292_v10 = vld [vmem:[%s7244_s28 + $0x48] sm:$0xff]  ;;  %vm383_vm3 = vcmask 1031168   ;;  %vm481_vm4 = vcmask 900096   ;;  %s7109_s8 = smov 91  }
  0x29   : > { %v238_v9 = vld [vmem:[%s7244_s28 + $0x50] sm:$0xf]  ;;  %v210_v14 = vld [vmem:[%s7244_s28 + $0x20] sm:$0xff]  ;;  %v1799_v16 = vld [vmem:[%s7244_s28 + $0x8] sm:$0xff]  ;;  %s7110_s17 = smov 90   ;;  %vm579_vm5 = vcmask 891904  }
  0x2a   : > { %v337_v11 = vld [vmem:[%s7244_s28 + $0x50] sm:$0xf]  ;;  %221 = vst [vmem:[#allocation2 + $0x20] sm:$0xff] %v210_v14  ;;  %v206_v17 = vld [vmem:[%s7244_s28] sm:$0xff]  ;;  %v209_v20 = vld [vmem:[%s7244_s28 + $0x18] sm:$0xff]  ;;  %s7111_s15 = smov 60  }
  0x2b   : > { %v435_v12 = vld [vmem:[%s7244_s28 + $0x50] sm:$0xf]  ;;  %217 = vst [vmem:[#allocation2] sm:$0xff] %v206_v17  ;;  %v211_v25 = vld [vmem:[%s7244_s28 + $0x28] sm:$0xff]  ;;  %v213_v28 = vld [vmem:[%s7244_s28 + $0x38] sm:$0xff]  ;;  %vm677_vm6 = vcmask 883712  }
  0x2c   : > { %v208_v19 = vld [vmem:[%s7244_s28 + $0x10] sm:$0xff]  ;;  %218 = vst [vmem:[#allocation2 + $0x8] sm:$0xff] %v1799_v16  ;;  %v214_v32 = vld [vmem:[%s7244_s28 + $0x40] sm:$0xff]  ;;  %v215_v33 = vld [vmem:[%s7244_s28 + $0x48] sm:$0xff]  ;;  %vm775_vm7 = vcmask 752640   ;;  %s7112_s18 = smov 59  }
  0x2d   : > { %219 = vst [vmem:[#allocation2 + $0x10] sm:$0xff] %v208_v19  ;;  %v212_v26 = vld [vmem:[%s7244_s28 + $0x30] sm:$0xff]  ;;  %s7113_s19 = smov 58   ;;  %vm873_vm8 = vcmask 744448   ;;  %s7114_s21 = smov 42   ;;  %vm971_vm9 = vcmask 736256  }
  0x2e   : > { %260 = vrot.lane.b32.xlu2 %v7267_v3, %s7103_s20  ;;  %256 = vrot.lane.b32.xlu1 %v7270_v4, %s7103_s20  ;;  %220 = vst [vmem:[#allocation2 + $0x18] sm:$0xff] %v209_v20  ;;  %v533_v27 = vld [vmem:[%s7244_s28 + $0x50] sm:$0xf]  ;;  %vm1069_vm10 = vcmask 490496   ;;  %s7115_s22 = smov 41   ;;  %s7116_s23 = smov 40  }
  0x2f   : > { %252 = vrot.lane.b32.xlu0 %v7273_v5, %s7103_s20  ;;  %222 = vst [vmem:[#allocation2 + $0x28] sm:$0xff] %v211_v25  ;;  %v216_v34 = vld [vmem:[%s7244_s28 + $0x50] sm:$0xf]  ;;  %vm1167_vm11 = vcmask 482304   ;;  %s7117_s25 = smov 24   ;;  %vm1265_vm12 = vcmask 474112  }
  0x30   : > { %223 = vst [vmem:[#allocation2 + $0x30] sm:$0xff] %v212_v26  ;;  %s7118_s27 = smov 82   ;;  %vm1363_vm13 = vcmask 343040   ;;  %vm1461_vm14 = vcmask 334848   ;;  %vm1559_vm15 = vcmask 326656  }
  0x31   : > { %224 = vst [vmem:[#allocation2 + $0x38] sm:$0xff] %v213_v28 }
  0x32   : > { %225 = vst [vmem:[#allocation2 + $0x40] sm:$0xff] %v214_v32 }
  0x33   : > { %226 = vst [vmem:[#allocation2 + $0x48] sm:$0xff] %v215_v33 }
  0x34   : > { %227 = vst.msk [vmem:[#allocation2 + $0x50] sm:$0xf] %vm204_vm2, %v216_v34 }
  0x36   : > { %266 = vrot.lane.b32.xlu2 %v7279_v6, %s7103_s20  ;;  %264 = vrot.lane.b32.xlu1 %v7282_v7, %s7103_s20 }
  0x37   : > { %262 = vrot.lane.b32.xlu0 %v7285_v8, %s7103_s20 }
  0x3e   : > { %349 = vrot.lane.b32.xlu2 %v7261_v2, %s7104_s16  ;;  %270 = vrot.lane.b32.xlu1 %v238_v9, %s7103_s20 }
  0x3f   : > { %268 = vrot.lane.b32.xlu0 %v7292_v10, %s7103_s20  ;;  %s7119_s20 = smov 83  }
  0x46   : > { %355 = vrot.lane.b32.xlu2 %v7270_v4, %s7104_s16  ;;  %353 = vrot.lane.b32.xlu1 %v7258_v1, %s7104_s16 }
  0x47   : > { %351 = vrot.lane.b32.xlu0 %v7273_v5, %s7104_s16 }
  0x4e   : > { %361 = vrot.lane.b32.xlu2 %v7285_v8, %s7104_s16  ;;  %359 = vrot.lane.b32.xlu1 %v7267_v3, %s7104_s16 }
  0x4f   : > { %357 = vrot.lane.b32.xlu0 %v7255_v0, %s7104_s16 }
  0x56   : > { %367 = vrot.lane.b32.xlu2 %v7292_v10, %s7104_s16  ;;  %365 = vrot.lane.b32.xlu1 %v7279_v6, %s7104_s16 }
  0x57   : > { %363 = vrot.lane.b32.xlu0 %v7282_v7, %s7104_s16 }
  0x5e   : > { %449 = vrot.lane.b32.xlu2 %v7273_v5, %s7105_s29  ;;  %447 = vrot.lane.b32.xlu1 %v7261_v2, %s7105_s29 }
  0x5f   : > { %369 = vrot.lane.b32.xlu0 %v337_v11, %s7104_s16  ;;  %s7120_s16 = smov 84  }
  0x66   : > { %455 = vrot.lane.b32.xlu2 %v7255_v0, %s7105_s29  ;;  %453 = vrot.lane.b32.xlu1 %v7270_v4, %s7105_s29 }
  0x67   : > { %451 = vrot.lane.b32.xlu0 %v7258_v1, %s7105_s29 }
  0x6e   : > { %461 = vrot.lane.b32.xlu2 %v7282_v7, %s7105_s29  ;;  %459 = vrot.lane.b32.xlu1 %v7285_v8, %s7105_s29 }
  0x6f   : > { %457 = vrot.lane.b32.xlu0 %v7267_v3, %s7105_s29 }
  0x76   : > { %467 = vrot.lane.b32.xlu2 %v435_v12, %s7105_s29  ;;  %465 = vrot.lane.b32.xlu1 %v7292_v10, %s7105_s29 }
  0x77   : > { %463 = vrot.lane.b32.xlu0 %v7279_v6, %s7105_s29  ;;  %s7121_s29 = smov 101  }
  0x7e   : > { %549 = vrot.lane.b32.xlu2 %v7258_v1, %s7106_s30  ;;  %547 = vrot.lane.b32.xlu1 %v7273_v5, %s7106_s30 }
  0x7f   : > { %545 = vrot.lane.b32.xlu0 %v7261_v2, %s7106_s30 }
  0x80   : > { %v259_v13 = vpop.permute.xlu2 %258 }
  0x81   : > { %v276_v15 = vrot.slane %v259_v13, 4 }
  0x86   : > { %555 = vrot.lane.b32.xlu2 %v7267_v3, %s7106_s30  ;;  %553 = vrot.lane.b32.xlu1 %v7255_v0, %s7106_s30 }
  0x87   : > { %551 = vrot.lane.b32.xlu0 %v7270_v4, %s7106_s30 }
  0x88   : > { %v7332_v18 = vpop.permute.xlu2 %260 }
  0x89   : > { %v277_v21 = vrot.slane %v7332_v18, 4 }
  0x8b   : > { %v293_v22 = vsel %vm283_vm0, %v276_v15, %v277_v21 }
  0x8c   : > { %v294_v23 = vsel %vm285_vm1, %v259_v13, %v293_v22 }
  0x8d   : > { %320 = vst [vmem:[#allocation2 + $0x74] sm:$0xff] %v294_v23 }
  0x8e   : > { %561 = vrot.lane.b32.xlu2 %v7279_v6, %s7106_s30  ;;  %559 = vrot.lane.b32.xlu1 %v7282_v7, %s7106_s30 }
  0x8f   : > { %557 = vrot.lane.b32.xlu0 %v7285_v8, %s7106_s30 }
  0x90   : > { %v7347_v24 = vpop.permute.xlu2 %266 }
  0x91   : > { %v280_v50 = vrot.slane %v7347_v24, 4 }
  0x96   : > { %643 = vrot.lane.b32.xlu2 %v7261_v2, %s7107_s6  ;;  %565 = vrot.lane.b32.xlu1 %v533_v27, %s7106_s30 }
  0x97   : > { %563 = vrot.lane.b32.xlu0 %v7292_v10, %s7106_s30  ;;  %s7122_s30 = smov 118  }
  0x98   : > { %v7358_v29 = vpop.permute.xlu2 %349  ;;  %v255_v30 = vpop.permute.xlu1 %254 }
  0x99   : > { %v251_v31 = vpop.permute.xlu0 %250  ;;  %v274_v37 = vrot.slane %v255_v30, 4  ;;  %v371_v19 = vrot.slane %v7358_v29, 4 }
  0x9a   : > { %v272_v40 = vrot.slane %v251_v31, 4 }
  0x9e   : > { %649 = vrot.lane.b32.xlu2 %v7270_v4, %s7107_s6  ;;  %647 = vrot.lane.b32.xlu1 %v7258_v1, %s7107_s6 }
  0x9f   : > { %645 = vrot.lane.b32.xlu0 %v7273_v5, %s7107_s6 }
  0xa0   : > { %v7370_v35 = vpop.permute.xlu2 %355  ;;  %v257_v36 = vpop.permute.xlu1 %256 }
  0xa1   : > { %v275_v38 = vrot.slane %v257_v36, 4  ;;  %v253_v39 = vpop.permute.xlu0 %252 }
  0xa2   : > { %v273_v41 = vrot.slane %v253_v39, 4 }
  0xa3   : > { %v289_v42 = vsel %vm283_vm0, %v274_v37, %v275_v38  ;;  %v291_v43 = vsel %vm283_vm0, %v275_v38, %v276_v15  ;;  %v631_v15 = vld [vmem:[%s7244_s28 + $0x50] sm:$0xf] }
  0xa4   : > { %v290_v44 = vsel %vm285_vm1, %v255_v30, %v289_v42  ;;  %v292_v45 = vsel %vm285_vm1, %v257_v36, %v291_v43  ;;  %v284_v46 = vsel %vm283_vm0, %v272_v40, %v273_v41  ;;  %v287_v47 = vsel %vm283_vm0, %v273_v41, %v274_v37 }
  0xa5   : > { %318 = vst [vmem:[#allocation2 + $0x64] sm:$0xff] %v290_v44  ;;  %v286_v48 = vsel %vm285_vm1, %v251_v31, %v284_v46  ;;  %v288_v49 = vsel %vm285_vm1, %v253_v39, %v287_v47 }
  0xa6   : > { %319 = vst [vmem:[#allocation2 + $0x6c] sm:$0xff] %v292_v45  ;;  %655 = vrot.lane.b32.xlu2 %v7285_v8, %s7107_s6  ;;  %653 = vrot.lane.b32.xlu1 %v7267_v3, %s7107_s6 }
  0xa7   : > { %316 = vst [vmem:[#allocation2 + $0x54] sm:$0xff] %v286_v48  ;;  %651 = vrot.lane.b32.xlu0 %v7255_v0, %s7107_s6 }
  0xa8   : > { %317 = vst [vmem:[#allocation2 + $0x5c] sm:$0xff] %v288_v49  ;;  %v7387_v51 = vpop.permute.xlu2 %361  ;;  %v265_v52 = vpop.permute.xlu1 %264 }
  0xa9   : > { %v279_v53 = vrot.slane %v265_v52, 4  ;;  %v263_v54 = vpop.permute.xlu0 %262  ;;  %v377_v32 = vrot.slane %v7387_v51, 4 }
  0xaa   : > { %v278_v55 = vrot.slane %v263_v54, 4 }
  0xab   : > { %v299_v56 = vsel %vm283_vm0, %v279_v53, %v280_v50 }
  0xac   : > { %v300_v57 = vsel %vm285_vm1, %v265_v52, %v299_v56  ;;  %v295_v58 = vsel %vm283_vm0, %v277_v21, %v278_v55  ;;  %v297_v59 = vsel %vm283_vm0, %v278_v55, %v279_v53 }
  0xad   : > { %323 = vst [vmem:[#allocation2 + $0x8c] sm:$0xff] %v300_v57  ;;  %v296_v60 = vsel %vm285_vm1, %v7332_v18, %v295_v58  ;;  %v298_v61 = vsel %vm285_vm1, %v263_v54, %v297_v59  ;;  %v374_v18 = vrot.slane %v7370_v35, 4 }
  0xae   : > { %321 = vst [vmem:[#allocation2 + $0x7c] sm:$0xff] %v296_v60  ;;  %661 = vrot.lane.b32.xlu2 %v7292_v10, %s7107_s6  ;;  %659 = vrot.lane.b32.xlu1 %v7279_v6, %s7107_s6 }
  0xaf   : > { %322 = vst [vmem:[#allocation2 + $0x84] sm:$0xff] %v298_v61  ;;  %657 = vrot.lane.b32.xlu0 %v7282_v7, %s7107_s6 }
  0xb0   : > { %v7404_v62 = vpop.permute.xlu2 %367  ;;  %v271_v63 = vpop.permute.xlu1 %270 }
  0xb1   : > { %v282_v9 = vrot.slane %v271_v63, 4  ;;  %326 = vst.msk [vmem:[#allocation2 + $0xa4] sm:$0xf] %vm204_vm2, %v271_v63  ;;  %v269_v11 = vpop.permute.xlu0 %268  ;;  %v380_v44 = vrot.slane %v7404_v62, 4 }
  0xb2   : > { %v281_v12 = vrot.slane %v269_v11, 4 }
  0xb4   : > { %v301_v13 = vsel %vm283_vm0, %v280_v50, %v281_v12  ;;  %v303_v14 = vsel %vm283_vm0, %v281_v12, %v282_v9  ;;  %v729_v50 = vld [vmem:[%s7244_s28 + $0x50] sm:$0xf] }
  0xb5   : > { %v302_v16 = vsel %vm285_vm1, %v7347_v24, %v301_v13  ;;  %v304_v17 = vsel %vm285_vm1, %v269_v11, %v303_v14  ;;  %vm1657_vm1 = vcmask 195584  }
  0xb6   : > { %324 = vst [vmem:[#allocation2 + $0x94] sm:$0xff] %v302_v16  ;;  %743 = vrot.lane.b32.xlu2 %v7273_v5, %s7108_s7  ;;  %741 = vrot.lane.b32.xlu1 %v7261_v2, %s7108_s7 }
  0xb7   : > { %325 = vst [vmem:[#allocation2 + $0x9c] sm:$0xff] %v304_v17  ;;  %663 = vrot.lane.b32.xlu0 %v631_v15, %s7107_s6  ;;  %s7123_s6 = smov 100  }
  0xb8   : > { %v7420_v20 = vpop.permute.xlu2 %449  ;;  %v354_v21 = vpop.permute.xlu1 %353 }
  0xb9   : > { %v373_v22 = vrot.slane %v354_v21, 4  ;;  %v352_v23 = vpop.permute.xlu0 %351  ;;  %v470_v57 = vrot.slane %v7420_v20, 4 }
  0xba   : > { %v372_v24 = vrot.slane %v352_v23, 4 }
  0xbb   : > { %v387_v25 = vsel %vm283_vm0, %v373_v22, %v374_v18 }
  0xbc   : > { %v388_v26 = vsel %vm383_vm3, %v354_v21, %v387_v25  ;;  %v382_v27 = vsel %vm283_vm0, %v371_v19, %v372_v24  ;;  %v385_v28 = vsel %vm283_vm0, %v372_v24, %v373_v22 }
  0xbd   : > { %416 = vst [vmem:[#allocation2 + $0xb8] sm:$0xff] %v388_v26  ;;  %v384_v30 = vsel %vm383_vm3, %v7358_v29, %v382_v27  ;;  %v386_v31 = vsel %vm383_vm3, %v352_v23, %v385_v28 }
  0xbe   : > { %414 = vst [vmem:[#allocation2 + $0xa8] sm:$0xff] %v384_v30  ;;  %749 = vrot.lane.b32.xlu2 %v7255_v0, %s7108_s7  ;;  %747 = vrot.lane.b32.xlu1 %v7270_v4, %s7108_s7 }
  0xbf   : > { %415 = vst [vmem:[#allocation2 + $0xb0] sm:$0xff] %v386_v31  ;;  %745 = vrot.lane.b32.xlu0 %v7258_v1, %s7108_s7 }
  0xc0   : > { %v7436_v33 = vpop.permute.xlu2 %455  ;;  %v360_v34 = vpop.permute.xlu1 %359 }
  0xc1   : > { %v376_v36 = vrot.slane %v360_v34, 4  ;;  %v358_v29 = vpop.permute.xlu0 %357  ;;  %v473_v13 = vrot.slane %v7436_v33, 4 }
  0xc2   : > { %v375_v37 = vrot.slane %v358_v29, 4 }
  0xc3   : > { %v393_v38 = vsel %vm283_vm0, %v376_v36, %v377_v32 }
  0xc4   : > { %v394_v39 = vsel %vm383_vm3, %v360_v34, %v393_v38  ;;  %v389_v40 = vsel %vm283_vm0, %v374_v18, %v375_v37  ;;  %v391_v41 = vsel %vm283_vm0, %v375_v37, %v376_v36 }
  0xc5   : > { %419 = vst [vmem:[#allocation2 + $0xd0] sm:$0xff] %v394_v39  ;;  %v390_v42 = vsel %vm383_vm3, %v7370_v35, %v389_v40  ;;  %v392_v43 = vsel %vm383_vm3, %v358_v29, %v391_v41 }
  0xc6   : > { %417 = vst [vmem:[#allocation2 + $0xc0] sm:$0xff] %v390_v42  ;;  %755 = vrot.lane.b32.xlu2 %v7282_v7, %s7108_s7  ;;  %753 = vrot.lane.b32.xlu1 %v7285_v8, %s7108_s7 }
  0xc7   : > { %418 = vst [vmem:[#allocation2 + $0xc8] sm:$0xff] %v392_v43  ;;  %751 = vrot.lane.b32.xlu0 %v7267_v3, %s7108_s7 }
  0xc8   : > { %v7452_v45 = vpop.permute.xlu2 %461  ;;  %v366_v46 = vpop.permute.xlu1 %365 }
  0xc9   : > { %v379_v47 = vrot.slane %v366_v46, 4  ;;  %v364_v35 = vpop.permute.xlu0 %363  ;;  %v476_v25 = vrot.slane %v7452_v45, 4 }
  0xca   : > { %v378_v48 = vrot.slane %v364_v35, 4 }
  0xcb   : > { %v399_v49 = vsel %vm283_vm0, %v379_v47, %v380_v44 }
  0xcc   : > { %v400_v52 = vsel %vm383_vm3, %v366_v46, %v399_v49  ;;  %v395_v53 = vsel %vm283_vm0, %v377_v32, %v378_v48  ;;  %v397_v54 = vsel %vm283_vm0, %v378_v48, %v379_v47 }
  0xcd   : > { %422 = vst [vmem:[#allocation2 + $0xe8] sm:$0xff] %v400_v52  ;;  %v396_v55 = vsel %vm383_vm3, %v7387_v51, %v395_v53  ;;  %v398_v56 = vsel %vm383_vm3, %v364_v35, %v397_v54 }
  0xce   : > { %420 = vst [vmem:[#allocation2 + $0xd8] sm:$0xff] %v396_v55  ;;  %761 = vrot.lane.b32.xlu2 %v729_v50, %s7108_s7  ;;  %759 = vrot.lane.b32.xlu1 %v7292_v10, %s7108_s7 }
  0xcf   : > { %421 = vst [vmem:[#allocation2 + $0xe0] sm:$0xff] %v398_v56  ;;  %757 = vrot.lane.b32.xlu0 %v7279_v6, %s7108_s7  ;;  %s7124_s7 = smov 102  }
  0xd0   : > { %v468_v58 = vpop.permute.xlu2 %467  ;;  %v448_v59 = vpop.permute.xlu1 %447 }
  0xd1   : > { %522 = vst.msk [vmem:[#allocation2 + $0x14c] sm:$0xf] %vm204_vm2, %v468_v58  ;;  %v469_v51 = vrot.slane %v448_v59, 4  ;;  %v370_v60 = vpop.permute.xlu0 %369  ;;  %v479_v38 = vrot.slane %v468_v58, 4 }
  0xd2   : > { %v381_v61 = vrot.slane %v370_v60, 4  ;;  %424 = vst.msk [vmem:[#allocation2 + $0xf8] sm:$0xf] %vm204_vm2, %v370_v60 }
  0xd3   : > { %v480_v63 = vsel %vm283_vm0, %v469_v51, %v470_v57 }
  0xd4   : > { %v482_v9 = vsel %vm481_vm4, %v448_v59, %v480_v63  ;;  %v401_v11 = vsel %vm283_vm0, %v380_v44, %v381_v61  ;;  %v827_v44 = vld [vmem:[%s7244_s28 + $0x50] sm:$0xf] }
  0xd5   : > { %512 = vst [vmem:[#allocation2 + $0xfc] sm:$0xff] %v482_v9  ;;  %v402_v12 = vsel %vm383_vm3, %v7404_v62, %v401_v11  ;;  %vm2738_vm3 = vcmask 670720  }
  0xd6   : > { %423 = vst [vmem:[#allocation2 + $0xf0] sm:$0xff] %v402_v12  ;;  %843 = vrot.lane.b32.xlu2 %v7258_v1, %s7109_s8  ;;  %841 = vrot.lane.b32.xlu1 %v7273_v5, %s7109_s8 }
  0xd7   : > { %839 = vrot.lane.b32.xlu0 %v7261_v2, %s7109_s8 }
  0xd8   : > { %v7482_v14 = vpop.permute.xlu2 %549  ;;  %v454_v15 = vpop.permute.xlu1 %453 }
  0xd9   : > { %v472_v16 = vrot.slane %v454_v15, 4  ;;  %v452_v17 = vpop.permute.xlu0 %451  ;;  %v569_v50 = vrot.slane %v7482_v14, 4 }
  0xda   : > { %v471_v18 = vrot.slane %v452_v17, 4 }
  0xdb   : > { %v487_v62 = vsel %vm283_vm0, %v472_v16, %v473_v13 }
  0xdc   : > { %v488_v19 = vsel %vm481_vm4, %v454_v15, %v487_v62  ;;  %v483_v21 = vsel %vm283_vm0, %v470_v57, %v471_v18  ;;  %v485_v22 = vsel %vm283_vm0, %v471_v18, %v472_v16 }
  0xdd   : > { %515 = vst [vmem:[#allocation2 + $0x114] sm:$0xff] %v488_v19  ;;  %v484_v23 = vsel %vm481_vm4, %v7420_v20, %v483_v21  ;;  %v486_v24 = vsel %vm481_vm4, %v452_v17, %v485_v22 }
  0xde   : > { %513 = vst [vmem:[#allocation2 + $0x104] sm:$0xff] %v484_v23  ;;  %849 = vrot.lane.b32.xlu2 %v7267_v3, %s7109_s8  ;;  %847 = vrot.lane.b32.xlu1 %v7255_v0, %s7109_s8 }
  0xdf   : > { %514 = vst [vmem:[#allocation2 + $0x10c] sm:$0xff] %v486_v24  ;;  %845 = vrot.lane.b32.xlu0 %v7270_v4, %s7109_s8 }
  0xe0   : > { %v7498_v26 = vpop.permute.xlu2 %555  ;;  %v460_v27 = vpop.permute.xlu1 %459 }
  0xe1   : > { %v475_v28 = vrot.slane %v460_v27, 4  ;;  %v458_v20 = vpop.permute.xlu0 %457  ;;  %v572_v59 = vrot.slane %v7498_v26, 4 }
  0xe2   : > { %v474_v30 = vrot.slane %v458_v20, 4 }
  0xe3   : > { %v493_v31 = vsel %vm283_vm0, %v475_v28, %v476_v25 }
  0xe4   : > { %v494_v32 = vsel %vm481_vm4, %v460_v27, %v493_v31  ;;  %v489_v34 = vsel %vm283_vm0, %v473_v13, %v474_v30  ;;  %v491_v36 = vsel %vm283_vm0, %v474_v30, %v475_v28 }
  0xe5   : > { %518 = vst [vmem:[#allocation2 + $0x12c] sm:$0xff] %v494_v32  ;;  %v490_v29 = vsel %vm481_vm4, %v7436_v33, %v489_v34  ;;  %v492_v37 = vsel %vm481_vm4, %v458_v20, %v491_v36 }
  0xe6   : > { %516 = vst [vmem:[#allocation2 + $0x11c] sm:$0xff] %v490_v29  ;;  %855 = vrot.lane.b32.xlu2 %v7279_v6, %s7109_s8  ;;  %853 = vrot.lane.b32.xlu1 %v7282_v7, %s7109_s8 }
  0xe7   : > { %517 = vst [vmem:[#allocation2 + $0x124] sm:$0xff] %v492_v37  ;;  %851 = vrot.lane.b32.xlu0 %v7285_v8, %s7109_s8  ;;  %v925_v37 = vld [vmem:[%s7244_s28 + $0x50] sm:$0xf] }
  0xe8   : > { %v7513_v39 = vpop.permute.xlu2 %561  ;;  %v466_v40 = vpop.permute.xlu1 %465 }
  0xe9   : > { %v478_v41 = vrot.slane %v466_v40, 4  ;;  %v464_v42 = vpop.permute.xlu0 %463  ;;  %v575_v18 = vrot.slane %v7513_v39, 4 }
  0xea   : > { %v477_v33 = vrot.slane %v464_v42, 4 }
  0xeb   : > { %v499_v43 = vsel %vm283_vm0, %v478_v41, %v479_v38 }
  0xec   : > { %v500_v46 = vsel %vm481_vm4, %v466_v40, %v499_v43  ;;  %v495_v47 = vsel %vm283_vm0, %v476_v25, %v477_v33  ;;  %v497_v35 = vsel %vm283_vm0, %v477_v33, %v478_v41 }
  0xed   : > { %521 = vst [vmem:[#allocation2 + $0x144] sm:$0xff] %v500_v46  ;;  %v496_v48 = vsel %vm481_vm4, %v7452_v45, %v495_v47  ;;  %v498_v49 = vsel %vm481_vm4, %v464_v42, %v497_v35  ;;  %vm2542_vm4 = vcmask 687104  }
  0xee   : > { %519 = vst [vmem:[#allocation2 + $0x134] sm:$0xff] %v496_v48  ;;  %937 = vrot.lane.b32.xlu2 %v7261_v2, %s7110_s17  ;;  %859 = vrot.lane.b32.xlu1 %v827_v44, %s7109_s8 }
  0xef   : > { %520 = vst [vmem:[#allocation2 + $0x13c] sm:$0xff] %v498_v49  ;;  %857 = vrot.lane.b32.xlu0 %v7292_v10, %s7109_s8  ;;  %s7125_s8 = smov 119  }
  0xf0   : > { %v7529_v52 = vpop.permute.xlu2 %643  ;;  %v548_v53 = vpop.permute.xlu1 %547 }
  0xf1   : > { %v568_v45 = vrot.slane %v548_v53, 4  ;;  %v546_v54 = vpop.permute.xlu0 %545  ;;  %v665_v42 = vrot.slane %v7529_v52, 4 }
  0xf2   : > { %v567_v55 = vrot.slane %v546_v54, 4 }
  0xf3   : > { %v581_v56 = vsel %vm283_vm0, %v568_v45, %v569_v50 }
  0xf4   : > { %v582_v57 = vsel %vm579_vm5, %v548_v53, %v581_v56  ;;  %v578_v2 = vsel %vm283_vm0, %v567_v55, %v568_v45 }
  0xf5   : > { %611 = vst [vmem:[#allocation2 + $0x158] sm:$0xff] %v582_v57  ;;  %v580_v58 = vsel %vm579_vm5, %v546_v54, %v578_v2 }
  0xf6   : > { %610 = vst [vmem:[#allocation2 + $0x150] sm:$0xff] %v580_v58  ;;  %943 = vrot.lane.b32.xlu2 %v7270_v4, %s7110_s17  ;;  %941 = vrot.lane.b32.xlu1 %v7258_v1, %s7110_s17 }
  0xf7   : > { %939 = vrot.lane.b32.xlu0 %v7273_v5, %s7110_s17 }
  0xf8   : > { %v7542_v51 = vpop.permute.xlu2 %649  ;;  %v554_v60 = vpop.permute.xlu1 %553 }
  0xf9   : > { %v571_v61 = vrot.slane %v554_v60, 4  ;;  %v552_v63 = vpop.permute.xlu0 %551  ;;  %v668_v41 = vrot.slane %v7542_v51, 4 }
  0xfa   : > { %v570_v9 = vrot.slane %v552_v63, 4 }
  0xfb   : > { %v587_v11 = vsel %vm283_vm0, %v571_v61, %v572_v59 }
  0xfc   : > { %v588_v12 = vsel %vm579_vm5, %v554_v60, %v587_v11  ;;  %v583_v13 = vsel %vm283_vm0, %v569_v50, %v570_v9  ;;  %v585_v15 = vsel %vm283_vm0, %v570_v9, %v571_v61 }
  0xfd   : > { %614 = vst [vmem:[#allocation2 + $0x170] sm:$0xff] %v588_v12  ;;  %v584_v16 = vsel %vm579_vm5, %v7482_v14, %v583_v13  ;;  %v586_v17 = vsel %vm579_vm5, %v552_v63, %v585_v15 }
  0xfe   : > { %612 = vst [vmem:[#allocation2 + $0x160] sm:$0xff] %v584_v16  ;;  %949 = vrot.lane.b32.xlu2 %v7285_v8, %s7110_s17  ;;  %947 = vrot.lane.b32.xlu1 %v7267_v3, %s7110_s17  ;;  %v1023_v16 = vld [vmem:[%s7244_s28 + $0x58] sm:$0xf] }
  0xff   : > { %613 = vst [vmem:[#allocation2 + $0x168] sm:$0xff] %v586_v17  ;;  %945 = vrot.lane.b32.xlu0 %v7255_v0, %s7110_s17  ;;  %v7626_v17 = vld [vmem:[%s7244_s28 + $0x50] sm:$0xff] }
 0x100   : > { %v7558_v62 = vpop.permute.xlu2 %655  ;;  %v560_v19 = vpop.permute.xlu1 %559 }
 0x101   : > { %v574_v21 = vrot.slane %v560_v19, 4  ;;  %v558_v14 = vpop.permute.xlu0 %557  ;;  %v671_v45 = vrot.slane %v7558_v62, 4 }
 0x102   : > { %v573_v22 = vrot.slane %v558_v14, 4 }
 0x103   : > { %v593_v23 = vsel %vm283_vm0, %v574_v21, %v575_v18 }
 0x104   : > { %v594_v24 = vsel %vm579_vm5, %v560_v19, %v593_v23  ;;  %v589_v25 = vsel %vm283_vm0, %v572_v59, %v573_v22  ;;  %v591_v27 = vsel %vm283_vm0, %v573_v22, %v574_v21 }
 0x105   : > { %617 = vst [vmem:[#allocation2 + $0x188] sm:$0xff] %v594_v24  ;;  %v590_v28 = vsel %vm579_vm5, %v7498_v26, %v589_v25  ;;  %v592_v20 = vsel %vm579_vm5, %v558_v14, %v591_v27 }
 0x106   : > { %615 = vst [vmem:[#allocation2 + $0x178] sm:$0xff] %v590_v28  ;;  %955 = vrot.lane.b32.xlu2 %v7292_v10, %s7110_s17  ;;  %953 = vrot.lane.b32.xlu1 %v7279_v6, %s7110_s17 }
 0x107   : > { %616 = vst [vmem:[#allocation2 + $0x180] sm:$0xff] %v592_v20  ;;  %951 = vrot.lane.b32.xlu0 %v7282_v7, %s7110_s17 }
 0x108   : > { %v7573_v30 = vpop.permute.xlu2 %661  ;;  %v566_v31 = vpop.permute.xlu1 %565 }
 0x109   : > { %v577_v32 = vrot.slane %v566_v31, 4  ;;  %620 = vst.msk [vmem:[#allocation2 + $0x1a0] sm:$0xf] %vm204_vm2, %v566_v31  ;;  %v564_v26 = vpop.permute.xlu0 %563  ;;  %v674_v63 = vrot.slane %v7573_v30, 4 }
 0x10a   : > { %v576_v34 = vrot.slane %v564_v26, 4 }
 0x10c   : > { %v595_v36 = vsel %vm283_vm0, %v575_v18, %v576_v34  ;;  %v597_v29 = vsel %vm283_vm0, %v576_v34, %v577_v32 }
 0x10d   : > { %v596_v38 = vsel %vm579_vm5, %v7513_v39, %v595_v36  ;;  %v598_v40 = vsel %vm579_vm5, %v564_v26, %v597_v29  ;;  %vm2346_vm5 = vcmask 826368  }
 0x10e   : > { %618 = vst [vmem:[#allocation2 + $0x190] sm:$0xff] %v596_v38  ;;  %1037 = vrot.lane.b32.xlu2 %v7258_v1, %s7111_s15  ;;  %1035 = vrot.lane.b32.xlu1 %v7273_v5, %s7111_s15 }
 0x10f   : > { %619 = vst [vmem:[#allocation2 + $0x198] sm:$0xff] %v598_v40  ;;  %957 = vrot.lane.b32.xlu0 %v925_v37, %s7110_s17  ;;  %s7126_s17 = smov 120  }
 0x110   : > { %v7589_v33 = vpop.permute.xlu2 %743  ;;  %v648_v39 = vpop.permute.xlu1 %647 }
 0x111   : > { %v667_v43 = vrot.slane %v648_v39, 4  ;;  %v646_v44 = vpop.permute.xlu0 %645  ;;  %v764_v14 = vrot.slane %v7589_v33, 4 }
 0x112   : > { %v666_v46 = vrot.slane %v646_v44, 4 }
 0x113   : > { %v681_v47 = vsel %vm283_vm0, %v667_v43, %v668_v41 }
 0x114   : > { %v682_v35 = vsel %vm677_vm6, %v648_v39, %v681_v47  ;;  %v676_v48 = vsel %vm283_vm0, %v665_v42, %v666_v46  ;;  %v679_v49 = vsel %vm283_vm0, %v666_v46, %v667_v43  ;;  %v7680_v47 = vld [vmem:[%s7244_s28 + $0x48] sm:$0xff] }
 0x115   : > { %710 = vst [vmem:[#allocation2 + $0x1b4] sm:$0xff] %v682_v35  ;;  %v678_v50 = vsel %vm677_vm6, %v7529_v52, %v676_v48  ;;  %v680_v53 = vsel %vm677_vm6, %v646_v44, %v679_v49  ;;  %v7689_v49 = vld [vmem:[%s7244_s28 + $0x38] sm:$0xff] }
 0x116   : > { %708 = vst [vmem:[#allocation2 + $0x1a4] sm:$0xff] %v678_v50  ;;  %1043 = vrot.lane.b32.xlu2 %v7267_v3, %s7111_s15  ;;  %1041 = vrot.lane.b32.xlu1 %v7255_v0, %s7111_s15 }
 0x117   : > { %709 = vst [vmem:[#allocation2 + $0x1ac] sm:$0xff] %v680_v53  ;;  %1039 = vrot.lane.b32.xlu0 %v7270_v4, %s7111_s15 }
 0x118   : > { %v7605_v54 = vpop.permute.xlu2 %749  ;;  %v654_v55 = vpop.permute.xlu1 %653 }
 0x119   : > { %v670_v56 = vrot.slane %v654_v55, 4  ;;  %v652_v52 = vpop.permute.xlu0 %651  ;;  %v767_v31 = vrot.slane %v7605_v54, 4 }
 0x11a   : > { %v669_v57 = vrot.slane %v652_v52, 4 }
 0x11b   : > { %v687_v2 = vsel %vm283_vm0, %v670_v56, %v671_v45 }
 0x11c   : > { %v688_v58 = vsel %vm677_vm6, %v654_v55, %v687_v2  ;;  %v683_v59 = vsel %vm283_vm0, %v668_v41, %v669_v57  ;;  %v685_v0 = vsel %vm283_vm0, %v669_v57, %v670_v56 }
 0x11d   : > { %713 = vst [vmem:[#allocation2 + $0x1cc] sm:$0xff] %v688_v58  ;;  %v684_v60 = vsel %vm677_vm6, %v7542_v51, %v683_v59  ;;  %v686_v61 = vsel %vm677_vm6, %v652_v52, %v685_v0  ;;  %v7705_v58 = vld [vmem:[%s7244_s28 + $0x8] sm:$0xff]  ;;  %v1121_v59 = vld [vmem:[%s7244_s28 + $0x58] sm:$0xf] }
 0x11e   : > { %711 = vst [vmem:[#allocation2 + $0x1bc] sm:$0xff] %v684_v60  ;;  %1049 = vrot.lane.b32.xlu2 %v7279_v6, %s7111_s15  ;;  %1047 = vrot.lane.b32.xlu1 %v7282_v7, %s7111_s15 }
 0x11f   : > { %712 = vst [vmem:[#allocation2 + $0x1c4] sm:$0xff] %v686_v61  ;;  %1045 = vrot.lane.b32.xlu0 %v7285_v8, %s7111_s15 }
 0x120   : > { %v7621_v9 = vpop.permute.xlu2 %755  ;;  %v660_v11 = vpop.permute.xlu1 %659 }
 0x121   : > { %v673_v12 = vrot.slane %v660_v11, 4  ;;  %v658_v51 = vpop.permute.xlu0 %657  ;;  %v770_v41 = vrot.slane %v7621_v9, 4 }
 0x122   : > { %v672_v13 = vrot.slane %v658_v51, 4 }
 0x123   : > { %v693_v15 = vsel %vm283_vm0, %v673_v12, %v674_v63 }
 0x124   : > { %v694_v6 = vsel %vm677_vm6, %v660_v11, %v693_v15  ;;  %v689_v7 = vsel %vm283_vm0, %v671_v45, %v672_v13  ;;  %v691_v18 = vsel %vm283_vm0, %v672_v13, %v673_v12 }
 0x125   : > { %716 = vst [vmem:[#allocation2 + $0x1e4] sm:$0xff] %v694_v6  ;;  %v690_v19 = vsel %vm677_vm6, %v7558_v62, %v689_v7  ;;  %v692_v21 = vsel %vm677_vm6, %v658_v51, %v691_v18  ;;  %v7724_v7 = vld [vmem:[%s7244_s28 + $0x18] sm:$0xff] }
 0x126   : > { %714 = vst [vmem:[#allocation2 + $0x1d4] sm:$0xff] %v690_v19  ;;  %1055 = vrot.lane.b32.xlu2 %v1023_v16, %s7111_s15  ;;  %1053 = vrot.lane.b32.xlu1 %v7626_v17, %s7111_s15 }
 0x127   : > { %715 = vst [vmem:[#allocation2 + $0x1dc] sm:$0xff] %v692_v21  ;;  %1051 = vrot.lane.b32.xlu0 %v7292_v10, %s7111_s15  ;;  %v7729_v21 = vld [vmem:[%s7244_s28 + $0x10] sm:$0xff]  ;;  %s7127_s15 = smov 23  }
 0x128   : > { %v7640_v22 = vpop.permute.xlu2 %761  ;;  %v742_v23 = vpop.permute.xlu1 %741 }
 0x129   : > { %816 = vst.msk [vmem:[#allocation2 + $0x248] sm:$0xf] %vm204_vm2, %v7640_v22  ;;  %v763_v62 = vrot.slane %v742_v23, 4  ;;  %v664_v24 = vpop.permute.xlu0 %663  ;;  %v773_v45 = vrot.slane %v7640_v22, 4 }
 0x12a   : > { %v675_v25 = vrot.slane %v664_v24, 4  ;;  %718 = vst.msk [vmem:[#allocation2 + $0x1f4] sm:$0xf] %vm204_vm2, %v664_v24 }
 0x12b   : > { %v774_v27 = vsel %vm283_vm0, %v763_v62, %v764_v14 }
 0x12c   : > { %v776_v28 = vsel %vm775_vm7, %v742_v23, %v774_v27  ;;  %v695_v20 = vsel %vm283_vm0, %v674_v63, %v675_v25 }
 0x12d   : > { %806 = vst [vmem:[#allocation2 + $0x1f8] sm:$0xff] %v776_v28  ;;  %v696_v10 = vsel %vm677_vm6, %v7573_v30, %v695_v20  ;;  %v7743_v20 = vld [vmem:[%s7244_s28 + $0x30] sm:$0xff]  ;;  %vm2640_vm6 = vcmask 678912  }
 0x12e   : > { %717 = vst [vmem:[#allocation2 + $0x1ec] sm:$0xff] %v696_v10  ;;  %1137 = vrot.lane.b32.xlu2 %v7270_v4, %s7112_s18  ;;  %1135 = vrot.lane.b32.xlu1 %v7258_v1, %s7112_s18  ;;  %v7664_v1 = vld [vmem:[%s7244_s28 + $0x20] sm:$0xff] }
 0x12f   : > { %1133 = vrot.lane.b32.xlu0 %v7273_v5, %s7112_s18 }
 0x130   : > { %v7657_v32 = vpop.permute.xlu2 %843  ;;  %v748_v26 = vpop.permute.xlu1 %747 }
 0x131   : > { %v766_v34 = vrot.slane %v748_v26, 4  ;;  %v746_v36 = vpop.permute.xlu0 %745  ;;  %v863_v12 = vrot.slane %v7657_v32, 4 }
 0x132   : > { %v765_v30 = vrot.slane %v746_v36, 4 }
 0x133   : > { %v781_v29 = vsel %vm283_vm0, %v766_v34, %v767_v31 }
 0x134   : > { %v782_v37 = vsel %vm775_vm7, %v748_v26, %v781_v29  ;;  %v777_v4 = vsel %vm283_vm0, %v764_v14, %v765_v30  ;;  %v779_v38 = vsel %vm283_vm0, %v765_v30, %v766_v34  ;;  %v7749_v34 = vld [vmem:[%s7244_s28 + $0x28] sm:$0xff] }
 0x135   : > { %809 = vst [vmem:[#allocation2 + $0x210] sm:$0xff] %v782_v37  ;;  %v778_v5 = vsel %vm775_vm7, %v7589_v33, %v777_v4  ;;  %v780_v40 = vsel %vm775_vm7, %v746_v36, %v779_v38 }
 0x136   : > { %807 = vst [vmem:[#allocation2 + $0x200] sm:$0xff] %v778_v5  ;;  %1143 = vrot.lane.b32.xlu2 %v7285_v8, %s7112_s18  ;;  %1141 = vrot.lane.b32.xlu1 %v7267_v3, %s7112_s18  ;;  %v7683_v8 = vld [vmem:[%s7244_s28 + $0x40] sm:$0xff] }
 0x137   : > { %808 = vst [vmem:[#allocation2 + $0x208] sm:$0xff] %v780_v40  ;;  %1139 = vrot.lane.b32.xlu0 %v7664_v1, %s7112_s18 }
 0x138   : > { %v7676_v42 = vpop.permute.xlu2 %849  ;;  %v754_v39 = vpop.permute.xlu1 %753 }
 0x139   : > { %v769_v33 = vrot.slane %v754_v39, 4  ;;  %v752_v43 = vpop.permute.xlu0 %751  ;;  %v866_v22 = vrot.slane %v7676_v42, 4 }
 0x13a   : > { %v768_v44 = vrot.slane %v752_v43, 4 }
 0x13b   : > { %v787_v46 = vsel %vm283_vm0, %v769_v33, %v770_v41 }
 0x13c   : > { %v788_v3 = vsel %vm775_vm7, %v754_v39, %v787_v46  ;;  %v783_v35 = vsel %vm283_vm0, %v767_v31, %v768_v44  ;;  %v785_v48 = vsel %vm283_vm0, %v768_v44, %v769_v33 }
 0x13d   : > { %812 = vst [vmem:[#allocation2 + $0x228] sm:$0xff] %v788_v3  ;;  %v784_v50 = vsel %vm775_vm7, %v7605_v54, %v783_v35  ;;  %v786_v53 = vsel %vm775_vm7, %v752_v43, %v785_v48 }
 0x13e   : > { %810 = vst [vmem:[#allocation2 + $0x218] sm:$0xff] %v784_v50  ;;  %1149 = vrot.lane.b32.xlu2 %v7680_v47, %s7112_s18  ;;  %1147 = vrot.lane.b32.xlu1 %v7683_v8, %s7112_s18 }
 0x13f   : > { %811 = vst [vmem:[#allocation2 + $0x220] sm:$0xff] %v786_v53  ;;  %1145 = vrot.lane.b32.xlu0 %v7689_v49, %s7112_s18 }
 0x140   : > { %v7701_v55 = vpop.permute.xlu2 %855  ;;  %v760_v56 = vpop.permute.xlu1 %759 }
 0x141   : > { %v772_v52 = vrot.slane %v760_v56, 4  ;;  %v758_v54 = vpop.permute.xlu0 %757  ;;  %v869_v29 = vrot.slane %v7701_v55, 4 }
 0x142   : > { %v771_v57 = vrot.slane %v758_v54, 4 }
 0x143   : > { %v793_v2 = vsel %vm283_vm0, %v772_v52, %v773_v45  ;;  %v1219_v45 = vld [vmem:[%s7244_s28 + $0x58] sm:$0xf] }
 0x144   : > { %v794_v0 = vsel %vm775_vm7, %v760_v56, %v793_v2  ;;  %v789_v60 = vsel %vm283_vm0, %v770_v41, %v771_v57  ;;  %v791_v61 = vsel %vm283_vm0, %v771_v57, %v772_v52 }
 0x145   : > { %815 = vst [vmem:[#allocation2 + $0x240] sm:$0xff] %v794_v0  ;;  %v790_v63 = vsel %vm775_vm7, %v7621_v9, %v789_v60  ;;  %v792_v11 = vsel %vm775_vm7, %v758_v54, %v791_v61  ;;  %vm2444_vm7 = vcmask 818176  }
 0x146   : > { %813 = vst [vmem:[#allocation2 + $0x230] sm:$0xff] %v790_v63  ;;  %1231 = vrot.lane.b32.xlu2 %v7705_v58, %s7113_s19  ;;  %1153 = vrot.lane.b32.xlu1 %v1121_v59, %s7112_s18 }
 0x147   : > { %814 = vst [vmem:[#allocation2 + $0x238] sm:$0xff] %v792_v11  ;;  %1151 = vrot.lane.b32.xlu0 %v7626_v17, %s7112_s18  ;;  %s7128_s18 = smov 22  }
 0x148   : > { %v7720_v51 = vpop.permute.xlu2 %937  ;;  %v842_v9 = vpop.permute.xlu1 %841 }
 0x149   : > { %v862_v13 = vrot.slane %v842_v9, 4  ;;  %v840_v15 = vpop.permute.xlu0 %839  ;;  %v959_v57 = vrot.slane %v7720_v51, 4 }
 0x14a   : > { %v861_v16 = vrot.slane %v840_v15, 4 }
 0x14b   : > { %v875_v6 = vsel %vm283_vm0, %v862_v13, %v863_v12 }
 0x14c   : > { %v876_v18 = vsel %vm873_vm8, %v842_v9, %v875_v6  ;;  %v872_v19 = vsel %vm283_vm0, %v861_v16, %v862_v13 }
 0x14d   : > { %905 = vst [vmem:[#allocation2 + $0x254] sm:$0xff] %v876_v18  ;;  %v874_v14 = vsel %vm873_vm8, %v840_v15, %v872_v19 }
 0x14e   : > { %904 = vst [vmem:[#allocation2 + $0x24c] sm:$0xff] %v874_v14  ;;  %1237 = vrot.lane.b32.xlu2 %v7664_v1, %s7113_s19  ;;  %1235 = vrot.lane.b32.xlu1 %v7724_v7, %s7113_s19 }
 0x14f   : > { %1233 = vrot.lane.b32.xlu0 %v7729_v21, %s7113_s19 }
 0x150   : > { %v7739_v23 = vpop.permute.xlu2 %943  ;;  %v848_v62 = vpop.permute.xlu1 %847 }
 0x151   : > { %v865_v24 = vrot.slane %v848_v62, 4  ;;  %v846_v25 = vpop.permute.xlu0 %845  ;;  %v962_v54 = vrot.slane %v7739_v23, 4 }
 0x152   : > { %v864_v27 = vrot.slane %v846_v25, 4 }
 0x153   : > { %v881_v28 = vsel %vm283_vm0, %v865_v24, %v866_v22 }
 0x154   : > { %v882_v10 = vsel %vm873_vm8, %v848_v62, %v881_v28  ;;  %v877_v31 = vsel %vm283_vm0, %v863_v12, %v864_v27  ;;  %v879_v26 = vsel %vm283_vm0, %v864_v27, %v865_v24 }
 0x155   : > { %908 = vst [vmem:[#allocation2 + $0x26c] sm:$0xff] %v882_v10  ;;  %v878_v36 = vsel %vm873_vm8, %v7657_v32, %v877_v31  ;;  %v880_v30 = vsel %vm873_vm8, %v846_v25, %v879_v26 }
 0x156   : > { %906 = vst [vmem:[#allocation2 + $0x25c] sm:$0xff] %v878_v36  ;;  %1243 = vrot.lane.b32.xlu2 %v7689_v49, %s7113_s19  ;;  %1241 = vrot.lane.b32.xlu1 %v7743_v20, %s7113_s19 }
 0x157   : > { %907 = vst [vmem:[#allocation2 + $0x264] sm:$0xff] %v880_v30  ;;  %1239 = vrot.lane.b32.xlu0 %v7749_v34, %s7113_s19 }
 0x158   : > { %v7761_v37 = vpop.permute.xlu2 %949  ;;  %v854_v4 = vpop.permute.xlu1 %853 }
 0x159   : > { %v868_v38 = vrot.slane %v854_v4, 4  ;;  %v852_v32 = vpop.permute.xlu0 %851  ;;  %v965_v15 = vrot.slane %v7761_v37, 4 }
 0x15a   : > { %v867_v5 = vrot.slane %v852_v32, 4 }
 0x15b   : > { %v887_v40 = vsel %vm283_vm0, %v868_v38, %v869_v29 }
 0x15c   : > { %v888_v41 = vsel %vm873_vm8, %v854_v4, %v887_v40  ;;  %v883_v39 = vsel %vm283_vm0, %v866_v22, %v867_v5  ;;  %v885_v33 = vsel %vm283_vm0, %v867_v5, %v868_v38 }
 0x15d   : > { %911 = vst [vmem:[#allocation2 + $0x284] sm:$0xff] %v888_v41  ;;  %v884_v43 = vsel %vm873_vm8, %v7676_v42, %v883_v39  ;;  %v886_v44 = vsel %vm873_vm8, %v852_v32, %v885_v33 }
 0x15e   : > { %909 = vst [vmem:[#allocation2 + $0x274] sm:$0xff] %v884_v43  ;;  %1249 = vrot.lane.b32.xlu2 %v7626_v17, %s7113_s19  ;;  %1247 = vrot.lane.b32.xlu1 %v7680_v47, %s7113_s19 }
 0x15f   : > { %910 = vst [vmem:[#allocation2 + $0x27c] sm:$0xff] %v886_v44  ;;  %1245 = vrot.lane.b32.xlu0 %v7683_v8, %s7113_s19 }
 0x160   : > { %v7776_v46 = vpop.permute.xlu2 %955  ;;  %v860_v3 = vpop.permute.xlu1 %859 }
 0x161   : > { %v871_v35 = vrot.slane %v860_v3, 4  ;;  %914 = vst.msk [vmem:[#allocation2 + $0x29c] sm:$0xf] %vm204_vm2, %v860_v3  ;;  %v858_v42 = vpop.permute.xlu0 %857  ;;  %v968_v28 = vrot.slane %v7776_v46, 4 }
 0x162   : > { %v870_v48 = vrot.slane %v858_v42, 4 }
 0x164   : > { %v889_v50 = vsel %vm283_vm0, %v869_v29, %v870_v48  ;;  %v891_v53 = vsel %vm283_vm0, %v870_v48, %v871_v35  ;;  %v1317_v29 = vld [vmem:[%s7244_s28 + $0x58] sm:$0xf] }
 0x165   : > { %v890_v56 = vsel %vm873_vm8, %v7701_v55, %v889_v50  ;;  %v892_v52 = vsel %vm873_vm8, %v858_v42, %v891_v53  ;;  %vm2248_vm8 = vcmask 834560  }
 0x166   : > { %912 = vst [vmem:[#allocation2 + $0x28c] sm:$0xff] %v890_v56  ;;  %1331 = vrot.lane.b32.xlu2 %v7729_v21, %s7114_s21  ;;  %1329 = vrot.lane.b32.xlu1 %v7705_v58, %s7114_s21 }
 0x167   : > { %913 = vst [vmem:[#allocation2 + $0x294] sm:$0xff] %v892_v52  ;;  %1251 = vrot.lane.b32.xlu0 %v1219_v45, %s7113_s19 }
 0x168   : > { %v7792_v2 = vpop.permute.xlu2 %1037  ;;  %v942_v55 = vpop.permute.xlu1 %941 }
 0x169   : > { %v961_v59 = vrot.slane %v942_v55, 4  ;;  %v940_v0 = vpop.permute.xlu0 %939  ;;  %v1058_v41 = vrot.slane %v7792_v2, 4 }
 0x16a   : > { %v960_v60 = vrot.slane %v940_v0, 4 }
 0x16b   : > { %v975_v61 = vsel %vm283_vm0, %v961_v59, %v962_v54 }
 0x16c   : > { %v976_v63 = vsel %vm971_vm9, %v942_v55, %v975_v61  ;;  %v970_v11 = vsel %vm283_vm0, %v959_v57, %v960_v60  ;;  %v973_v12 = vsel %vm283_vm0, %v960_v60, %v961_v59 }
 0x16d   : > { %1004 = vst [vmem:[#allocation2 + $0x2b0] sm:$0xff] %v976_v63  ;;  %v972_v9 = vsel %vm971_vm9, %v7720_v51, %v970_v11  ;;  %v974_v13 = vsel %vm971_vm9, %v940_v0, %v973_v12 }
 0x16e   : > { %1002 = vst [vmem:[#allocation2 + $0x2a0] sm:$0xff] %v972_v9  ;;  %1337 = vrot.lane.b32.xlu2 %v7749_v34, %s7114_s21  ;;  %1335 = vrot.lane.b32.xlu1 %v7664_v1, %s7114_s21 }
 0x16f   : > { %1003 = vst [vmem:[#allocation2 + $0x2a8] sm:$0xff] %v974_v13  ;;  %1333 = vrot.lane.b32.xlu0 %v7724_v7, %s7114_s21 }
 0x170   : > { %v7808_v16 = vpop.permute.xlu2 %1043  ;;  %v948_v6 = vpop.permute.xlu1 %947 }
 0x171   : > { %v964_v18 = vrot.slane %v948_v6, 4  ;;  %v946_v51 = vpop.permute.xlu0 %945  ;;  %v1061_v50 = vrot.slane %v7808_v16, 4 }
 0x172   : > { %v963_v19 = vrot.slane %v946_v51, 4 }
 0x173   : > { %v981_v14 = vsel %vm283_vm0, %v964_v18, %v965_v15 }
 0x174   : > { %v982_v22 = vsel %vm971_vm9, %v948_v6, %v981_v14  ;;  %v977_v62 = vsel %vm283_vm0, %v962_v54, %v963_v19  ;;  %v979_v24 = vsel %vm283_vm0, %v963_v19, %v964_v18 }
 0x175   : > { %1007 = vst [vmem:[#allocation2 + $0x2c8] sm:$0xff] %v982_v22  ;;  %v978_v25 = vsel %vm971_vm9, %v7739_v23, %v977_v62  ;;  %v980_v27 = vsel %vm971_vm9, %v946_v51, %v979_v24 }
 0x176   : > { %1005 = vst [vmem:[#allocation2 + $0x2b8] sm:$0xff] %v978_v25  ;;  %1343 = vrot.lane.b32.xlu2 %v7683_v8, %s7114_s21  ;;  %1341 = vrot.lane.b32.xlu1 %v7689_v49, %s7114_s21 }
 0x177   : > { %1006 = vst [vmem:[#allocation2 + $0x2c0] sm:$0xff] %v980_v27  ;;  %1339 = vrot.lane.b32.xlu0 %v7743_v20, %s7114_s21 }
 0x178   : > { %v7824_v10 = vpop.permute.xlu2 %1049  ;;  %v954_v31 = vpop.permute.xlu1 %953 }
 0x179   : > { %v967_v26 = vrot.slane %v954_v31, 4  ;;  %v952_v23 = vpop.permute.xlu0 %951  ;;  %v1064_v61 = vrot.slane %v7824_v10, 4 }
 0x17a   : > { %v966_v36 = vrot.slane %v952_v23, 4 }
 0x17b   : > { %v987_v30 = vsel %vm283_vm0, %v967_v26, %v968_v28 }
 0x17c   : > { %v988_v4 = vsel %vm971_vm9, %v954_v31, %v987_v30  ;;  %v983_v38 = vsel %vm283_vm0, %v965_v15, %v966_v36  ;;  %v985_v32 = vsel %vm283_vm0, %v966_v36, %v967_v26 }
 0x17d   : > { %1010 = vst [vmem:[#allocation2 + $0x2e0] sm:$0xff] %v988_v4  ;;  %v984_v5 = vsel %vm971_vm9, %v7761_v37, %v983_v38  ;;  %v986_v40 = vsel %vm971_vm9, %v952_v23, %v985_v32 }
 0x17e   : > { %1008 = vst [vmem:[#allocation2 + $0x2d0] sm:$0xff] %v984_v5  ;;  %1349 = vrot.lane.b32.xlu2 %v1317_v29, %s7114_s21  ;;  %1347 = vrot.lane.b32.xlu1 %v7626_v17, %s7114_s21 }
 0x17f   : > { %1009 = vst [vmem:[#allocation2 + $0x2d8] sm:$0xff] %v986_v40  ;;  %1345 = vrot.lane.b32.xlu0 %v7680_v47, %s7114_s21  ;;  %s6846_s21 = smul.u32 336, %s7090_s12 }
 0x180   : > { %v1056_v39 = vpop.permute.xlu2 %1055  ;;  %v1036_v33 = vpop.permute.xlu1 %1035 }
 0x181   : > { %1110 = vst.msk [vmem:[#allocation2 + $0x344] sm:$0xf] %vm204_vm2, %v1056_v39  ;;  %v1057_v37 = vrot.slane %v1036_v33, 4  ;;  %v958_v43 = vpop.permute.xlu0 %957  ;;  %v1067_v14 = vrot.slane %v1056_v39, 4 }
 0x182   : > { %v969_v44 = vrot.slane %v958_v43, 4  ;;  %1012 = vst.msk [vmem:[#allocation2 + $0x2f0] sm:$0xf] %vm204_vm2, %v958_v43 }
 0x183   : > { %v1068_v3 = vsel %vm283_vm0, %v1057_v37, %v1058_v41 }
 0x184   : > { %v1070_v35 = vsel %vm1069_vm10, %v1036_v33, %v1068_v3  ;;  %v989_v42 = vsel %vm283_vm0, %v968_v28, %v969_v44  ;;  %v1415_v28 = vld [vmem:[%s7244_s28 + $0x58] sm:$0xf] }
 0x185   : > { %1100 = vst [vmem:[#allocation2 + $0x2f4] sm:$0xff] %v1070_v35  ;;  %v990_v48 = vsel %vm971_vm9, %v7776_v46, %v989_v42  ;;  %vm2150_vm9 = vcmask 965632  }
 0x186   : > { %1011 = vst [vmem:[#allocation2 + $0x2e8] sm:$0xff] %v990_v48  ;;  %1431 = vrot.lane.b32.xlu2 %v7724_v7, %s7115_s22  ;;  %1429 = vrot.lane.b32.xlu1 %v7729_v21, %s7115_s22 }
 0x187   : > { %1427 = vrot.lane.b32.xlu0 %v7705_v58, %s7115_s22 }
 0x188   : > { %v7854_v53 = vpop.permute.xlu2 %1137  ;;  %v1042_v45 = vpop.permute.xlu1 %1041 }
 0x189   : > { %v1060_v56 = vrot.slane %v1042_v45, 4  ;;  %v1040_v52 = vpop.permute.xlu0 %1039  ;;  %v1157_v29 = vrot.slane %v7854_v53, 4 }
 0x18a   : > { %v1059_v54 = vrot.slane %v1040_v52, 4 }
 0x18b   : > { %v1075_v46 = vsel %vm283_vm0, %v1060_v56, %v1061_v50 }
 0x18c   : > { %v1076_v57 = vsel %vm1069_vm10, %v1042_v45, %v1075_v46  ;;  %v1071_v55 = vsel %vm283_vm0, %v1058_v41, %v1059_v54  ;;  %v1073_v59 = vsel %vm283_vm0, %v1059_v54, %v1060_v56 }
 0x18d   : > { %1103 = vst [vmem:[#allocation2 + $0x30c] sm:$0xff] %v1076_v57  ;;  %v1072_v0 = vsel %vm1069_vm10, %v7792_v2, %v1071_v55  ;;  %v1074_v60 = vsel %vm1069_vm10, %v1040_v52, %v1073_v59 }
 0x18e   : > { %1101 = vst [vmem:[#allocation2 + $0x2fc] sm:$0xff] %v1072_v0  ;;  %1437 = vrot.lane.b32.xlu2 %v7743_v20, %s7115_s22  ;;  %1435 = vrot.lane.b32.xlu1 %v7749_v34, %s7115_s22 }
 0x18f   : > { %1102 = vst [vmem:[#allocation2 + $0x304] sm:$0xff] %v1074_v60  ;;  %1433 = vrot.lane.b32.xlu0 %v7664_v1, %s7115_s22 }
 0x190   : > { %v7870_v63 = vpop.permute.xlu2 %1143  ;;  %v1048_v11 = vpop.permute.xlu1 %1047 }
 0x191   : > { %v1063_v12 = vrot.slane %v1048_v11, 4  ;;  %v1046_v2 = vpop.permute.xlu0 %1045  ;;  %v1160_v37 = vrot.slane %v7870_v63, 4 }
 0x192   : > { %v1062_v9 = vrot.slane %v1046_v2, 4 }
 0x193   : > { %v1081_v13 = vsel %vm283_vm0, %v1063_v12, %v1064_v61 }
 0x194   : > { %v1082_v15 = vsel %vm1069_vm10, %v1048_v11, %v1081_v13  ;;  %v1077_v6 = vsel %vm283_vm0, %v1061_v50, %v1062_v9  ;;  %v1079_v18 = vsel %vm283_vm0, %v1062_v9, %v1063_v12 }
 0x195   : > { %1106 = vst [vmem:[#allocation2 + $0x324] sm:$0xff] %v1082_v15  ;;  %v1078_v51 = vsel %vm1069_vm10, %v7808_v16, %v1077_v6  ;;  %v1080_v19 = vsel %vm1069_vm10, %v1046_v2, %v1079_v18 }
 0x196   : > { %1104 = vst [vmem:[#allocation2 + $0x314] sm:$0xff] %v1078_v51  ;;  %1443 = vrot.lane.b32.xlu2 %v7680_v47, %s7115_s22  ;;  %1441 = vrot.lane.b32.xlu1 %v7683_v8, %s7115_s22 }
 0x197   : > { %1105 = vst [vmem:[#allocation2 + $0x31c] sm:$0xff] %v1080_v19  ;;  %1439 = vrot.lane.b32.xlu0 %v7689_v49, %s7115_s22 }
 0x198   : > { %v7885_v22 = vpop.permute.xlu2 %1149  ;;  %v1054_v62 = vpop.permute.xlu1 %1053 }
 0x199   : > { %v1066_v24 = vrot.slane %v1054_v62, 4  ;;  %v1052_v25 = vpop.permute.xlu0 %1051  ;;  %v1163_v46 = vrot.slane %v7885_v22, 4 }
 0x19a   : > { %v1065_v16 = vrot.slane %v1052_v25, 4 }
 0x19b   : > { %v1087_v27 = vsel %vm283_vm0, %v1066_v24, %v1067_v14 }
 0x19c   : > { %v1088_v31 = vsel %vm1069_vm10, %v1054_v62, %v1087_v27  ;;  %v1083_v26 = vsel %vm283_vm0, %v1064_v61, %v1065_v16  ;;  %v1085_v23 = vsel %vm283_vm0, %v1065_v16, %v1066_v24 }
 0x19d   : > { %1109 = vst [vmem:[#allocation2 + $0x33c] sm:$0xff] %v1088_v31  ;;  %v1084_v36 = vsel %vm1069_vm10, %v7824_v10, %v1083_v26  ;;  %v1086_v30 = vsel %vm1069_vm10, %v1052_v25, %v1085_v23  ;;  %vm1954_vm10 = vcmask 982016  }
 0x19e   : > { %1107 = vst [vmem:[#allocation2 + $0x32c] sm:$0xff] %v1084_v36  ;;  %1525 = vrot.lane.b32.xlu2 %v7705_v58, %s7116_s23  ;;  %1447 = vrot.lane.b32.xlu1 %v1415_v28, %s7115_s22 }
 0x19f   : > { %1108 = vst [vmem:[#allocation2 + $0x334] sm:$0xff] %v1086_v30  ;;  %1445 = vrot.lane.b32.xlu0 %v7626_v17, %s7115_s22 }
 0x1a0   : > { %v7901_v4 = vpop.permute.xlu2 %1231  ;;  %v1136_v38 = vpop.permute.xlu1 %1135 }
 0x1a1   : > { %v1156_v10 = vrot.slane %v1136_v38, 4  ;;  %v1134_v32 = vpop.permute.xlu0 %1133  ;;  %v1253_v14 = vrot.slane %v7901_v4, 4 }
 0x1a2   : > { %v1155_v5 = vrot.slane %v1134_v32, 4 }
 0x1a3   : > { %v1169_v40 = vsel %vm283_vm0, %v1156_v10, %v1157_v29 }
 0x1a4   : > { %v1170_v41 = vsel %vm1167_vm11, %v1136_v38, %v1169_v40  ;;  %v1166_v39 = vsel %vm283_vm0, %v1155_v5, %v1156_v10  ;;  %v7981_v40 = vld [vmem:[%s7244_s28 + $0x1c] sm:$0xff] }
 0x1a5   : > { %1199 = vst [vmem:[#allocation2 + $0x350] sm:$0xff] %v1170_v41  ;;  %v1168_v33 = vsel %vm1167_vm11, %v1134_v32, %v1166_v39 }
 0x1a6   : > { %1198 = vst [vmem:[#allocation2 + $0x348] sm:$0xff] %v1168_v33  ;;  %1531 = vrot.lane.b32.xlu2 %v7664_v1, %s7116_s23  ;;  %1529 = vrot.lane.b32.xlu1 %v7724_v7, %s7116_s23 }
 0x1a7   : > { %1527 = vrot.lane.b32.xlu0 %v7729_v21, %s7116_s23 }
 0x1a8   : > { %v7914_v43 = vpop.permute.xlu2 %1237  ;;  %v1142_v44 = vpop.permute.xlu1 %1141 }
 0x1a9   : > { %v1159_v3 = vrot.slane %v1142_v44, 4  ;;  %v1140_v35 = vpop.permute.xlu0 %1139 }
 0x1aa   : > { %v1158_v42 = vrot.slane %v1140_v35, 4 }
 0x1ab   : > { %v1175_v48 = vsel %vm283_vm0, %v1159_v3, %v1160_v37 }
 0x1ac   : > { %v1176_v50 = vsel %vm1167_vm11, %v1142_v44, %v1175_v48  ;;  %v1171_v45 = vsel %vm283_vm0, %v1157_v29, %v1158_v42  ;;  %v1173_v56 = vsel %vm283_vm0, %v1158_v42, %v1159_v3 }
 0x1ad   : > { %1202 = vst [vmem:[#allocation2 + $0x368] sm:$0xff] %v1176_v50  ;;  %v1172_v52 = vsel %vm1167_vm11, %v7854_v53, %v1171_v45  ;;  %v1174_v54 = vsel %vm1167_vm11, %v1140_v35, %v1173_v56 }
 0x1ae   : > { %1200 = vst [vmem:[#allocation2 + $0x358] sm:$0xff] %v1172_v52  ;;  %1537 = vrot.lane.b32.xlu2 %v7689_v49, %s7116_s23  ;;  %1535 = vrot.lane.b32.xlu1 %v7743_v20, %s7116_s23 }
 0x1af   : > { %1201 = vst [vmem:[#allocation2 + $0x360] sm:$0xff] %v1174_v54  ;;  %1533 = vrot.lane.b32.xlu0 %v7749_v34, %s7116_s23 }
 0x1b0   : > { %v7930_v57 = vpop.permute.xlu2 %1243  ;;  %v1148_v55 = vpop.permute.xlu1 %1147 }
 0x1b1   : > { %v1162_v59 = vrot.slane %v1148_v55, 4  ;;  %v1146_v53 = vpop.permute.xlu0 %1145  ;;  %v1259_v30 = vrot.slane %v7930_v57, 4 }
 0x1b2   : > { %v1161_v0 = vrot.slane %v1146_v53, 4 }
 0x1b3   : > { %v1181_v60 = vsel %vm283_vm0, %v1162_v59, %v1163_v46 }
 0x1b4   : > { %v1182_v61 = vsel %vm1167_vm11, %v1148_v55, %v1181_v60  ;;  %v1177_v49 = vsel %vm283_vm0, %v1160_v37, %v1161_v0  ;;  %v1179_v11 = vsel %vm283_vm0, %v1161_v0, %v1162_v59 }
 0x1b5   : > { %1205 = vst [vmem:[#allocation2 + $0x380] sm:$0xff] %v1182_v61  ;;  %v1178_v12 = vsel %vm1167_vm11, %v7870_v63, %v1177_v49  ;;  %v1180_v2 = vsel %vm1167_vm11, %v1146_v53, %v1179_v11 }
 0x1b6   : > { %1203 = vst [vmem:[#allocation2 + $0x370] sm:$0xff] %v1178_v12  ;;  %1543 = vrot.lane.b32.xlu2 %v7626_v17, %s7116_s23  ;;  %1541 = vrot.lane.b32.xlu1 %v7680_v47, %s7116_s23  ;;  %v1513_v17 = vld [vmem:[%s7244_s28 + $0x58] sm:$0xf] }
 0x1b7   : > { %1204 = vst [vmem:[#allocation2 + $0x378] sm:$0xff] %v1180_v2  ;;  %1539 = vrot.lane.b32.xlu0 %v7683_v8, %s7116_s23  ;;  %v1256_v8 = vrot.slane %v7914_v43, 4 }
 0x1b8   : > { %v7945_v9 = vpop.permute.xlu2 %1249  ;;  %v1154_v13 = vpop.permute.xlu1 %1153 }
 0x1b9   : > { %v1165_v15 = vrot.slane %v1154_v13, 4  ;;  %1208 = vst.msk [vmem:[#allocation2 + $0x398] sm:$0xf] %vm204_vm2, %v1154_v13  ;;  %v1152_v63 = vpop.permute.xlu0 %1151  ;;  %v1262_v37 = vrot.slane %v7945_v9, 4 }
 0x1ba   : > { %v1164_v6 = vrot.slane %v1152_v63, 4 }
 0x1bc   : > { %v1183_v18 = vsel %vm283_vm0, %v1163_v46, %v1164_v6  ;;  %v1185_v51 = vsel %vm283_vm0, %v1164_v6, %v1165_v15 }
 0x1bd   : > { %v1184_v47 = vsel %vm1167_vm11, %v7885_v22, %v1183_v18  ;;  %v1186_v19 = vsel %vm1167_vm11, %v1152_v63, %v1185_v51  ;;  %vm2052_vm11 = vcmask 973824  }
 0x1be   : > { %1206 = vst [vmem:[#allocation2 + $0x388] sm:$0xff] %v1184_v47  ;;  %1625 = vrot.lane.b32.xlu2 %v7729_v21, %s7117_s25  ;;  %1623 = vrot.lane.b32.xlu1 %v7705_v58, %s7117_s25 }
 0x1bf   : > { %1207 = vst [vmem:[#allocation2 + $0x390] sm:$0xff] %v1186_v19  ;;  %1545 = vrot.lane.b32.xlu0 %v1513_v17, %s7116_s23 }
 0x1c0   : > { %v7961_v62 = vpop.permute.xlu2 %1331  ;;  %v1236_v22 = vpop.permute.xlu1 %1235 }
 0x1c1   : > { %v1255_v24 = vrot.slane %v1236_v22, 4  ;;  %v1234_v25 = vpop.permute.xlu0 %1233  ;;  %v1352_v54 = vrot.slane %v7961_v62, 4 }
 0x1c2   : > { %v1254_v16 = vrot.slane %v1234_v25, 4 }
 0x1c3   : > { %v1269_v27 = vsel %vm283_vm0, %v1255_v24, %v1256_v8 }
 0x1c4   : > { %v1270_v28 = vsel %vm1265_vm12, %v1236_v22, %v1269_v27  ;;  %v1264_v31 = vsel %vm283_vm0, %v1253_v14, %v1254_v16  ;;  %v1267_v26 = vsel %vm283_vm0, %v1254_v16, %v1255_v24 }
 0x1c5   : > { %1298 = vst [vmem:[#allocation2 + $0x3ac] sm:$0xff] %v1270_v28  ;;  %v1266_v23 = vsel %vm1265_vm12, %v7901_v4, %v1264_v31  ;;  %v1268_v36 = vsel %vm1265_vm12, %v1234_v25, %v1267_v26 }
 0x1c6   : > { %1296 = vst [vmem:[#allocation2 + $0x39c] sm:$0xff] %v1266_v23  ;;  %1631 = vrot.lane.b32.xlu2 %v7749_v34, %s7117_s25  ;;  %1629 = vrot.lane.b32.xlu1 %v7664_v1, %s7117_s25  ;;  %v7984_v34 = vld [vmem:[%s7244_s28 + $0x14] sm:$0xff] }
 0x1c7   : > { %1297 = vst [vmem:[#allocation2 + $0x3a4] sm:$0xff] %v1268_v36  ;;  %1627 = vrot.lane.b32.xlu0 %v7724_v7, %s7117_s25 }
 0x1c8   : > { %v7977_v29 = vpop.permute.xlu2 %1337  ;;  %v1242_v38 = vpop.permute.xlu1 %1241 }
 0x1c9   : > { %v1258_v10 = vrot.slane %v1242_v38, 4  ;;  %v1240_v4 = vpop.permute.xlu0 %1239  ;;  %v1355_v11 = vrot.slane %v7977_v29, 4 }
 0x1ca   : > { %v1257_v32 = vrot.slane %v1240_v4, 4 }
 0x1cb   : > { %v1275_v5 = vsel %vm283_vm0, %v1258_v10, %v1259_v30 }
 0x1cc   : > { %v1276_v1 = vsel %vm1265_vm12, %v1242_v38, %v1275_v5  ;;  %v1271_v41 = vsel %vm283_vm0, %v1256_v8, %v1257_v32  ;;  %v1273_v39 = vsel %vm283_vm0, %v1257_v32, %v1258_v10 }
 0x1cd   : > { %1301 = vst [vmem:[#allocation2 + $0x3c4] sm:$0xff] %v1276_v1  ;;  %v1272_v7 = vsel %vm1265_vm12, %v7914_v43, %v1271_v41  ;;  %v1274_v33 = vsel %vm1265_vm12, %v1240_v4, %v1273_v39 }
 0x1ce   : > { %1299 = vst [vmem:[#allocation2 + $0x3b4] sm:$0xff] %v1272_v7  ;;  %2706 = vrot.lane.b32.xlu2 %v7981_v40, %s7118_s27  ;;  %2704 = vrot.lane.b32.xlu1 %v7984_v34, %s7118_s27 }
 0x1cf   : > { %1300 = vst [vmem:[#allocation2 + $0x3bc] sm:$0xff] %v1274_v33  ;;  %1633 = vrot.lane.b32.xlu0 %v7743_v20, %s7117_s25 }
 0x1d0   : > { %v7999_v44 = vpop.permute.xlu2 %1343  ;;  %v1248_v3 = vpop.permute.xlu1 %1247 }
 0x1d1   : > { %v1261_v43 = vrot.slane %v1248_v3, 4  ;;  %v1246_v35 = vpop.permute.xlu0 %1245  ;;  %v1358_v19 = vrot.slane %v7999_v44, 4 }
 0x1d2   : > { %v1260_v42 = vrot.slane %v1246_v35, 4 }
 0x1d3   : > { %v1281_v48 = vsel %vm283_vm0, %v1261_v43, %v1262_v37 }
 0x1d4   : > { %v1282_v50 = vsel %vm1265_vm12, %v1248_v3, %v1281_v48  ;;  %v1277_v45 = vsel %vm283_vm0, %v1259_v30, %v1260_v42  ;;  %v1279_v56 = vsel %vm283_vm0, %v1260_v42, %v1261_v43  ;;  %v8084_v42 = vld [vmem:[%s7244_s28 + $0x24] sm:$0xff] }
 0x1d5   : > { %1304 = vst [vmem:[#allocation2 + $0x3dc] sm:$0xff] %v1282_v50  ;;  %v1278_v52 = vsel %vm1265_vm12, %v7930_v57, %v1277_v45  ;;  %v1280_v20 = vsel %vm1265_vm12, %v1246_v35, %v1279_v56 }
 0x1d6   : > { %1302 = vst [vmem:[#allocation2 + $0x3cc] sm:$0xff] %v1278_v52  ;;  %2606 = vrot.lane.b32.xlu2 %v7984_v34, %s7119_s20  ;;  %2510 = vrot.lane.b32.xlu1 %v7981_v40, %s7120_s16 }
 0x1d7   : > { %1303 = vst [vmem:[#allocation2 + $0x3d4] sm:$0xff] %v1280_v20  ;;  %2508 = vrot.lane.b32.xlu0 %v7984_v34, %s7120_s16 }
 0x1d8   : > { %v8015_v46 = vpop.permute.xlu2 %1349  ;;  %v1330_v57 = vpop.permute.xlu1 %1329 }
 0x1d9   : > { %1404 = vst.msk [vmem:[#allocation2 + $0x440] sm:$0xf] %vm204_vm2, %v8015_v46  ;;  %v1351_v55 = vrot.slane %v1330_v57, 4  ;;  %v1252_v59 = vpop.permute.xlu0 %1251  ;;  %v1361_v23 = vrot.slane %v8015_v46, 4 }
 0x1da   : > { %v1263_v53 = vrot.slane %v1252_v59, 4  ;;  %1306 = vst.msk [vmem:[#allocation2 + $0x3ec] sm:$0xf] %vm204_vm2, %v1252_v59 }
 0x1db   : > { %v1362_v0 = vsel %vm283_vm0, %v1351_v55, %v1352_v54 }
 0x1dc   : > { %v1364_v60 = vsel %vm1363_vm13, %v1330_v57, %v1362_v0  ;;  %v1283_v61 = vsel %vm283_vm0, %v1262_v37, %v1263_v53  ;;  %v6951_v0 = vld [vmem:[#allocation2 + $0x8] sm:$0xff] }
 0x1dd   : > { %1394 = vst [vmem:[#allocation2 + $0x3f0] sm:$0xff] %v1364_v60  ;;  %v1284_v49 = vsel %vm1265_vm12, %v7945_v9, %v1283_v61  ;;  %vm1855_vm12 = vcmask 179200  }
 0x1de   : > { %1305 = vst [vmem:[#allocation2 + $0x3e4] sm:$0xff] %v1284_v49  ;;  %2314 = vrot.lane.b32.xlu2 %v7981_v40, %s7121_s29  ;;  %2312 = vrot.lane.b32.xlu1 %v7984_v34, %s7121_s29 }
 0x1df   : > { %2608 = vrot.lane.b32.xlu0 %v7981_v40, %s7119_s20 }
 0x1e0   : > { %v8032_v12 = vpop.permute.xlu2 %1431  ;;  %v1336_v2 = vpop.permute.xlu1 %1335 }
 0x1e1   : > { %v1354_v13 = vrot.slane %v1336_v2, 4  ;;  %v1334_v15 = vpop.permute.xlu0 %1333  ;;  %v1451_v7 = vrot.slane %v8032_v12, 4 }
 0x1e2   : > { %v1353_v63 = vrot.slane %v1334_v15, 4 }
 0x1e3   : > { %v1369_v9 = vsel %vm283_vm0, %v1354_v13, %v1355_v11 }
 0x1e4   : > { %v1370_v6 = vsel %vm1363_vm13, %v1336_v2, %v1369_v9  ;;  %v1365_v18 = vsel %vm283_vm0, %v1352_v54, %v1353_v63  ;;  %v1367_v51 = vsel %vm283_vm0, %v1353_v63, %v1354_v13 }
 0x1e5   : > { %1397 = vst [vmem:[#allocation2 + $0x408] sm:$0xff] %v1370_v6  ;;  %v1366_v17 = vsel %vm1363_vm13, %v7961_v62, %v1365_v18  ;;  %v1368_v47 = vsel %vm1363_vm13, %v1334_v15, %v1367_v51 }
 0x1e6   : > { %1395 = vst [vmem:[#allocation2 + $0x3f8] sm:$0xff] %v1366_v17  ;;  %2116 = vrot.lane.b32.xlu2 %v7984_v34, %s7122_s30  ;;  %2412 = vrot.lane.b32.xlu1 %v7981_v40, %s7123_s6 }
 0x1e7   : > { %1396 = vst [vmem:[#allocation2 + $0x400] sm:$0xff] %v1368_v47  ;;  %2410 = vrot.lane.b32.xlu0 %v7984_v34, %s7123_s6 }
 0x1e8   : > { %v8048_v8 = vpop.permute.xlu2 %1437  ;;  %v1342_v14 = vpop.permute.xlu1 %1341 }
 0x1e9   : > { %v1357_v62 = vrot.slane %v1342_v14, 4  ;;  %v1340_v22 = vpop.permute.xlu0 %1339 }
 0x1ea   : > { %v1356_v24 = vrot.slane %v1340_v22, 4 }
 0x1eb   : > { %v1375_v25 = vsel %vm283_vm0, %v1357_v62, %v1358_v19 }
 0x1ec   : > { %v1376_v16 = vsel %vm1363_vm13, %v1342_v14, %v1375_v25  ;;  %v1371_v27 = vsel %vm283_vm0, %v1355_v11, %v1356_v24  ;;  %v1373_v28 = vsel %vm283_vm0, %v1356_v24, %v1357_v62 }
 0x1ed   : > { %1400 = vst [vmem:[#allocation2 + $0x420] sm:$0xff] %v1376_v16  ;;  %v1372_v31 = vsel %vm1363_vm13, %v7977_v29, %v1371_v27  ;;  %v1374_v26 = vsel %vm1363_vm13, %v1340_v22, %v1373_v28 }
 0x1ee   : > { %1398 = vst [vmem:[#allocation2 + $0x410] sm:$0xff] %v1372_v31  ;;  %2216 = vrot.lane.b32.xlu2 %v7981_v40, %s7124_s7  ;;  %2214 = vrot.lane.b32.xlu1 %v7984_v34, %s7124_s7 }
 0x1ef   : > { %1399 = vst [vmem:[#allocation2 + $0x418] sm:$0xff] %v1374_v26  ;;  %2118 = vrot.lane.b32.xlu0 %v7981_v40, %s7122_s30 }
 0x1f0   : > { %v8064_v36 = vpop.permute.xlu2 %1443  ;;  %v1348_v30 = vpop.permute.xlu1 %1347 }
 0x1f1   : > { %v1360_v29 = vrot.slane %v1348_v30, 4  ;;  %v1346_v38 = vpop.permute.xlu0 %1345  ;;  %v1457_v60 = vrot.slane %v8064_v36, 4 }
 0x1f2   : > { %v1359_v10 = vrot.slane %v1346_v38, 4 }
 0x1f3   : > { %v1381_v4 = vsel %vm283_vm0, %v1360_v29, %v1361_v23 }
 0x1f4   : > { %v1382_v32 = vsel %vm1363_vm13, %v1348_v30, %v1381_v4  ;;  %v1377_v5 = vsel %vm283_vm0, %v1358_v19, %v1359_v10  ;;  %v1379_v1 = vsel %vm283_vm0, %v1359_v10, %v1360_v29 }
 0x1f5   : > { %1403 = vst [vmem:[#allocation2 + $0x438] sm:$0xff] %v1382_v32  ;;  %v1378_v41 = vsel %vm1363_vm13, %v7999_v44, %v1377_v5  ;;  %v1380_v39 = vsel %vm1363_vm13, %v1346_v38, %v1379_v1  ;;  %vm1756_vm13 = vcmask 187392  }
 0x1f6   : > { %1401 = vst [vmem:[#allocation2 + $0x428] sm:$0xff] %v1378_v41  ;;  %2018 = vrot.lane.b32.xlu2 %v7984_v34, %s7125_s8  ;;  %1922 = vrot.lane.b32.xlu1 %v7981_v40, %s7126_s17 }
 0x1f7   : > { %1402 = vst [vmem:[#allocation2 + $0x430] sm:$0xff] %v1380_v39  ;;  %1920 = vrot.lane.b32.xlu0 %v7984_v34, %s7126_s17  ;;  %v1454_v34 = vrot.slane %v8048_v8, 4 }
 0x1f8   : > { %v8080_v33 = vpop.permute.xlu2 %1525  ;;  %v1430_v37 = vpop.permute.xlu1 %1429 }
 0x1f9   : > { %v1450_v44 = vrot.slane %v1430_v37, 4  ;;  %v1428_v3 = vpop.permute.xlu0 %1427  ;;  %v1547_v25 = vrot.slane %v8080_v33, 4 }
 0x1fa   : > { %v1449_v43 = vrot.slane %v1428_v3, 4 }
 0x1fb   : > { %v1463_v35 = vsel %vm283_vm0, %v1450_v44, %v1451_v7 }
 0x1fc   : > { %v1464_v48 = vsel %vm1461_vm14, %v1430_v37, %v1463_v35  ;;  %v1460_v50 = vsel %vm283_vm0, %v1449_v43, %v1450_v44  ;;  %v8162_v37 = vld [vmem:[%s7244_s28 + $0x2c] sm:$0xff] }
 0x1fd   : > { %1493 = vst [vmem:[#allocation2 + $0x44c] sm:$0xff] %v1464_v48  ;;  %v1462_v45 = vsel %vm1461_vm14, %v1428_v3, %v1460_v50 }
 0x1fe   : > { %1492 = vst [vmem:[#allocation2 + $0x444] sm:$0xff] %v1462_v45  ;;  %1722 = vrot.lane.b32.xlu2 %v7705_v58, %s7127_s15  ;;  %2708 = vrot.lane.b32.xlu1 %v8084_v42, %s7118_s27 }
 0x1ff   : > { %2020 = vrot.lane.b32.xlu0 %v7981_v40, %s7125_s8 }
 0x200   : > { %v8096_v56 = vpop.permute.xlu2 %1531  ;;  %v1436_v52 = vpop.permute.xlu1 %1435 }
 0x201   : > { %v1453_v20 = vrot.slane %v1436_v52, 4  ;;  %v1434_v54 = vpop.permute.xlu0 %1433  ;;  %v1550_v24 = vrot.slane %v8096_v56, 4 }
 0x202   : > { %v1452_v46 = vrot.slane %v1434_v54, 4 }
 0x203   : > { %v1469_v57 = vsel %vm283_vm0, %v1453_v20, %v1454_v34 }
 0x204   : > { %v1470_v55 = vsel %vm1461_vm14, %v1436_v52, %v1469_v57  ;;  %v1465_v58 = vsel %vm283_vm0, %v1451_v7, %v1452_v46  ;;  %v1467_v59 = vsel %vm283_vm0, %v1452_v46, %v1453_v20 }
 0x205   : > { %1496 = vst [vmem:[#allocation2 + $0x464] sm:$0xff] %v1470_v55  ;;  %v1466_v53 = vsel %vm1461_vm14, %v8032_v12, %v1465_v58  ;;  %v1468_v40 = vsel %vm1461_vm14, %v1434_v54, %v1467_v59 }
 0x206   : > { %1494 = vst [vmem:[#allocation2 + $0x454] sm:$0xff] %v1466_v53  ;;  %1823 = vrot.lane.b32.xlu2 %v7729_v21, %s7128_s18  ;;  %1821 = vrot.lane.b32.xlu1 %v6951_v0, %s7128_s18 }
 0x207   : > { %1495 = vst [vmem:[#allocation2 + $0x45c] sm:$0xff] %v1468_v40  ;;  %1724 = vrot.lane.b32.xlu0 %v7729_v21, %s7127_s15 }
 0x208   : > { %v8111_v61 = vpop.permute.xlu2 %1537  ;;  %v1442_v49 = vpop.permute.xlu1 %1441 }
 0x209   : > { %v1456_v11 = vrot.slane %v1442_v49, 4  ;;  %v1440_v12 = vpop.permute.xlu0 %1439  ;;  %v1553_v32 = vrot.slane %v8111_v61, 4 }
 0x20a   : > { %v1455_v2 = vrot.slane %v1440_v12, 4 }
 0x20b   : > { %v1475_v13 = vsel %vm283_vm0, %v1456_v11, %v1457_v60 }
 0x20c   : > { %v1476_v15 = vsel %vm1461_vm14, %v1442_v49, %v1475_v13  ;;  %v1471_v63 = vsel %vm283_vm0, %v1454_v34, %v1455_v2  ;;  %v1473_v9 = vsel %vm283_vm0, %v1455_v2, %v1456_v11  ;;  %v8199_v13 = vld [vmem:[%s7244_s28 + $0x34] sm:$0xff] }
 0x20d   : > { %1499 = vst [vmem:[#allocation2 + $0x47c] sm:$0xff] %v1476_v15  ;;  %v1472_v6 = vsel %vm1461_vm14, %v8048_v8, %v1471_v63  ;;  %v1474_v21 = vsel %vm1461_vm14, %v1440_v12, %v1473_v9 }
 0x20e   : > { %1497 = vst [vmem:[#allocation2 + $0x46c] sm:$0xff] %v1472_v6  ;;  %2316 = vrot.lane.b32.xlu2 %v8084_v42, %s7121_s29  ;;  %2610 = vrot.lane.b32.xlu1 %v8084_v42, %s7119_s20 }
 0x20f   : > { %1498 = vst [vmem:[#allocation2 + $0x474] sm:$0xff] %v1474_v21  ;;  %2512 = vrot.lane.b32.xlu0 %v8084_v42, %s7120_s16 }
 0x210   : > { %v8126_v18 = vpop.permute.xlu2 %1543  ;;  %v1448_v51 = vpop.permute.xlu1 %1447 }
 0x211   : > { %v1459_v17 = vrot.slane %v1448_v51, 4  ;;  %1502 = vst.msk [vmem:[#allocation2 + $0x494] sm:$0xf] %vm204_vm2, %v1448_v51  ;;  %v1446_v47 = vpop.permute.xlu0 %1445  ;;  %v1556_v48 = vrot.slane %v8126_v18, 4 }
 0x212   : > { %v1458_v19 = vrot.slane %v1446_v47, 4 }
 0x214   : > { %v1477_v8 = vsel %vm283_vm0, %v1457_v60, %v1458_v19  ;;  %v1479_v14 = vsel %vm283_vm0, %v1458_v19, %v1459_v17 }
 0x215   : > { %v1478_v62 = vsel %vm1461_vm14, %v8064_v36, %v1477_v8  ;;  %v1480_v22 = vsel %vm1461_vm14, %v1446_v47, %v1479_v14  ;;  %v1702_v36 = vld [vmem:[%s7244_s28 + $0x18] sm:$0xff]  ;;  %vm3463_vm14 = vcmask 785408  }
 0x216   : > { %1500 = vst [vmem:[#allocation2 + $0x484] sm:$0xff] %v1478_v62  ;;  %2218 = vrot.lane.b32.xlu2 %v8084_v42, %s7124_s7  ;;  %2120 = vrot.lane.b32.xlu1 %v8084_v42, %s7122_s30 }
 0x217   : > { %1501 = vst [vmem:[#allocation2 + $0x48c] sm:$0xff] %v1480_v22  ;;  %2414 = vrot.lane.b32.xlu0 %v8084_v42, %s7123_s6 }
 0x218   : > { %v8142_v16 = vpop.permute.xlu2 %1625  ;;  %v1530_v27 = vpop.permute.xlu1 %1529 }
 0x219   : > { %v1549_v28 = vrot.slane %v1530_v27, 4  ;;  %v1528_v31 = vpop.permute.xlu0 %1527  ;;  %v1646_v53 = vrot.slane %v8142_v16, 4 }
 0x21a   : > { %v1548_v26 = vrot.slane %v1528_v31, 4 }
 0x21b   : > { %v1563_v23 = vsel %vm283_vm0, %v1549_v28, %v1550_v24 }
 0x21c   : > { %v1564_v30 = vsel %vm1559_vm15, %v1530_v27, %v1563_v23  ;;  %v1558_v29 = vsel %vm283_vm0, %v1547_v25, %v1548_v26  ;;  %v1561_v38 = vsel %vm283_vm0, %v1548_v26, %v1549_v28  ;;  %v6600_v26 = vld [vmem:[#allocation2 + $0x440] sm:$0xf0] }
 0x21d   : > { %1592 = vst [vmem:[#allocation2 + $0x4a8] sm:$0xff] %v1564_v30  ;;  %v1560_v10 = vsel %vm1559_vm15, %v8080_v33, %v1558_v29  ;;  %v1562_v4 = vsel %vm1559_vm15, %v1528_v31, %v1561_v38  ;;  %v5540_v29 = vld [vmem:[#allocation2 + $0x3f0] sm:$0xf] }
 0x21e   : > { %1590 = vst [vmem:[#allocation2 + $0x498] sm:$0xff] %v1560_v10  ;;  %1726 = vrot.lane.b32.xlu2 %v1702_v36, %s7127_s15  ;;  %2022 = vrot.lane.b32.xlu1 %v8084_v42, %s7125_s8 }
 0x21f   : > { %1591 = vst [vmem:[#allocation2 + $0x4a0] sm:$0xff] %v1562_v4  ;;  %1924 = vrot.lane.b32.xlu0 %v8084_v42, %s7126_s17  ;;  %v5541_v4 = vor.u32 %v6600_v26, %v5540_v29  ;;  %v5382_v29 = vld [vmem:[#allocation2 + $0xfc] sm:$0xf0] }
 0x220   : > { %v8158_v5 = vpop.permute.xlu2 %1631  ;;  %v1536_v1 = vpop.permute.xlu1 %1535 }
 0x221   : > { %v1552_v41 = vrot.slane %v1536_v1, 4  ;;  %v1534_v39 = vpop.permute.xlu0 %1533  ;;  %v1649_v63 = vrot.slane %v8158_v5, 4 }
 0x222   : > { %v1551_v7 = vrot.slane %v1534_v39, 4 }
 0x223   : > { %v1569_v33 = vsel %vm283_vm0, %v1552_v41, %v1553_v32 }
 0x224   : > { %v1570_v44 = vsel %vm1559_vm15, %v1536_v1, %v1569_v33  ;;  %v1565_v3 = vsel %vm283_vm0, %v1550_v24, %v1551_v7  ;;  %v1567_v43 = vsel %vm283_vm0, %v1551_v7, %v1552_v41  ;;  %v5510_v33 = vld [vmem:[#allocation2 + $0x39c] sm:$0xf0] }
 0x225   : > { %1595 = vst [vmem:[#allocation2 + $0x4c0] sm:$0xff] %v1570_v44  ;;  %v1566_v35 = vsel %vm1559_vm15, %v8096_v56, %v1565_v3  ;;  %v1568_v42 = vsel %vm1559_vm15, %v1534_v39, %v1567_v43  ;;  %v7129_v56 = vmov 0   ;;  %v5572_v47 = vld [vmem:[#allocation2 + $0x498] sm:$0xf]  ;;  %v6604_v22 = vld [vmem:[#allocation2 + $0x49c] sm:$0xf] }
 0x226   : > { %1593 = vst [vmem:[#allocation2 + $0x4b0] sm:$0xff] %v1566_v35  ;;  %2514 = vrot.lane.b32.xlu2 %v8162_v37, %s7120_s16  ;;  %2710 = vrot.lane.b32.xlu1 %v8162_v37, %s7118_s27  ;;  %v6592_v39 = vld [vmem:[#allocation2 + $0x398] sm:$0xf0]  ;;  %v5508_v43 = vld [vmem:[#allocation2 + $0x348] sm:$0xf] }
 0x227   : > { %1594 = vst [vmem:[#allocation2 + $0x4b8] sm:$0xff] %v1568_v42  ;;  %1825 = vrot.lane.b32.xlu0 %v1702_v36, %s7128_s18  ;;  %v5509_v42 = vor.u32 %v6592_v39, %v5508_v43  ;;  %v6548_v43 = vld [vmem:[#allocation2 + $0x4] sm:$0xf] }
 0x228   : > { %v8176_v50 = vpop.permute.xlu2 %2706  ;;  %v1542_v45 = vpop.permute.xlu1 %1541  ;;  %194 = vst [vmem:[#allocation2 + $0x8dc] sm:$0xff] %v7129_v56 }
 0x229   : > { %v1555_v34 = vrot.slane %v1542_v45, 4  ;;  %v1540_v52 = vpop.permute.xlu0 %1539  ;;  %195 = vst [vmem:[#allocation2 + $0x8e4] sm:$0xff] %v7129_v56  ;;  %v2727_v23 = vrot.slane %v8176_v50, 4 }
 0x22a   : > { %v1554_v20 = vrot.slane %v1540_v52, 4  ;;  %196 = vst [vmem:[#allocation2 + $0x8ec] sm:$0xff] %v7129_v56 }
 0x22b   : > { %v1575_v54 = vsel %vm283_vm0, %v1555_v34, %v1556_v48  ;;  %197 = vst [vmem:[#allocation2 + $0x8f4] sm:$0xff] %v7129_v56 }
 0x22c   : > { %v1576_v46 = vsel %vm1559_vm15, %v1542_v45, %v1575_v54  ;;  %v1571_v57 = vsel %vm283_vm0, %v1553_v32, %v1554_v20  ;;  %v1573_v55 = vsel %vm283_vm0, %v1554_v20, %v1555_v34  ;;  %198 = vst [vmem:[#allocation2 + $0x8fc] sm:$0xff] %v7129_v56  ;;  %v6596_v32 = vld [vmem:[#allocation2 + $0x3f4] sm:$0xf]  ;;  %v5476_v20 = vld [vmem:[#allocation2 + $0x2a0] sm:$0xf] }
 0x22d   : > { %1598 = vst [vmem:[#allocation2 + $0x4d8] sm:$0xff] %v1576_v46  ;;  %v1572_v58 = vsel %vm1559_vm15, %v8111_v61, %v1571_v57  ;;  %v1574_v59 = vsel %vm1559_vm15, %v1540_v52, %v1573_v55  ;;  %v6584_v34 = vld [vmem:[#allocation2 + $0x2f0] sm:$0xf0]  ;;  %v5478_v52 = vld [vmem:[#allocation2 + $0x2f4] sm:$0xf0] }
 0x22e   : > { %1596 = vst [vmem:[#allocation2 + $0x4c8] sm:$0xff] %v1572_v58  ;;  %2416 = vrot.lane.b32.xlu2 %v8162_v37, %s7123_s6  ;;  %2318 = vrot.lane.b32.xlu1 %v8162_v37, %s7121_s29  ;;  %v5477_v57 = vor.u32 %v6584_v34, %v5476_v20  ;;  %v6580_v55 = vld [vmem:[#allocation2 + $0x2a4] sm:$0xf]  ;;  %v6576_v58 = vld [vmem:[#allocation2 + $0x248] sm:$0xf0] }
 0x22f   : > { %1597 = vst [vmem:[#allocation2 + $0x4d0] sm:$0xff] %v1574_v59  ;;  %2612 = vrot.lane.b32.xlu0 %v8162_v37, %s7119_s20  ;;  %v6605_v20 = vld [vmem:[#allocation2 + $0x4a4] sm:$0xf] }
 0x230   : > { %v8192_v40 = vpop.permute.xlu2 %2606  ;;  %v1624_v0 = vpop.permute.xlu1 %1623  ;;  %199 = vst [vmem:[#allocation2 + $0x904] sm:$0xff] %v7129_v56 }
 0x231   : > { %v1645_v60 = vrot.slane %v1624_v0, 4  ;;  %v1546_v61 = vpop.permute.xlu0 %1545  ;;  %200 = vst [vmem:[#allocation2 + $0x90c] sm:$0xff] %v7129_v56 }
 0x232   : > { %v1557_v49 = vrot.slane %v1546_v61, 4  ;;  %1600 = vst.msk [vmem:[#allocation2 + $0x4e8] sm:$0xf] %vm204_vm2, %v1546_v61  ;;  %v5446_v61 = vld [vmem:[#allocation2 + $0x24c] sm:$0xf0] }
 0x233   : > { %v1656_v11 = vsel %vm283_vm0, %v1645_v60, %v1646_v53  ;;  %201 = vst [vmem:[#allocation2 + $0x914] sm:$0xff] %v7129_v56  ;;  %v1802_v60 = vld [vmem:[%s7244_s28 + $0x20] sm:$0xff] }
 0x234   : > { %v1658_v12 = vsel %vm1657_vm1, %v1624_v0, %v1656_v11  ;;  %v1577_v2 = vsel %vm283_vm0, %v1556_v48, %v1557_v49  ;;  %202 = vst [vmem:[#allocation2 + $0x91c] sm:$0xff] %v7129_v56  ;;  %v6588_v48 = vld [vmem:[#allocation2 + $0x34c] sm:$0xf]  ;;  %v6656_v0 = vld [vmem:[#allocation2 + $0x8d8] sm:$0xf0] }
 0x235   : > { %1689 = vst [vmem:[#allocation2 + $0x4ec] sm:$0xff] %v1658_v12  ;;  %v1578_v15 = vsel %vm1559_vm15, %v8126_v18, %v1577_v2  ;;  %v5513_v45 = vor.u32 %v6588_v48, %v5510_v33  ;;  %v5444_v11 = vld [vmem:[#allocation2 + $0x1f8] sm:$0xf] }
 0x236   : > { %1599 = vst [vmem:[#allocation2 + $0x4e0] sm:$0xff] %v1578_v15  ;;  %2220 = vrot.lane.b32.xlu2 %v8162_v37, %s7124_s7  ;;  %2122 = vrot.lane.b32.xlu1 %v8162_v37, %s7122_s30 }
 0x237   : > { %2712 = vrot.lane.b32.xlu0 %v8199_v13, %s7118_s27  ;;  %203 = vst [vmem:[#allocation2 + $0x924] sm:$0xff] %v7129_v56 }
 0x238   : > { %v8210_v9 = vpop.permute.xlu2 %2314  ;;  %v1630_v6 = vpop.permute.xlu1 %1629  ;;  %205 = vst.msk [vmem:[#allocation2 + $0x92c] sm:$0xf] %vm204_vm2, %v7129_v56 }
 0x239   : > { %v1648_v21 = vrot.slane %v1630_v6, 4  ;;  %v1628_v51 = vpop.permute.xlu0 %1627 }
 0x23a   : > { %v1647_v18 = vrot.slane %v1628_v51, 4 }
 0x23b   : > { %v1663_v17 = vsel %vm283_vm0, %v1648_v21, %v1649_v63 }
 0x23c   : > { %v1664_v19 = vsel %vm1657_vm1, %v1630_v6, %v1663_v17  ;;  %v1659_v8 = vsel %vm283_vm0, %v1646_v53, %v1647_v18  ;;  %v1661_v14 = vsel %vm283_vm0, %v1647_v18, %v1648_v21  ;;  %v6608_v62 = vld [vmem:[#allocation2 + $0x4e8] sm:$0xf0]  ;;  %v5574_v24 = vld [vmem:[#allocation2 + $0x4ec] sm:$0xf0]  ;;  %v5481_v53 = vor.u32 %v6580_v55, %v5478_v52  ;;  %v6572_v6 = vld [vmem:[#allocation2 + $0x1fc] sm:$0xf] }
 0x23d   : > { %1692 = vst [vmem:[#allocation2 + $0x504] sm:$0xff] %v1664_v19  ;;  %v1660_v25 = vsel %vm1657_vm1, %v8142_v16, %v1659_v8  ;;  %v1662_v27 = vsel %vm1657_vm1, %v1628_v51, %v1661_v14  ;;  %v5573_v28 = vor.u32 %v6608_v62, %v5572_v47  ;;  %v5577_v31 = vor.u32 %v6604_v22, %v5574_v24  ;;  %v5542_v16 = vld [vmem:[#allocation2 + $0x444] sm:$0xf0]  ;;  %v6568_v17 = vld [vmem:[#allocation2 + $0x1a0] sm:$0xf0]  ;;  %v8289_v55 = vld [vmem:[%s7244_s28 + $0x3c] sm:$0xff] }
 0x23e   : > { %1690 = vst [vmem:[#allocation2 + $0x4f4] sm:$0xff] %v1660_v25  ;;  %1926 = vrot.lane.b32.xlu2 %v8162_v37, %s7126_s17  ;;  %2614 = vrot.lane.b32.xlu1 %v8199_v13, %s7119_s20  ;;  %v5545_v41 = vor.u32 %v6596_v32, %v5542_v16  ;;  %v5449_v18 = vor.u32 %v6572_v6, %v5446_v61  ;;  %v2335_v47 = vrot.slane %v8210_v9, 4  ;;  %v5414_v19 = vld [vmem:[#allocation2 + $0x1a4] sm:$0xf0]  ;;  %v2628_v8 = vrot.slane %v8192_v40, 4 }
 0x23f   : > { %1691 = vst [vmem:[#allocation2 + $0x4fc] sm:$0xff] %v1662_v27  ;;  %2516 = vrot.lane.b32.xlu0 %v8199_v13, %s7120_s16  ;;  %3467 = vmatpush.bf16.msra.mxu0 %v5573_v28  ;;  %v5412_v22 = vld [vmem:[#allocation2 + $0x150] sm:$0xf]  ;;  %v6564_v28 = vld [vmem:[#allocation2 + $0x154] sm:$0xf] }
 0x240   : > { %3495 = vmatpush.bf16.msra.mxu2 %v5577_v31  ;;  %v8227_v36 = vpop.permute.xlu2 %2116  ;;  %v2705_v30 = vpop.permute.xlu1 %2704  ;;  %v5413_v27 = vor.u32 %v6568_v17, %v5412_v22  ;;  %v5417_v26 = vor.u32 %v6564_v28, %v5414_v19  ;;  %v6560_v16 = vld [vmem:[#allocation2 + $0xf8] sm:$0xf0]  ;;  %v5380_v32 = vld [vmem:[#allocation2 + $0xa8] sm:$0xf] }
 0x241   : > { %v2726_v38 = vrot.slane %v2705_v30, 4  ;;  %v8229_v10 = vpop.permute.xlu0 %1633  ;;  %v5381_v39 = vor.u32 %v6560_v16, %v5380_v32  ;;  %v2138_v6 = vrot.slane %v8227_v36, 4 }
 0x242   : > { %v1650_v1 = vrot.slane %v8229_v10, 4 }
 0x243   : > { %v2737_v7 = vsel %vm283_vm0, %v2726_v38, %v2727_v23  ;;  %3468 = vmatpush.bf16.msra.mxu0 %v5541_v4 }
 0x244   : > { %v2739_v44 = vsel %vm2738_vm3, %v2705_v30, %v2737_v7  ;;  %v1665_v3 = vsel %vm283_vm0, %v1649_v63, %v1650_v1  ;;  %3496 = vmatpush.bf16.msra.mxu2 %v5545_v41  ;;  %v5445_v63 = vor.u32 %v6576_v58, %v5444_v11  ;;  %v6556_v7 = vld [vmem:[#allocation2 + $0xac] sm:$0xf]  ;;  %v1803_v58 = vld [vmem:[%s7244_s28 + $0x28] sm:$0xff] }
 0x245   : > { %2769 = vst [vmem:[#allocation2 + $0x888] sm:$0xff] %v2739_v44  ;;  %v1666_v35 = vsel %vm1657_vm1, %v8158_v5, %v1665_v3  ;;  %v5385_v33 = vor.u32 %v6556_v7, %v5382_v29  ;;  %v5348_v44 = vld [vmem:[#allocation2] sm:$0xf]  ;;  %v6552_v3 = vld [vmem:[#allocation2 + $0x50] sm:$0xf0] }
 0x246   : > { %1693 = vst [vmem:[#allocation2 + $0x50c] sm:$0xff] %v1666_v35  ;;  %2418 = vrot.lane.b32.xlu2 %v8199_v13, %s7123_s6  ;;  %2320 = vrot.lane.b32.xlu1 %v8199_v13, %s7121_s29  ;;  %v5582_v35 = vld [vmem:[#allocation2 + $0x4f4] sm:$0xf0]  ;;  %v5349_v52 = vor.u32 %v6552_v3, %v5348_v44  ;;  %v5486_v29 = vld [vmem:[#allocation2 + $0x2fc] sm:$0xf0] }
 0x247   : > { %2024 = vrot.lane.b32.xlu0 %v8162_v37, %s7125_s8  ;;  %3469 = vmatpush.bf16.msra.mxu0 %v5509_v42  ;;  %v5766_v37 = vld [vmem:[#allocation2 + $0x8dc] sm:$0xf0]  ;;  %v6581_v7 = vld [vmem:[#allocation2 + $0x2ac] sm:$0xf]  ;;  %v5454_v3 = vld [vmem:[#allocation2 + $0x254] sm:$0xf0] }
 0x248   : > { %3497 = vmatpush.bf16.msra.mxu2 %v5513_v45  ;;  %v8247_v56 = vpop.permute.xlu2 %2216  ;;  %v8249_v5 = vpop.permute.xlu1 %2510 }
 0x249   : > { %v2531_v54 = vrot.slane %v8249_v5, 4  ;;  %v2509_v46 = vpop.permute.xlu0 %2508 }
 0x24a   : > { %v2530_v59 = vrot.slane %v2509_v46, 4 }
 0x24b   : > { %3470 = vmatpush.bf16.msra.mxu0 %v5477_v57 }
 0x24c   : > { %v2541_v49 = vsel %vm283_vm0, %v2530_v59, %v2531_v54  ;;  %3498 = vmatpush.bf16.msra.mxu2 %v5481_v53  ;;  %v5764_v12 = vld [vmem:[#allocation2 + $0x888] sm:$0xf]  ;;  %v6652_v2 = vld [vmem:[#allocation2 + $0x88c] sm:$0xf] }
 0x24d   : > { %v2543_v15 = vsel %vm2542_vm4, %v2509_v46, %v2541_v49  ;;  %v5765_v21 = vor.u32 %v6656_v0, %v5764_v12  ;;  %v5769_v51 = vor.u32 %v6652_v2, %v5766_v37  ;;  %v5550_v0 = vld [vmem:[#allocation2 + $0x44c] sm:$0xf0]  ;;  %v6597_v2 = vld [vmem:[#allocation2 + $0x3fc] sm:$0xf] }
 0x24e   : > { %2573 = vst [vmem:[#allocation2 + $0x7e0] sm:$0xff] %v2543_v15  ;;  %2124 = vrot.lane.b32.xlu2 %v8199_v13, %s7122_s30  ;;  %1827 = vrot.lane.b32.xlu1 %v1802_v60, %s7128_s18  ;;  %v2237_v15 = vrot.slane %v8247_v56, 4 }
 0x24f   : > { %1728 = vrot.lane.b32.xlu0 %v1802_v60, %s7127_s15  ;;  %3471 = vmatpush.bf16.msra.mxu0 %v5445_v63  ;;  %v5553_v63 = vor.u32 %v6597_v2, %v5550_v0  ;;  %v5422_v0 = vld [vmem:[#allocation2 + $0x1ac] sm:$0xf0] }
 0x250   : > { %3499 = vmatpush.bf16.msra.mxu2 %v5449_v18  ;;  %v8263_v14 = vpop.permute.xlu2 %2018  ;;  %v2313_v62 = vpop.permute.xlu1 %2312  ;;  %3483 = vmatpush.bf16.msra.mxu1 %v5765_v21  ;;  %v5518_v18 = vld [vmem:[#allocation2 + $0x3a4] sm:$0xf0] }
 0x251   : > { %v2334_v24 = vrot.slane %v2313_v62, 4  ;;  %v8265_v25 = vpop.permute.xlu0 %2608  ;;  %3511 = vmatpush.bf16.msra.mxu3 %v5769_v51 }
 0x252   : > { %v2629_v31 = vrot.slane %v8265_v25, 4 }
 0x253   : > { %v2345_v30 = vsel %vm283_vm0, %v2334_v24, %v2335_v47  ;;  %3472 = vmatpush.bf16.msra.mxu0 %v5413_v27  ;;  %v8311_v27 = vld [vmem:[%s7244_s28 + $0x38] sm:$0xff] }
 0x254   : > { %v2347_v38 = vsel %vm2346_vm5, %v2313_v62, %v2345_v30  ;;  %v2639_v4 = vsel %vm283_vm0, %v2628_v8, %v2629_v31  ;;  %3500 = vmatpush.bf16.msra.mxu2 %v5417_v26  ;;  %v6589_v62 = vld [vmem:[#allocation2 + $0x354] sm:$0xf] }
 0x255   : > { %2377 = vst [vmem:[#allocation2 + $0x738] sm:$0xff] %v2347_v38  ;;  %v2641_v41 = vsel %vm2640_vm6, %v8192_v40, %v2639_v4  ;;  %v5350_v40 = vld [vmem:[#allocation2 + $0x54] sm:$0xf0]  ;;  %v5732_v53 = vld [vmem:[#allocation2 + $0x7e0] sm:$0xf]  ;;  %v5521_v24 = vor.u32 %v6589_v62, %v5518_v18 }
 0x256   : > { %2671 = vst [vmem:[#allocation2 + $0x834] sm:$0xff] %v2641_v41  ;;  %2026 = vrot.lane.b32.xlu2 %v8199_v13, %s7125_s8  ;;  %1928 = vrot.lane.b32.xlu1 %v8199_v13, %s7126_s17  ;;  %v5353_v57 = vor.u32 %v6548_v43, %v5350_v40  ;;  %v6644_v61 = vld [vmem:[#allocation2 + $0x7e4] sm:$0xf] }
 0x257   : > { %2222 = vrot.lane.b32.xlu0 %v8199_v13, %s7124_s7  ;;  %3473 = vmatpush.bf16.msra.mxu0 %v5381_v39  ;;  %v5585_v13 = vor.u32 %v6605_v20, %v5582_v35 }
 0x258   : > { %3501 = vmatpush.bf16.msra.mxu2 %v5385_v33  ;;  %v8283_v42 = vpop.permute.xlu2 %1722  ;;  %v8285_v48 = vpop.permute.xlu1 %2412  ;;  %v5489_v33 = vor.u32 %v6581_v7, %v5486_v29 }
 0x259   : > { %v2433_v45 = vrot.slane %v8285_v48, 4  ;;  %v2411_v34 = vpop.permute.xlu0 %2410 }
 0x25a   : > { %v2432_v46 = vrot.slane %v2411_v34, 4 }
 0x25b   : > { %3474 = vmatpush.bf16.msra.mxu0 %v5349_v52  ;;  %v6573_v52 = vld [vmem:[#allocation2 + $0x204] sm:$0xf] }
 0x25c   : > { %v2443_v59 = vsel %vm283_vm0, %v2432_v46, %v2433_v45  ;;  %3502 = vmatpush.bf16.msra.mxu2 %v5353_v57  ;;  %v5700_v16 = vld [vmem:[#allocation2 + $0x738] sm:$0xf]  ;;  %v6636_v30 = vld [vmem:[#allocation2 + $0x73c] sm:$0xf]  ;;  %v5457_v46 = vor.u32 %v6573_v52, %v5454_v3 }
 0x25d   : > { %v2445_v37 = vsel %vm2444_vm7, %v2411_v34, %v2443_v59  ;;  %v6648_v60 = vld [vmem:[#allocation2 + $0x830] sm:$0xf0]  ;;  %v5734_v49 = vld [vmem:[#allocation2 + $0x834] sm:$0xf0] }
 0x25e   : > { %2475 = vst [vmem:[#allocation2 + $0x78c] sm:$0xff] %v2445_v37  ;;  %2714 = vrot.lane.b32.xlu2 %v8289_v55, %s7118_s27  ;;  %1829 = vrot.lane.b32.xlu1 %v1803_v58, %s7128_s18  ;;  %v5733_v11 = vor.u32 %v6648_v60, %v5732_v53  ;;  %v5737_v12 = vor.u32 %v6644_v61, %v5734_v49  ;;  %v8337_v57 = vld [vmem:[%s7244_s28 + $0x44] sm:$0xff] }
 0x25f   : > { %3551 = vmatpush.bf16.msrb.mxu0 %v5585_v13  ;;  %1730 = vrot.lane.b32.xlu0 %v1803_v58, %s7127_s15  ;;  %v6565_v49 = vld [vmem:[#allocation2 + $0x15c] sm:$0xf] }
 0x260   : > { %3484 = vmatpush.bf16.msra.mxu1 %v5733_v11  ;;  %3512 = vmatpush.bf16.msra.mxu3 %v5737_v12  ;;  %v8302_v21 = vpop.permute.xlu2 %1823  ;;  %v2215_v51 = vpop.permute.xlu1 %2214  ;;  %v5425_v11 = vor.u32 %v6565_v49, %v5422_v0  ;;  %v2040_v12 = vrot.slane %v8263_v14, 4 }
 0x261   : > { %v2236_v17 = vrot.slane %v2215_v51, 4  ;;  %v8304_v19 = vpop.permute.xlu0 %2118 }
 0x262   : > { %v2139_v8 = vrot.slane %v8304_v19, 4 }
 0x263   : > { %3552 = vmatpush.bf16.msrb.mxu0 %v5553_v63  ;;  %v2247_v22 = vsel %vm283_vm0, %v2236_v17, %v2237_v15 }
 0x264   : > { %v2249_v28 = vsel %vm2248_vm8, %v2215_v51, %v2247_v22  ;;  %v2149_v26 = vsel %vm283_vm0, %v2138_v6, %v2139_v8  ;;  %v5390_v6 = vld [vmem:[#allocation2 + $0x104] sm:$0xf0]  ;;  %v6557_v22 = vld [vmem:[#allocation2 + $0xb4] sm:$0xf] }
 0x265   : > { %2279 = vst [vmem:[#allocation2 + $0x6e4] sm:$0xff] %v2249_v28  ;;  %v2151_v38 = vsel %vm2150_vm9, %v8227_v36, %v2149_v26  ;;  %v6640_v4 = vld [vmem:[#allocation2 + $0x788] sm:$0xf0]  ;;  %v5702_v32 = vld [vmem:[#allocation2 + $0x78c] sm:$0xf0]  ;;  %v5393_v26 = vor.u32 %v6557_v22, %v5390_v6 }
 0x266   : > { %2181 = vst [vmem:[#allocation2 + $0x690] sm:$0xff] %v2151_v38  ;;  %1635 = vrot.lane.b32.xlu2 %v8311_v27, %s7117_s25  ;;  %2616 = vrot.lane.b32.xlu1 %v8289_v55, %s7119_s20  ;;  %v5701_v41 = vor.u32 %v6640_v4, %v5700_v16  ;;  %v5705_v39 = vor.u32 %v6636_v30, %v5702_v32  ;;  %v6549_v38 = vld [vmem:[#allocation2 + $0xc] sm:$0xf]  ;;  %v5358_v4 = vld [vmem:[#allocation2 + $0x5c] sm:$0xf0]  ;;  %v8420_v22 = vld [vmem:[%s7244_s28 + $0x40] sm:$0xff] }
 0x267   : > { %3553 = vmatpush.bf16.msrb.mxu0 %v5521_v24  ;;  %2518 = vrot.lane.b32.xlu0 %v8289_v55, %s7120_s16 }
 0x268   : > { %3485 = vmatpush.bf16.msra.mxu1 %v5701_v41  ;;  %3513 = vmatpush.bf16.msra.mxu3 %v5705_v39  ;;  %v8325_v36 = vpop.permute.xlu2 %2316  ;;  %v8327_v44 = vpop.permute.xlu1 %1922 }
 0x269   : > { %v2336_v43 = vrot.slane %v8325_v36, 4  ;;  %v1943_v40 = vrot.slane %v8327_v44, 4  ;;  %v1921_v35 = vpop.permute.xlu0 %1920 }
 0x26a   : > { %v1942_v34 = vrot.slane %v1921_v35, 4 }
 0x26b   : > { %3554 = vmatpush.bf16.msrb.mxu0 %v5489_v33  ;;  %v2348_v20 = vsel %vm283_vm0, %v2335_v47, %v2336_v43 }
 0x26c   : > { %v2349_v13 = vsel %vm2346_vm5, %v8210_v9, %v2348_v20  ;;  %v1953_v58 = vsel %vm283_vm0, %v1942_v34, %v1943_v40  ;;  %v6632_v59 = vld [vmem:[#allocation2 + $0x6e0] sm:$0xf0]  ;;  %v5670_v53 = vld [vmem:[#allocation2 + $0x6e4] sm:$0xf0] }
 0x26d   : > { %2378 = vst [vmem:[#allocation2 + $0x740] sm:$0xff] %v2349_v13  ;;  %v1955_v37 = vsel %vm1954_vm10, %v1921_v35, %v1953_v58  ;;  %v5668_v60 = vld [vmem:[#allocation2 + $0x690] sm:$0xf]  ;;  %v6628_v61 = vld [vmem:[#allocation2 + $0x694] sm:$0xf] }
 0x26e   : > { %1985 = vst [vmem:[#allocation2 + $0x5e8] sm:$0xff] %v1955_v37  ;;  %2716 = vrot.lane.b32.xlu2 %v8337_v57, %s7118_s27  ;;  %2420 = vrot.lane.b32.xlu1 %v8289_v55, %s7123_s6  ;;  %v5669_v9 = vor.u32 %v6632_v59, %v5668_v60  ;;  %v5673_v47 = vor.u32 %v6628_v61, %v5670_v53  ;;  %v5774_v35 = vld [vmem:[#allocation2 + $0x8e4] sm:$0xf0] }
 0x26f   : > { %3555 = vmatpush.bf16.msrb.mxu0 %v5457_v46  ;;  %2322 = vrot.lane.b32.xlu0 %v8289_v55, %s7121_s29 }
 0x270   : > { %3486 = vmatpush.bf16.msra.mxu1 %v5669_v9  ;;  %3514 = vmatpush.bf16.msra.mxu3 %v5673_v47  ;;  %v8352_v2 = vpop.permute.xlu2 %2218  ;;  %v8354_v63 = vpop.permute.xlu1 %2708 }
 0x271   : > { %v2238_v51 = vrot.slane %v8352_v2, 4  ;;  %v2728_v18 = vrot.slane %v8354_v63, 4  ;;  %v8358_v17 = vpop.permute.xlu0 %2020 }
 0x272   : > { %v2041_v62 = vrot.slane %v8358_v17, 4 }
 0x273   : > { %3556 = vmatpush.bf16.msrb.mxu0 %v5425_v11  ;;  %v2250_v24 = vsel %vm283_vm0, %v2237_v15, %v2238_v51  ;;  %v2740_v28 = vsel %vm283_vm0, %v2727_v23, %v2728_v18  ;;  %v5361_v23 = vor.u32 %v6549_v38, %v5358_v4 }
 0x274   : > { %v2251_v16 = vsel %vm2248_vm8, %v8247_v56, %v2250_v24  ;;  %v2741_v30 = vsel %vm2738_vm3, %v8176_v50, %v2740_v28  ;;  %v2051_v29 = vsel %vm283_vm0, %v2040_v12, %v2041_v62  ;;  %v1844_v50 = vrot.slane %v8302_v21, 4  ;;  %v6609_v24 = vld [vmem:[#allocation2 + $0x4f0] sm:$0xf0]  ;;  %v6657_v28 = vld [vmem:[#allocation2 + $0x8e0] sm:$0xf0] }
 0x275   : > { %2280 = vst [vmem:[#allocation2 + $0x6ec] sm:$0xff] %v2251_v16  ;;  %v2053_v15 = vsel %vm2052_vm11, %v8263_v14, %v2051_v29  ;;  %v1744_v56 = vrot.slane %v8283_v42, 4  ;;  %v5636_v46 = vld [vmem:[#allocation2 + $0x5e8] sm:$0xf]  ;;  %v6620_v59 = vld [vmem:[#allocation2 + $0x5ec] sm:$0xf] }
 0x276   : > { %2770 = vst [vmem:[#allocation2 + $0x890] sm:$0xff] %v2741_v30  ;;  %2520 = vrot.lane.b32.xlu2 %v8337_v57, %s7120_s16  ;;  %2224 = vrot.lane.b32.xlu1 %v8289_v55, %s7124_s7 }
 0x277   : > { %3557 = vmatpush.bf16.msrb.mxu0 %v5393_v26  ;;  %2083 = vst [vmem:[#allocation2 + $0x63c] sm:$0xff] %v2053_v15  ;;  %2126 = vrot.lane.b32.xlu0 %v8289_v55, %s7122_s30 }
 0x278   : > { %v8388_v32 = vpop.permute.xlu2 %1726  ;;  %v1822_v14 = vpop.permute.xlu1 %1821 }
 0x279   : > { %v1746_v41 = vrot.slane %v8388_v32, 4  ;;  %v1843_v39 = vrot.slane %v1822_v14, 4  ;;  %v1725_v7 = vpop.permute.xlu0 %1724 }
 0x27a   : > { %v1745_v33 = vrot.slane %v1725_v7, 4 }
 0x27b   : > { %3558 = vmatpush.bf16.msrb.mxu0 %v5361_v23  ;;  %v1854_v3 = vsel %vm283_vm0, %v1843_v39, %v1844_v50  ;;  %v6601_v39 = vld [vmem:[#allocation2 + $0x448] sm:$0xf0] }
 0x27c   : > { %v1856_v34 = vsel %vm1855_vm12, %v1822_v14, %v1854_v3  ;;  %v1755_v52 = vsel %vm283_vm0, %v1744_v56, %v1745_v33  ;;  %v1758_v20 = vsel %vm283_vm0, %v1745_v33, %v1746_v41  ;;  %v5580_v14 = vld [vmem:[#allocation2 + $0x4a0] sm:$0xf]  ;;  %v6547_v3 = vld [vmem:[#allocation6 + $0x4] sm:$0xf0] }
 0x27d   : > { %1887 = vst [vmem:[#allocation2 + $0x594] sm:$0xff] %v1856_v34  ;;  %v1757_v13 = vsel %vm1756_vm13, %v8283_v42, %v1755_v52  ;;  %v1759_v58 = vsel %vm1756_vm13, %v1725_v7, %v1758_v20  ;;  %v6653_v53 = vld [vmem:[#allocation2 + $0x894] sm:$0xf]  ;;  %v5772_v4 = vld [vmem:[#allocation2 + $0x890] sm:$0xf] }
 0x27e   : > { %1788 = vst [vmem:[#allocation2 + $0x540] sm:$0xff] %v1757_v13  ;;  %2028 = vrot.lane.b32.xlu2 %v8289_v55, %s7125_s8  ;;  %1930 = vrot.lane.b32.xlu1 %v8289_v55, %s7126_s17  ;;  %v6624_v0 = vld [vmem:[#allocation2 + $0x638] sm:$0xf0]  ;;  %v5638_v37 = vld [vmem:[#allocation2 + $0x63c] sm:$0xf0]  ;;  %v5777_v60 = vor.u32 %v6653_v53, %v5774_v35  ;;  %v5773_v7 = vor.u32 %v6657_v28, %v5772_v4 }
 0x27f   : > { %1789 = vst [vmem:[#allocation2 + $0x548] sm:$0xff] %v1759_v58  ;;  %2618 = vrot.lane.b32.xlu0 %v8337_v57, %s7119_s20  ;;  %v5637_v42 = vor.u32 %v6624_v0, %v5636_v46  ;;  %v5641_v61 = vor.u32 %v6620_v59, %v5638_v37  ;;  %v5340_v33 = vld [vmem:[#allocation6] sm:$0xf]  ;;  %v6546_v20 = vld [vmem:[#allocation6 + $0x4] sm:$0xf] }
 0x280   : > { %3567 = vmatpush.bf16.msrb.mxu2 %v5777_v60  ;;  %v8408_v9 = vpop.permute.xlu2 %2514  ;;  %v8410_v47 = vpop.permute.xlu1 %2610  ;;  %v8443_v52 = vor.u32 %v6547_v3, %v5340_v33  ;;  %v5342_v46 = vld [vmem:[#allocation6 + $0x8] sm:$0xf0]  ;;  %v5548_v37 = vld [vmem:[#allocation2 + $0x3f8] sm:$0xf]  ;;  %v6593_v28 = vld [vmem:[#allocation2 + $0x3a0] sm:$0xf0] }
 0x281   : > { %3487 = vmatpush.bf16.msra.mxu1 %v5637_v42  ;;  %3515 = vmatpush.bf16.msra.mxu3 %v5641_v61  ;;  %v2533_v49 = vrot.slane %v8408_v9, 4  ;;  %v2630_v55 = vrot.slane %v8410_v47, 4  ;;  %v2513_v11 = vpop.permute.xlu0 %2512  ;;  %v8447_v53 = vor.u32 %v6546_v20, %v5342_v46  ;;  %v5549_v42 = vor.u32 %v6601_v39, %v5548_v37  ;;  %v1804_v61 = vld [vmem:[%s7244_s28 + $0x30] sm:$0xff] }
 0x282   : > { %v2532_v12 = vrot.slane %v2513_v11, 4  ;;  %3475 = vmatmul.bf16.vlgmr.msra.gmra.mxu0 %v8443_v52  ;;  %3503 = vmatmul.bf16.vlgmr.msra.gmra.mxu2 %v8443_v52  ;;  %v5708_v46 = vld [vmem:[#allocation2 + $0x740] sm:$0xf] }
 0x283   : > { %v2642_v6 = vsel %vm283_vm0, %v2629_v31, %v2630_v55 }
 0x284   : > { %v2643_v26 = vsel %vm2640_vm6, %v8265_v25, %v2642_v6  ;;  %v2544_v16 = vsel %vm283_vm0, %v2531_v54, %v2532_v12  ;;  %v2546_v30 = vsel %vm283_vm0, %v2532_v12, %v2533_v49  ;;  %v6616_v29 = vld [vmem:[#allocation2 + $0x590] sm:$0xf0]  ;;  %v5606_v38 = vld [vmem:[#allocation2 + $0x594] sm:$0xf0] }
 0x285   : > { %2672 = vst [vmem:[#allocation2 + $0x83c] sm:$0xff] %v2643_v26  ;;  %v2545_v31 = vsel %vm2542_vm4, %v8249_v5, %v2544_v16  ;;  %v2547_v15 = vsel %vm2542_vm4, %v2513_v11, %v2546_v30  ;;  %v5604_v23 = vld [vmem:[#allocation2 + $0x540] sm:$0xf]  ;;  %v6612_v56 = vld [vmem:[#allocation2 + $0x544] sm:$0xf]  ;;  %v5581_v5 = vor.u32 %v6609_v24, %v5580_v14 }
 0x286   : > { %2574 = vst [vmem:[#allocation2 + $0x7e8] sm:$0xff] %v2545_v31  ;;  %2422 = vrot.lane.b32.xlu2 %v8337_v57, %s7123_s6  ;;  %2324 = vrot.lane.b32.xlu1 %v8337_v57, %s7121_s29  ;;  %v5605_v54 = vor.u32 %v6616_v29, %v5604_v23  ;;  %v5609_v25 = vor.u32 %v6612_v56, %v5606_v38  ;;  %v5516_v38 = vld [vmem:[#allocation2 + $0x350] sm:$0xf]  ;;  %v5484_v14 = vld [vmem:[#allocation2 + $0x2a8] sm:$0xf] }
 0x287   : > { %2575 = vst [vmem:[#allocation2 + $0x7f0] sm:$0xff] %v2547_v15  ;;  %1637 = vrot.lane.b32.xlu0 %v8420_v22, %s7117_s25  ;;  %v5517_v4 = vor.u32 %v6593_v28, %v5516_v38  ;;  %v6585_v15 = vld [vmem:[#allocation2 + $0x2f8] sm:$0xf0]  ;;  %v6633_v28 = vld [vmem:[#allocation2 + $0x6e8] sm:$0xf0] }
 0x288   : > { %3488 = vmatpush.bf16.msra.mxu1 %v5605_v54  ;;  %3516 = vmatpush.bf16.msra.mxu3 %v5609_v25  ;;  %v8439_v35 = vpop.permute.xlu2 %2416  ;;  %v8441_v34 = vpop.permute.xlu1 %2120 }
 0x289   : > { %v2435_v13 = vrot.slane %v8439_v35, 4  ;;  %v2140_v58 = vrot.slane %v8441_v34, 4  ;;  %v2415_v59 = vpop.permute.xlu0 %2414 }
 0x28a   : > { %v2434_v0 = vrot.slane %v2415_v59, 4 }
 0x28b   : > { %v2152_v60 = vsel %vm283_vm0, %v2139_v8, %v2140_v58  ;;  %5794 = vmatmul.msk.bf16.vlgmr.msra.gmra.mxu1 %vm3463_vm14, %v8447_v53  ;;  %5795 = vmatmul.msk.bf16.vlgmr.msra.gmra.mxu3 %vm3463_vm14, %v8447_v53 }
 0x28c   : > { %3523 = vmatpush.bf16.msrb.mxu1 %v5581_v5  ;;  %3539 = vmatpush.bf16.msrb.mxu3 %v5773_v7  ;;  %v2153_v11 = vsel %vm2150_vm9, %v8304_v19, %v2152_v60  ;;  %v2446_v12 = vsel %vm283_vm0, %v2433_v45, %v2434_v0  ;;  %v2448_v6 = vsel %vm283_vm0, %v2434_v0, %v2435_v13  ;;  %v6649_v8 = vld [vmem:[#allocation2 + $0x838] sm:$0xf0]  ;;  %v5742_v24 = vld [vmem:[#allocation2 + $0x83c] sm:$0xf0] }
 0x28d   : > { %2182 = vst [vmem:[#allocation2 + $0x698] sm:$0xff] %v2153_v11  ;;  %v2447_v26 = vsel %vm2444_vm7, %v8285_v48, %v2446_v12  ;;  %v2449_v16 = vsel %vm2444_vm7, %v2415_v59, %v2448_v6  ;;  %v5740_v30 = vld [vmem:[#allocation2 + $0x7e8] sm:$0xf]  ;;  %v6645_v19 = vld [vmem:[#allocation2 + $0x7ec] sm:$0xf]  ;;  %v5485_v7 = vor.u32 %v6585_v15, %v5484_v14 }
 0x28e   : > { %2476 = vst [vmem:[#allocation2 + $0x794] sm:$0xff] %v2447_v26  ;;  %2128 = vrot.lane.b32.xlu2 %v8337_v57, %s7122_s30  ;;  %1831 = vrot.lane.b32.xlu1 %v1804_v61, %s7128_s18  ;;  %v5741_v45 = vor.u32 %v6649_v8, %v5740_v30  ;;  %v5745_v29 = vor.u32 %v6645_v19, %v5742_v24  ;;  %v6637_v59 = vld [vmem:[#allocation2 + $0x744] sm:$0xf]  ;;  %v6569_v12 = vld [vmem:[#allocation2 + $0x1a8] sm:$0xf0] }
 0x28f   : > { %2477 = vst [vmem:[#allocation2 + $0x79c] sm:$0xff] %v2449_v16  ;;  %1732 = vrot.lane.b32.xlu0 %v1804_v61, %s7127_s15  ;;  %v5420_v19 = vld [vmem:[#allocation2 + $0x158] sm:$0xf] }
 0x290   : > { %3524 = vmatpush.bf16.msrb.mxu1 %v5549_v42  ;;  %3540 = vmatpush.bf16.msrb.mxu3 %v5741_v45  ;;  %v8476_v48 = vpop.permute.xlu2 %2220  ;;  %v8478_v31 = vpop.permute.xlu1 %2022  ;;  %v5421_v38 = vor.u32 %v6569_v12, %v5420_v19 }
 0x291   : > { %3568 = vmatpush.bf16.msrb.mxu2 %v5745_v29  ;;  %v2239_v23 = vrot.slane %v8476_v48, 4  ;;  %v2042_v56 = vrot.slane %v8478_v31, 4  ;;  %v1925_v54 = vpop.permute.xlu0 %1924 }
 0x292   : > { %v1944_v25 = vrot.slane %v1925_v54, 4  ;;  %3559 = vmatmul.bf16.vlgmr.msrb.gmra.mxu0 %v8443_v52 }
 0x293   : > { %v2252_v39 = vsel %vm283_vm0, %v2238_v51, %v2239_v23  ;;  %v2054_v5 = vsel %vm283_vm0, %v2041_v62, %v2042_v56  ;;  %v6577_v51 = vld [vmem:[#allocation2 + $0x250] sm:$0xf0] }
 0x294   : > { %3525 = vmatpush.bf16.msrb.mxu1 %v5517_v4  ;;  %v2253_v33 = vsel %vm2248_vm8, %v8352_v2, %v2252_v39  ;;  %v2055_v3 = vsel %vm2052_vm11, %v8358_v17, %v2054_v5  ;;  %v1956_v20 = vsel %vm283_vm0, %v1943_v40, %v1944_v25  ;;  %v5452_v40 = vld [vmem:[#allocation2 + $0x200] sm:$0xf]  ;;  %v5676_v42 = vld [vmem:[#allocation2 + $0x698] sm:$0xf]  ;;  %v6561_v39 = vld [vmem:[#allocation2 + $0x100] sm:$0xf0] }
 0x295   : > { %2281 = vst [vmem:[#allocation2 + $0x6f4] sm:$0xff] %v2253_v33  ;;  %v1957_v0 = vsel %vm1954_vm10, %v8327_v44, %v1956_v20  ;;  %v6641_v62 = vld [vmem:[#allocation2 + $0x790] sm:$0xf0]  ;;  %v5710_v37 = vld [vmem:[#allocation2 + $0x794] sm:$0xf0]  ;;  %v5453_v60 = vor.u32 %v6577_v51, %v5452_v40  ;;  %v5677_v16 = vor.u32 %v6633_v28, %v5676_v42  ;;  %v8526_v4 = vld [vmem:[%s7244_s28 + $0x4c] sm:$0xff] }
 0x296   : > { %2084 = vst [vmem:[#allocation2 + $0x644] sm:$0xff] %v2055_v3  ;;  %2030 = vrot.lane.b32.xlu2 %v8337_v57, %s7125_s8  ;;  %1932 = vrot.lane.b32.xlu1 %v8337_v57, %s7126_s17  ;;  %v5709_v2 = vor.u32 %v6641_v62, %v5708_v46  ;;  %v5713_v17 = vor.u32 %v6637_v59, %v5710_v37  ;;  %v6629_v44 = vld [vmem:[#allocation2 + $0x69c] sm:$0xf]  ;;  %v5356_v62 = vld [vmem:[#allocation2 + $0x8] sm:$0xf] }
 0x297   : > { %1986 = vst [vmem:[#allocation2 + $0x5f0] sm:$0xff] %v1957_v0  ;;  %2226 = vrot.lane.b32.xlu0 %v8337_v57, %s7124_s7  ;;  %v5678_v57 = vld [vmem:[#allocation2 + $0x6ec] sm:$0xf0]  ;;  %v6553_v37 = vld [vmem:[#allocation2 + $0x58] sm:$0xf0] }
 0x298   : > { %3526 = vmatpush.bf16.msrb.mxu1 %v5485_v7  ;;  %3541 = vmatpush.bf16.msrb.mxu3 %v5709_v2  ;;  %v8507_v61 = vpop.permute.xlu2 %1926  ;;  %v8509_v11 = vpop.permute.xlu1 %2710  ;;  %v5681_v30 = vor.u32 %v6629_v44, %v5678_v57  ;;  %v8564_v40 = vld [vmem:[%s7244_s28 + $0x48] sm:$0xff]  ;;  %v5782_v42 = vld [vmem:[#allocation2 + $0x8ec] sm:$0xf0]  ;;  %v5357_v57 = vor.u32 %v6553_v37, %v5356_v62 }
 0x299   : > { %3569 = vmatpush.bf16.msrb.mxu2 %v5713_v17  ;;  %v1945_v6 = vrot.slane %v8507_v61, 4  ;;  %v2729_v8 = vrot.slane %v8509_v11, 4  ;;  %v8513_v24 = vpop.permute.xlu0 %1825  ;;  %v6610_v44 = vld [vmem:[#allocation2 + $0x4f8] sm:$0xf0]  ;;  %v5556_v62 = vld [vmem:[#allocation2 + $0x400] sm:$0xf] }
 0x29a   : > { %v1845_v26 = vrot.slane %v8513_v24, 4  ;;  %v6598_v37 = vld [vmem:[#allocation2 + $0x404] sm:$0xf] }
 0x29b   : > { %v1958_v45 = vsel %vm283_vm0, %v1944_v25, %v1945_v6  ;;  %v2742_v29 = vsel %vm283_vm0, %v2728_v18, %v2729_v8 }
 0x29c   : > { %3527 = vmatpush.bf16.msrb.mxu1 %v5453_v60  ;;  %v1959_v15 = vsel %vm1954_vm10, %v1925_v54, %v1958_v45  ;;  %v2743_v14 = vsel %vm2738_vm3, %v8354_v63, %v2742_v29  ;;  %v1857_v25 = vsel %vm283_vm0, %v1844_v50, %v1845_v26  ;;  %3542 = vmatpush.bf16.msrb.mxu3 %v5677_v16  ;;  %v6658_v60 = vld [vmem:[#allocation2 + $0x8e8] sm:$0xf0]  ;;  %v5612_v16 = vld [vmem:[#allocation2 + $0x548] sm:$0xf] }
 0x29d   : > { %3570 = vmatpush.bf16.msrb.mxu2 %v5681_v30  ;;  %1987 = vst [vmem:[#allocation2 + $0x5f8] sm:$0xff] %v1959_v15  ;;  %v1858_v18 = vsel %vm1855_vm12, %v8302_v21, %v1857_v25  ;;  %v6625_v5 = vld [vmem:[#allocation2 + $0x640] sm:$0xf0]  ;;  %v5646_v7 = vld [vmem:[#allocation2 + $0x644] sm:$0xf0] }
 0x29e   : > { %2771 = vst [vmem:[#allocation2 + $0x898] sm:$0xff] %v2743_v14  ;;  %2718 = vrot.lane.b32.xlu2 %v8526_v4, %s7118_s27  ;;  %1833 = vrot.lane.b32.xlu1 %v8311_v27, %s7128_s18  ;;  %v5644_v63 = vld [vmem:[#allocation2 + $0x5f0] sm:$0xf]  ;;  %v6621_v54 = vld [vmem:[#allocation2 + $0x5f4] sm:$0xf] }
 0x29f   : > { %1888 = vst [vmem:[#allocation2 + $0x59c] sm:$0xff] %v1858_v18  ;;  %1734 = vrot.lane.b32.xlu0 %v8311_v27, %s7127_s15  ;;  %v5645_v50 = vor.u32 %v6625_v5, %v5644_v63  ;;  %v5649_v33 = vor.u32 %v6621_v54, %v5646_v7  ;;  %v5388_v21 = vld [vmem:[#allocation2 + $0xb0] sm:$0xf]  ;;  %v5590_v30 = vld [vmem:[#allocation2 + $0x4fc] sm:$0xf0] }
 0x2a0   : > { %3528 = vmatpush.bf16.msrb.mxu1 %v5421_v38  ;;  %v8544_v3 = vpop.permute.xlu2 %2418  ;;  %v8546_v20 = vpop.permute.xlu1 %2318  ;;  %v5389_v46 = vor.u32 %v6561_v39, %v5388_v21  ;;  %v5588_v14 = vld [vmem:[#allocation2 + $0x4a8] sm:$0xf]  ;;  %v6606_v25 = vld [vmem:[#allocation2 + $0x4ac] sm:$0xf]  ;;  %v6602_v63 = vld [vmem:[#allocation2 + $0x450] sm:$0xf0] }
 0x2a1   : > { %3543 = vmatpush.bf16.msrb.mxu3 %v5645_v50  ;;  %3571 = vmatpush.bf16.msrb.mxu2 %v5649_v33  ;;  %v2436_v59 = vrot.slane %v8544_v3, 4  ;;  %v2337_v51 = vrot.slane %v8546_v20, 4  ;;  %v8550_v0 = vpop.permute.xlu0 %2612  ;;  %v5589_v5 = vor.u32 %v6610_v44, %v5588_v14  ;;  %v5593_v7 = vor.u32 %v6606_v25, %v5590_v30  ;;  %v5558_v54 = vld [vmem:[#allocation2 + $0x454] sm:$0xf0] }
 0x2a2   : > { %v2631_v27 = vrot.slane %v8550_v0, 4 }
 0x2a3   : > { %v2450_v2 = vsel %vm283_vm0, %v2435_v13, %v2436_v59  ;;  %v2350_v17 = vsel %vm283_vm0, %v2336_v43, %v2337_v51  ;;  %v6613_v43 = vld [vmem:[#allocation2 + $0x54c] sm:$0xf] }
 0x2a4   : > { %3529 = vmatpush.bf16.msrb.mxu1 %v5389_v46  ;;  %v2451_v12 = vsel %vm2444_vm7, %v8439_v35, %v2450_v2  ;;  %v2351_v28 = vsel %vm2346_vm5, %v8325_v36, %v2350_v17  ;;  %v2644_v13 = vsel %vm283_vm0, %v2630_v55, %v2631_v27 }
 0x2a5   : > { %2478 = vst [vmem:[#allocation2 + $0x7a4] sm:$0xff] %v2451_v12  ;;  %v2645_v19 = vsel %vm2640_vm6, %v8410_v47, %v2644_v13  ;;  %v5780_v45 = vld [vmem:[#allocation2 + $0x898] sm:$0xf]  ;;  %v6654_v29 = vld [vmem:[#allocation2 + $0x89c] sm:$0xf] }
 0x2a6   : > { %2379 = vst [vmem:[#allocation2 + $0x748] sm:$0xff] %v2351_v28  ;;  %1639 = vrot.lane.b32.xlu2 %v8564_v40, %s7117_s25  ;;  %v6617_v36 = vld [vmem:[#allocation2 + $0x598] sm:$0xf0]  ;;  %v5614_v35 = vld [vmem:[#allocation2 + $0x59c] sm:$0xf0]  ;;  %v5781_v38 = vor.u32 %v6658_v60, %v5780_v45  ;;  %v5785_v15 = vor.u32 %v6654_v29, %v5782_v42  ;;  %2620 = vrot.lane.b32.xlu1 %v8526_v4, %s7119_s20 }
 0x2a7   : > { %2673 = vst [vmem:[#allocation2 + $0x844] sm:$0xff] %v2645_v19  ;;  %2522 = vrot.lane.b32.xlu0 %v8526_v4, %s7120_s16  ;;  %v5613_v55 = vor.u32 %v6617_v36, %v5612_v16  ;;  %v5617_v47 = vor.u32 %v6613_v43, %v5614_v35  ;;  %v5557_v60 = vor.u32 %v6602_v63, %v5556_v62  ;;  %v6594_v13 = vld [vmem:[#allocation2 + $0x3a8] sm:$0xf0]  ;;  %v5748_v16 = vld [vmem:[#allocation2 + $0x7f0] sm:$0xf] }
 0x2a8   : > { %3530 = vmatpush.bf16.msrb.mxu1 %v5357_v57  ;;  %3623 = vmatpush.bf16.msra.mxu0 %v5785_v15  ;;  %v8583_v39 = vpop.permute.xlu2 %2124  ;;  %v2123_v18 = vpop.permute.xlu1 %2122  ;;  %v5561_v42 = vor.u32 %v6598_v37, %v5558_v54  ;;  %v5526_v57 = vld [vmem:[#allocation2 + $0x3ac] sm:$0xf0]  ;;  %v6646_v43 = vld [vmem:[#allocation2 + $0x7f4] sm:$0xf]  ;;  %v5524_v29 = vld [vmem:[#allocation2 + $0x358] sm:$0xf] }
 0x2a9   : > { %3544 = vmatpush.bf16.msrb.mxu3 %v5613_v55  ;;  %3572 = vmatpush.bf16.msrb.mxu2 %v5617_v47  ;;  %v2142_v50 = vrot.slane %v8583_v39, 4  ;;  %v2141_v33 = vrot.slane %v2123_v18, 4  ;;  %v8586_v21 = vpop.permute.xlu0 %2712  ;;  %v6590_v36 = vld [vmem:[#allocation2 + $0x35c] sm:$0xf]  ;;  %v5718_v54 = vld [vmem:[#allocation2 + $0x79c] sm:$0xf0] }
 0x2aa   : > { %v2730_v46 = vrot.slane %v8586_v21, 4  ;;  %v5529_v15 = vor.u32 %v6590_v36, %v5526_v57  ;;  %v6642_v63 = vld [vmem:[#allocation2 + $0x798] sm:$0xf0] }
 0x2ab   : > { %v2154_v2 = vsel %vm283_vm0, %v2140_v58, %v2141_v33  ;;  %v2156_v17 = vsel %vm283_vm0, %v2141_v33, %v2142_v50  ;;  %3531 = vmatmul.bf16.vlgmr.msrb.gmra.mxu1 %v8443_v52  ;;  %v8605_v58 = vld [vmem:[%s7244_s28 + $0x54] sm:$0xff] }
 0x2ac   : > { %3595 = vmatpush.bf16.msra.mxu1 %v5781_v38  ;;  %v2155_v44 = vsel %vm2150_vm9, %v8441_v34, %v2154_v2  ;;  %v2157_v12 = vsel %vm2150_vm9, %v2123_v18, %v2156_v17  ;;  %v2744_v28 = vsel %vm283_vm0, %v2729_v8, %v2730_v46  ;;  %5796 = vmatmul.msk.bf16.vlgmr.msrb.gmra.mxu3 %vm3463_vm14, %v8447_v53  ;;  %v6586_v18 = vld [vmem:[#allocation2 + $0x300] sm:$0xf0]  ;;  %v5492_v2 = vld [vmem:[#allocation2 + $0x2b0] sm:$0xf]  ;;  %v6582_v17 = vld [vmem:[#allocation2 + $0x2b4] sm:$0xf] }
 0x2ad   : > { %3579 = vmatpush.bf16.msra.mxu3 %v5589_v5  ;;  %3607 = vmatpush.bf16.msra.mxu2 %v5593_v7  ;;  %2183 = vst [vmem:[#allocation2 + $0x6a0] sm:$0xff] %v2155_v44  ;;  %v2745_v34 = vsel %vm2738_vm3, %v8509_v11, %v2744_v28  ;;  %v5525_v38 = vor.u32 %v6594_v13, %v5524_v29  ;;  %v5716_v55 = vld [vmem:[#allocation2 + $0x748] sm:$0xf]  ;;  %v6638_v47 = vld [vmem:[#allocation2 + $0x74c] sm:$0xf] }
 0x2ae   : > { %5797 = vmatmul.msk.bf16.vlgmr.msrb.gmra.mxu2 %vm3463_vm14, %v8447_v53  ;;  %2184 = vst [vmem:[#allocation2 + $0x6a8] sm:$0xff] %v2157_v12  ;;  %v6650_v8 = vld [vmem:[#allocation2 + $0x840] sm:$0xf0]  ;;  %v5750_v30 = vld [vmem:[#allocation2 + $0x844] sm:$0xf0]  ;;  %2720 = vrot.lane.b32.xlu2 %v8605_v58, %s7118_s27  ;;  %v5717_v62 = vor.u32 %v6642_v63, %v5716_v55  ;;  %v5721_v37 = vor.u32 %v6638_v47, %v5718_v54 }
 0x2af   : > { %2772 = vst [vmem:[#allocation2 + $0x8a0] sm:$0xff] %v2745_v34  ;;  %2424 = vrot.lane.b32.xlu1 %v8526_v4, %s7123_s6  ;;  %v5749_v19 = vor.u32 %v6650_v8, %v5748_v16  ;;  %v5753_v45 = vor.u32 %v6646_v43, %v5750_v30  ;;  %2326 = vrot.lane.b32.xlu0 %v8526_v4, %s7121_s29  ;;  %v5494_v5 = vld [vmem:[#allocation2 + $0x304] sm:$0xf0]  ;;  %v5686_v34 = vld [vmem:[#allocation2 + $0x6f4] sm:$0xf0] }
 0x2b0   : > { %v8619_v11 = vpop.permute.xlu2 %2026  ;;  %v8621_v35 = vpop.permute.xlu1 %2614  ;;  %v5493_v12 = vor.u32 %v6586_v18, %v5492_v2  ;;  %v5497_v28 = vor.u32 %v6582_v17, %v5494_v5  ;;  %v5462_v8 = vld [vmem:[#allocation2 + $0x25c] sm:$0xf0]  ;;  %v6574_v30 = vld [vmem:[#allocation2 + $0x20c] sm:$0xf]  ;;  %v6566_v54 = vld [vmem:[#allocation2 + $0x164] sm:$0xf] }
 0x2b1   : > { %3580 = vmatpush.bf16.msra.mxu3 %v5557_v60  ;;  %3608 = vmatpush.bf16.msra.mxu2 %v5561_v42  ;;  %v2632_v14 = vrot.slane %v8621_v35, 4  ;;  %v8624_v25 = vpop.permute.xlu0 %2516  ;;  %v6634_v60 = vld [vmem:[#allocation2 + $0x6f0] sm:$0xf0]  ;;  %v5465_v36 = vor.u32 %v6574_v30, %v5462_v8  ;;  %v5428_v63 = vld [vmem:[#allocation2 + $0x160] sm:$0xf] }
 0x2b2   : > { %3596 = vmatpush.bf16.msra.mxu1 %v5749_v19  ;;  %3624 = vmatpush.bf16.msra.mxu0 %v5753_v45  ;;  %v2534_v7 = vrot.slane %v8624_v25, 4  ;;  %v2044_v19 = vrot.slane %v8619_v11, 4  ;;  %v5790_v30 = vld [vmem:[#allocation2 + $0x8f4] sm:$0xf0] }
 0x2b3   : > { %v2646_v33 = vsel %vm283_vm0, %v2631_v27, %v2632_v14 }
 0x2b4   : > { %v2647_v42 = vsel %vm2640_vm6, %v8550_v0, %v2646_v33  ;;  %v2548_v44 = vsel %vm283_vm0, %v2533_v49, %v2534_v7  ;;  %v5684_v13 = vld [vmem:[#allocation2 + $0x6a0] sm:$0xf]  ;;  %v6630_v57 = vld [vmem:[#allocation2 + $0x6a4] sm:$0xf]  ;;  %v6578_v0 = vld [vmem:[#allocation2 + $0x258] sm:$0xf0] }
 0x2b5   : > { %3581 = vmatpush.bf16.msra.mxu3 %v5525_v38  ;;  %3609 = vmatpush.bf16.msra.mxu2 %v5529_v15  ;;  %2674 = vst [vmem:[#allocation2 + $0x84c] sm:$0xff] %v2647_v42  ;;  %v2549_v27 = vsel %vm2542_vm4, %v8408_v9, %v2548_v44  ;;  %v5685_v16 = vor.u32 %v6634_v60, %v5684_v13  ;;  %v5460_v49 = vld [vmem:[#allocation2 + $0x208] sm:$0xf]  ;;  %v6570_v38 = vld [vmem:[#allocation2 + $0x1b0] sm:$0xf0] }
 0x2b6   : > { %3597 = vmatpush.bf16.msra.mxu1 %v5717_v62  ;;  %3625 = vmatpush.bf16.msra.mxu0 %v5721_v37  ;;  %v5689_v43 = vor.u32 %v6630_v57, %v5686_v34  ;;  %2576 = vst [vmem:[#allocation2 + $0x7f8] sm:$0xff] %v2549_v27  ;;  %v5461_v29 = vor.u32 %v6578_v0, %v5460_v49  ;;  %v5430_v15 = vld [vmem:[#allocation2 + $0x1b4] sm:$0xf0]  ;;  %v6550_v13 = vld [vmem:[#allocation2 + $0x14] sm:$0xf] }
 0x2b7   : > { %2524 = vrot.lane.b32.xlu2 %v8605_v58, %s7120_s16  ;;  %2228 = vrot.lane.b32.xlu1 %v8526_v4, %s7124_s7  ;;  %v5429_v37 = vor.u32 %v6570_v38, %v5428_v63  ;;  %v5433_v2 = vor.u32 %v6566_v54, %v5430_v15  ;;  %v6659_v49 = vld [vmem:[#allocation2 + $0x8f0] sm:$0xf0]  ;;  %v6655_v38 = vld [vmem:[#allocation2 + $0x8a4] sm:$0xf] }
 0x2b8   : > { %2130 = vrot.lane.b32.xlu0 %v8526_v4, %s7122_s30  ;;  %v8648_v9 = vpop.permute.xlu2 %2714  ;;  %v8650_v45 = vpop.permute.xlu1 %2320 }
 0x2b9   : > { %3582 = vmatpush.bf16.msra.mxu3 %v5493_v12  ;;  %3610 = vmatpush.bf16.msra.mxu2 %v5497_v28  ;;  %v2731_v55 = vrot.slane %v8648_v9, 4  ;;  %v2338_v47 = vrot.slane %v8650_v45, 4  ;;  %v2025_v18 = vpop.permute.xlu0 %2024  ;;  %v6562_v12 = vld [vmem:[#allocation2 + $0x108] sm:$0xf0]  ;;  %v5398_v28 = vld [vmem:[#allocation2 + $0x10c] sm:$0xf0] }
 0x2ba   : > { %3598 = vmatpush.bf16.msra.mxu1 %v5685_v16  ;;  %3626 = vmatpush.bf16.msra.mxu0 %v5689_v43  ;;  %v2043_v5 = vrot.slane %v2025_v18, 4  ;;  %v6554_v16 = vld [vmem:[#allocation2 + $0x60] sm:$0xf0]  ;;  %v5366_v43 = vld [vmem:[#allocation2 + $0x64] sm:$0xf0] }
 0x2bb   : > { %v2746_v33 = vsel %vm283_vm0, %v2730_v46, %v2731_v55  ;;  %v2352_v62 = vsel %vm283_vm0, %v2337_v51, %v2338_v47 }
 0x2bc   : > { %v2747_v17 = vsel %vm2738_vm3, %v8586_v21, %v2746_v33  ;;  %v2353_v60 = vsel %vm2346_vm5, %v8546_v20, %v2352_v62  ;;  %v2056_v42 = vsel %vm283_vm0, %v2042_v56, %v2043_v5  ;;  %v2058_v46 = vsel %vm283_vm0, %v2043_v5, %v2044_v19  ;;  %v5364_v20 = vld [vmem:[#allocation2 + $0x10] sm:$0xf]  ;;  %v5396_v56 = vld [vmem:[#allocation2 + $0xb8] sm:$0xf]  ;;  %v6558_v21 = vld [vmem:[#allocation2 + $0xbc] sm:$0xf] }
 0x2bd   : > { %3583 = vmatpush.bf16.msra.mxu3 %v5461_v29  ;;  %3611 = vmatpush.bf16.msra.mxu2 %v5465_v36  ;;  %2773 = vst [vmem:[#allocation2 + $0x8a8] sm:$0xff] %v2747_v17  ;;  %v2057_v51 = vsel %vm2052_vm11, %v8478_v31, %v2056_v42  ;;  %v2059_v44 = vsel %vm2052_vm11, %v2025_v18, %v2058_v46  ;;  %v5788_v36 = vld [vmem:[#allocation2 + $0x8a0] sm:$0xf]  ;;  %v5652_v62 = vld [vmem:[#allocation2 + $0x5f8] sm:$0xf] }
 0x2be   : > { %2380 = vst [vmem:[#allocation2 + $0x750] sm:$0xff] %v2353_v60  ;;  %v5397_v34 = vor.u32 %v6562_v12, %v5396_v56  ;;  %v5401_v27 = vor.u32 %v6558_v21, %v5398_v28  ;;  %v5365_v5 = vor.u32 %v6554_v16, %v5364_v20  ;;  %v5369_v33 = vor.u32 %v6550_v13, %v5366_v43  ;;  %v5758_v17 = vld [vmem:[#allocation2 + $0x84c] sm:$0xf0]  ;;  %v5756_v42 = vld [vmem:[#allocation2 + $0x7f8] sm:$0xf]  ;;  %v8714_v46 = vld [vmem:[%s7244_s28 + $0x50] sm:$0xff] }
 0x2bf   : > { %2085 = vst [vmem:[#allocation2 + $0x64c] sm:$0xff] %v2057_v51  ;;  %2032 = vrot.lane.b32.xlu2 %v8526_v4, %s7125_s8  ;;  %1934 = vrot.lane.b32.xlu1 %v8526_v4, %s7126_s17  ;;  %v5793_v60 = vor.u32 %v6655_v38, %v5790_v30 }
 0x2c0   : > { %2086 = vst [vmem:[#allocation2 + $0x654] sm:$0xff] %v2059_v44  ;;  %2622 = vrot.lane.b32.xlu0 %v8605_v58, %s7119_s20  ;;  %v8683_v31 = vpop.permute.xlu2 %1635  ;;  %v8685_v57 = vpop.permute.xlu1 %1827 }
 0x2c1   : > { %3584 = vmatpush.bf16.msra.mxu3 %v5429_v37  ;;  %3612 = vmatpush.bf16.msra.mxu2 %v5433_v2  ;;  %v1651_v0 = vrot.slane %v8683_v31, 4  ;;  %v1846_v8 = vrot.slane %v8685_v57, 4  ;;  %v8689_v4 = vpop.permute.xlu0 %1728  ;;  %v6622_v37 = vld [vmem:[#allocation2 + $0x5fc] sm:$0xf]  ;;  %v6651_v2 = vld [vmem:[#allocation2 + $0x848] sm:$0xf0] }
 0x2c2   : > { %v1747_v29 = vrot.slane %v8689_v4, 4  ;;  %v5757_v13 = vor.u32 %v6651_v2, %v5756_v42  ;;  %v5596_v2 = vld [vmem:[#allocation2 + $0x4b0] sm:$0xf] }
 0x2c3   : > { %v1667_v15 = vsel %vm283_vm0, %v1650_v1, %v1651_v0  ;;  %v1859_v18 = vsel %vm283_vm0, %v1845_v26, %v1846_v8 }
 0x2c4   : > { %v1668_v63 = vsel %vm1657_vm1, %v8229_v10, %v1667_v15  ;;  %v1860_v54 = vsel %vm1855_vm12, %v8513_v24, %v1859_v18  ;;  %v1760_v1 = vsel %vm283_vm0, %v1746_v41, %v1747_v29  ;;  %v5789_v10 = vor.u32 %v6659_v49, %v5788_v36  ;;  %v6647_v24 = vld [vmem:[#allocation2 + $0x7fc] sm:$0xf]  ;;  %v6611_v36 = vld [vmem:[#allocation2 + $0x500] sm:$0xf0] }
 0x2c5   : > { %3585 = vmatpush.bf16.msra.mxu3 %v5397_v34  ;;  %3613 = vmatpush.bf16.msra.mxu2 %v5401_v27  ;;  %1694 = vst [vmem:[#allocation2 + $0x514] sm:$0xff] %v1668_v63  ;;  %v1761_v26 = vsel %vm1756_vm13, %v8388_v32, %v1760_v1  ;;  %v5761_v34 = vor.u32 %v6647_v24, %v5758_v17  ;;  %v5724_v16 = vld [vmem:[#allocation2 + $0x750] sm:$0xf]  ;;  %v6639_v43 = vld [vmem:[#allocation2 + $0x754] sm:$0xf] }
 0x2c6   : > { %1889 = vst [vmem:[#allocation2 + $0x5a4] sm:$0xff] %v1860_v54  ;;  %v6626_v51 = vld [vmem:[#allocation2 + $0x648] sm:$0xf0]  ;;  %v5654_v41 = vld [vmem:[#allocation2 + $0x64c] sm:$0xf0] }
 0x2c7   : > { %1790 = vst [vmem:[#allocation2 + $0x550] sm:$0xff] %v1761_v26  ;;  %v5653_v44 = vor.u32 %v6626_v51, %v5652_v62  ;;  %v5657_v12 = vor.u32 %v6622_v37, %v5654_v41  ;;  %2426 = vrot.lane.b32.xlu2 %v8605_v58, %s7123_s6  ;;  %2328 = vrot.lane.b32.xlu1 %v8605_v58, %s7121_s29  ;;  %v6643_v18 = vld [vmem:[#allocation2 + $0x7a0] sm:$0xf0]  ;;  %v5598_v63 = vld [vmem:[#allocation2 + $0x504] sm:$0xf0] }
 0x2c8   : > { %v8720_v32 = vpop.permute.xlu2 %2716  ;;  %v8722_v28 = vpop.permute.xlu1 %1928  ;;  %1641 = vrot.lane.b32.xlu0 %v8714_v46, %s7117_s25  ;;  %v5725_v54 = vor.u32 %v6643_v18, %v5724_v16  ;;  %v5597_v26 = vor.u32 %v6611_v36, %v5596_v2  ;;  %v6603_v51 = vld [vmem:[#allocation2 + $0x458] sm:$0xf0] }
 0x2c9   : > { %3586 = vmatpush.bf16.msra.mxu3 %v5365_v5  ;;  %3614 = vmatpush.bf16.msra.mxu2 %v5369_v33  ;;  %v2732_v20 = vrot.slane %v8720_v32, 4  ;;  %v1946_v56 = vrot.slane %v8722_v28, 4  ;;  %v8728_v21 = vpop.permute.xlu0 %2222  ;;  %v5726_v5 = vld [vmem:[#allocation2 + $0x7a4] sm:$0xf0] }
 0x2ca   : > { %3599 = vmatpush.bf16.msra.mxu1 %v5653_v44  ;;  %3627 = vmatpush.bf16.msra.mxu0 %v5657_v12  ;;  %v2240_v27 = vrot.slane %v8728_v21, 4  ;;  %v5566_v44 = vld [vmem:[#allocation2 + $0x45c] sm:$0xf0] }
 0x2cb   : > { %v2748_v49 = vsel %vm283_vm0, %v2731_v55, %v2732_v20  ;;  %v1960_v30 = vsel %vm283_vm0, %v1945_v6, %v1946_v56 }
 0x2cc   : > { %3587 = vmatmul.bf16.vlgmr.msra.gmra.mxu3 %v8443_v52  ;;  %v2749_v38 = vsel %vm2738_vm3, %v8648_v9, %v2748_v49  ;;  %v1961_v15 = vsel %vm1954_vm10, %v8507_v61, %v1960_v30  ;;  %v2254_v55 = vsel %vm283_vm0, %v2239_v23, %v2240_v27  ;;  %3615 = vmatmul.bf16.vlgmr.msra.gmra.mxu2 %v8443_v52  ;;  %v6595_v49 = vld [vmem:[#allocation2 + $0x3b0] sm:$0xf0]  ;;  %v5534_v30 = vld [vmem:[#allocation2 + $0x3b4] sm:$0xf0] }
 0x2cd   : > { %3651 = vmatpush.bf16.msrb.mxu3 %v5789_v10  ;;  %3679 = vmatpush.bf16.msrb.mxu2 %v5793_v60  ;;  %2774 = vst [vmem:[#allocation2 + $0x8b0] sm:$0xff] %v2749_v38  ;;  %v2255_v6 = vsel %vm2248_vm8, %v8476_v48, %v2254_v55  ;;  %v5729_v9 = vor.u32 %v6639_v43, %v5726_v5  ;;  %v6618_v1 = vld [vmem:[#allocation2 + $0x5a0] sm:$0xf0]  ;;  %v5622_v33 = vld [vmem:[#allocation2 + $0x5a4] sm:$0xf0] }
 0x2ce   : > { %1988 = vst [vmem:[#allocation2 + $0x600] sm:$0xff] %v1961_v15  ;;  %v5620_v61 = vld [vmem:[#allocation2 + $0x550] sm:$0xf]  ;;  %v6614_v62 = vld [vmem:[#allocation2 + $0x554] sm:$0xf] }
 0x2cf   : > { %2282 = vst [vmem:[#allocation2 + $0x6fc] sm:$0xff] %v2255_v6  ;;  %v5621_v23 = vor.u32 %v6618_v1, %v5620_v61  ;;  %v5625_v37 = vor.u32 %v6614_v62, %v5622_v33  ;;  %2132 = vrot.lane.b32.xlu2 %v8605_v58, %s7122_s30  ;;  %1835 = vrot.lane.b32.xlu1 %v8420_v22, %s7128_s18  ;;  %v6607_v10 = vld [vmem:[#allocation2 + $0x4b4] sm:$0xf]  ;;  %v6599_v43 = vld [vmem:[#allocation2 + $0x40c] sm:$0xf] }
 0x2d0   : > { %v8758_v48 = vpop.permute.xlu2 %2520  ;;  %v8760_v17 = vpop.permute.xlu1 %1829  ;;  %1736 = vrot.lane.b32.xlu0 %v8420_v22, %s7127_s15  ;;  %v5601_v24 = vor.u32 %v6607_v10, %v5598_v63  ;;  %v5564_v22 = vld [vmem:[#allocation2 + $0x408] sm:$0xf]  ;;  %v5569_v36 = vor.u32 %v6599_v43, %v5566_v44  ;;  %v5532_v5 = vld [vmem:[#allocation2 + $0x360] sm:$0xf]  ;;  %v6591_v63 = vld [vmem:[#allocation2 + $0x364] sm:$0xf] }
 0x2d1   : > { %3652 = vmatpush.bf16.msrb.mxu3 %v5757_v13  ;;  %3680 = vmatpush.bf16.msrb.mxu2 %v5761_v34  ;;  %v1847_v60 = vrot.slane %v8760_v17, 4  ;;  %v8765_v42 = vpop.permute.xlu0 %1730  ;;  %v5565_v16 = vor.u32 %v6603_v51, %v5564_v22  ;;  %v5692_v38 = vld [vmem:[#allocation2 + $0x6a8] sm:$0xf]  ;;  %v6587_v6 = vld [vmem:[#allocation2 + $0x308] sm:$0xf0]  ;;  %v5533_v1 = vor.u32 %v6595_v49, %v5532_v5  ;;  %v5537_v2 = vor.u32 %v6591_v63, %v5534_v30 }
 0x2d2   : > { %3600 = vmatpush.bf16.msra.mxu1 %v5621_v23  ;;  %3628 = vmatpush.bf16.msra.mxu0 %v5625_v37  ;;  %v1748_v41 = vrot.slane %v8765_v42, 4  ;;  %v5502_v10 = vld [vmem:[#allocation2 + $0x30c] sm:$0xf0]  ;;  %v6627_v51 = vld [vmem:[#allocation2 + $0x650] sm:$0xf0] }
 0x2d3   : > { %v1861_v12 = vsel %vm283_vm0, %v1846_v8, %v1847_v60  ;;  %v5662_v44 = vld [vmem:[#allocation2 + $0x654] sm:$0xf0]  ;;  %v6720_v5 = vld [vmem:[#allocation2 + $0x508] sm:$0xf0]  ;;  %v6571_v63 = vld [vmem:[#allocation2 + $0x1b8] sm:$0xf0] }
 0x2d4   : > { %v1862_v13 = vsel %vm1855_vm12, %v8685_v57, %v1861_v12  ;;  %v1762_v34 = vsel %vm283_vm0, %v1747_v29, %v1748_v41  ;;  %v6631_v57 = vld [vmem:[#allocation2 + $0x6ac] sm:$0xf] }
 0x2d5   : > { %3653 = vmatpush.bf16.msrb.mxu3 %v5725_v54  ;;  %3681 = vmatpush.bf16.msrb.mxu2 %v5729_v9  ;;  %1890 = vst [vmem:[#allocation2 + $0x5ac] sm:$0xff] %v1862_v13  ;;  %v1763_v8 = vsel %vm1756_vm13, %v8689_v4, %v1762_v34  ;;  %v2536_v54 = vrot.slane %v8758_v48, 4  ;;  %v5660_v33 = vld [vmem:[#allocation2 + $0x600] sm:$0xf]  ;;  %v6623_v61 = vld [vmem:[#allocation2 + $0x604] sm:$0xf] }
 0x2d6   : > { %3635 = vmatpush.bf16.msrb.mxu1 %v5597_v26  ;;  %3663 = vmatpush.bf16.msrb.mxu0 %v5601_v24  ;;  %1791 = vst [vmem:[#allocation2 + $0x558] sm:$0xff] %v1763_v8  ;;  %v6635_v29 = vld [vmem:[#allocation2 + $0x6f8] sm:$0xf0]  ;;  %v5694_v15 = vld [vmem:[#allocation2 + $0x6fc] sm:$0xf0]  ;;  %v5661_v13 = vor.u32 %v6627_v51, %v5660_v33  ;;  %v5665_v34 = vor.u32 %v6623_v61, %v5662_v44 }
 0x2d7   : > { %5798 = vmatmul.msk.bf16.vlgmr.msra.gmra.mxu1 %vm3463_vm14, %v8447_v53  ;;  %5799 = vmatmul.msk.bf16.vlgmr.msra.gmra.mxu0 %vm3463_vm14, %v8447_v53  ;;  %v5693_v55 = vor.u32 %v6635_v29, %v5692_v38  ;;  %v5697_v18 = vor.u32 %v6631_v57, %v5694_v15  ;;  %v5500_v26 = vld [vmem:[#allocation2 + $0x2b8] sm:$0xf] }
 0x2d8   : > { %2034 = vrot.lane.b32.xlu2 %v8605_v58, %s7125_s8  ;;  %1936 = vrot.lane.b32.xlu1 %v8605_v58, %s7126_s17  ;;  %v8791_v4 = vpop.permute.xlu2 %2028  ;;  %v8793_v9 = vpop.permute.xlu1 %2616  ;;  %v5501_v12 = vor.u32 %v6587_v6, %v5500_v26  ;;  %v5468_v6 = vld [vmem:[#allocation2 + $0x210] sm:$0xf] }
 0x2d9   : > { %2230 = vrot.lane.b32.xlu0 %v8605_v58, %s7124_s7  ;;  %3654 = vmatpush.bf16.msrb.mxu3 %v5693_v55  ;;  %v2045_v62 = vrot.slane %v8791_v4, 4  ;;  %v2633_v23 = vrot.slane %v8793_v9, 4  ;;  %v2519_v37 = vpop.permute.xlu0 %2518 }
 0x2da   : > { %3636 = vmatpush.bf16.msrb.mxu1 %v5565_v16  ;;  %3664 = vmatpush.bf16.msrb.mxu0 %v5569_v36  ;;  %v2535_v24 = vrot.slane %v2519_v37, 4  ;;  %v6579_v16 = vld [vmem:[#allocation2 + $0x260] sm:$0xf0] }
 0x2db   : > { %3682 = vmatpush.bf16.msrb.mxu2 %v5697_v18  ;;  %v2060_v58 = vsel %vm283_vm0, %v2044_v19, %v2045_v62  ;;  %v2648_v22 = vsel %vm283_vm0, %v2632_v14, %v2633_v23  ;;  %v6583_v14 = vld [vmem:[#allocation2 + $0x2bc] sm:$0xf]  ;;  %v5470_v18 = vld [vmem:[#allocation2 + $0x264] sm:$0xf0]  ;;  %v5469_v61 = vor.u32 %v6579_v16, %v5468_v6  ;;  %v6712_v16 = vld [vmem:[#allocation2 + $0x460] sm:$0xf0] }
 0x2dc   : > { %v2061_v43 = vsel %vm2052_vm11, %v8619_v11, %v2060_v58  ;;  %v2649_v49 = vsel %vm2640_vm6, %v8621_v35, %v2648_v22  ;;  %v2550_v19 = vsel %vm283_vm0, %v2534_v7, %v2535_v24  ;;  %v2552_v30 = vsel %vm283_vm0, %v2535_v24, %v2536_v54  ;;  %v6619_v8 = vld [vmem:[#allocation2 + $0x5a8] sm:$0xf0]  ;;  %v5630_v36 = vld [vmem:[#allocation2 + $0x5ac] sm:$0xf0]  ;;  %v5436_v58 = vld [vmem:[#allocation2 + $0x168] sm:$0xf] }
 0x2dd   : > { %2087 = vst [vmem:[#allocation2 + $0x65c] sm:$0xff] %v2061_v43  ;;  %v2551_v38 = vsel %vm2542_vm4, %v8624_v25, %v2550_v19  ;;  %v2553_v11 = vsel %vm2542_vm4, %v2519_v37, %v2552_v30  ;;  %3655 = vmatpush.bf16.msrb.mxu3 %v5661_v13  ;;  %v5505_v57 = vor.u32 %v6583_v14, %v5502_v10  ;;  %v8823_v35 = vld [vmem:[%s7244_s28 + $0x5c] sm:$0xff]  ;;  %v6615_v15 = vld [vmem:[#allocation2 + $0x55c] sm:$0xf]  ;;  %v5998_v19 = vld [vmem:[#allocation2 + $0x464] sm:$0xf0] }
 0x2de   : > { %3637 = vmatpush.bf16.msrb.mxu1 %v5533_v1  ;;  %3665 = vmatpush.bf16.msrb.mxu0 %v5537_v2  ;;  %v5628_v29 = vld [vmem:[#allocation2 + $0x558] sm:$0xf]  ;;  %2675 = vst [vmem:[#allocation2 + $0x854] sm:$0xff] %v2649_v49  ;;  %v5633_v55 = vor.u32 %v6615_v15, %v5630_v36  ;;  %v6030_v25 = vld [vmem:[#allocation2 + $0x50c] sm:$0xf0]  ;;  %v5437_v49 = vor.u32 %v6571_v63, %v5436_v58 }
 0x2df   : > { %3683 = vmatpush.bf16.msrb.mxu2 %v5665_v34  ;;  %v5629_v7 = vor.u32 %v6619_v8, %v5628_v29  ;;  %2577 = vst [vmem:[#allocation2 + $0x800] sm:$0xff] %v2551_v38  ;;  %v6575_v37 = vld [vmem:[#allocation2 + $0x214] sm:$0xf]  ;;  %v6028_v2 = vld [vmem:[#allocation2 + $0x4b8] sm:$0xf] }
 0x2e0   : > { %2578 = vst [vmem:[#allocation2 + $0x808] sm:$0xff] %v2553_v11  ;;  %2722 = vrot.lane.b32.xlu2 %v8823_v35, %s7118_s27  ;;  %1837 = vrot.lane.b32.xlu1 %v8564_v40, %s7128_s18  ;;  %v8829_v1 = vpop.permute.xlu2 %2422  ;;  %v2421_v33 = vpop.permute.xlu1 %2420  ;;  %v5473_v51 = vor.u32 %v6575_v37, %v5470_v18  ;;  %v6029_v44 = vor.u32 %v6720_v5, %v6028_v2  ;;  %v5438_v34 = vld [vmem:[#allocation2 + $0x1bc] sm:$0xf0]  ;;  %v6567_v8 = vld [vmem:[#allocation2 + $0x16c] sm:$0xf] }
 0x2e1   : > { %1738 = vrot.lane.b32.xlu0 %v8564_v40, %s7127_s15  ;;  %3656 = vmatpush.bf16.msrb.mxu3 %v5629_v7  ;;  %v2438_v26 = vrot.slane %v8829_v1, 4  ;;  %v2437_v10 = vrot.slane %v2421_v33, 4  ;;  %v8834_v24 = vpop.permute.xlu0 %2322  ;;  %v5996_v36 = vld [vmem:[#allocation2 + $0x410] sm:$0xf]  ;;  %v5441_v11 = vor.u32 %v6567_v8, %v5438_v34  ;;  %v6563_v15 = vld [vmem:[#allocation2 + $0x110] sm:$0xf0] }
 0x2e2   : > { %3638 = vmatpush.bf16.msrb.mxu1 %v5501_v12  ;;  %3666 = vmatpush.bf16.msrb.mxu0 %v5505_v57  ;;  %v6716_v12 = vld [vmem:[#allocation2 + $0x4bc] sm:$0xf]  ;;  %v2339_v22 = vrot.slane %v8834_v24, 4  ;;  %v6708_v57 = vld [vmem:[#allocation2 + $0x414] sm:$0xf] }
 0x2e3   : > { %3684 = vmatpush.bf16.msrb.mxu2 %v5633_v55  ;;  %v6033_v13 = vor.u32 %v6716_v12, %v6030_v25  ;;  %v2452_v40 = vsel %vm283_vm0, %v2436_v59, %v2437_v10  ;;  %v2454_v43 = vsel %vm283_vm0, %v2437_v10, %v2438_v26  ;;  %v8856_v29 = vld [vmem:[%s7244_s28 + $0x58] sm:$0xff]  ;;  %v5406_v7 = vld [vmem:[#allocation2 + $0x114] sm:$0xf0]  ;;  %v6704_v55 = vld [vmem:[#allocation2 + $0x3b8] sm:$0xf0] }
 0x2e4   : > { %v2453_v30 = vsel %vm2444_vm7, %v8544_v3, %v2452_v40  ;;  %v2455_v14 = vsel %vm2444_vm7, %v2421_v33, %v2454_v43  ;;  %v2354_v59 = vsel %vm283_vm0, %v2338_v47, %v2339_v22  ;;  %5800 = vmatmul.msk.bf16.vlgmr.msrb.gmra.mxu3 %vm3463_vm14, %v8447_v53  ;;  %v5997_v3 = vor.u32 %v6712_v16, %v5996_v36  ;;  %v5404_v18 = vld [vmem:[#allocation2 + $0xc0] sm:$0xf]  ;;  %v6559_v33 = vld [vmem:[#allocation2 + $0xc4] sm:$0xf]  ;;  %v6551_v37 = vld [vmem:[#allocation2 + $0x1c] sm:$0xf] }
 0x2e5   : > { %4379 = vmatpush.bf16.msra.mxu3 %v6029_v44  ;;  %2479 = vst [vmem:[#allocation2 + $0x7ac] sm:$0xff] %v2453_v30  ;;  %v2355_v38 = vsel %vm2346_vm5, %v8650_v45, %v2354_v59  ;;  %v6001_v47 = vor.u32 %v6708_v57, %v5998_v19  ;;  %v5966_v5 = vld [vmem:[#allocation2 + $0x3bc] sm:$0xf0]  ;;  %v5372_v45 = vld [vmem:[#allocation2 + $0x18] sm:$0xf]  ;;  %v5405_v25 = vor.u32 %v6563_v15, %v5404_v18 }
 0x2e6   : > { %3639 = vmatpush.bf16.msrb.mxu1 %v5469_v61  ;;  %3667 = vmatpush.bf16.msrb.mxu0 %v5473_v51  ;;  %2480 = vst [vmem:[#allocation2 + $0x7b4] sm:$0xff] %v2455_v14  ;;  %v5964_v61 = vld [vmem:[#allocation2 + $0x368] sm:$0xf]  ;;  %v5409_v44 = vor.u32 %v6559_v33, %v5406_v7  ;;  %v6700_v58 = vld [vmem:[#allocation2 + $0x36c] sm:$0xf] }
 0x2e7   : > { %4407 = vmatpush.bf16.msra.mxu2 %v6033_v13  ;;  %2381 = vst [vmem:[#allocation2 + $0x758] sm:$0xff] %v2355_v38  ;;  %v5965_v12 = vor.u32 %v6704_v55, %v5964_v61  ;;  %v6555_v13 = vld [vmem:[#allocation2 + $0x68] sm:$0xf0]  ;;  %v5969_v16 = vor.u32 %v6700_v58, %v5966_v5  ;;  %v5374_v40 = vld [vmem:[#allocation2 + $0x6c] sm:$0xf0] }
 0x2e8   : > { %5801 = vmatmul.msk.bf16.vlgmr.msrb.gmra.mxu2 %vm3463_vm14, %v8447_v53  ;;  %1643 = vrot.lane.b32.xlu2 %v8856_v29, %s7117_s25  ;;  %v8862_v63 = vpop.permute.xlu2 %2128  ;;  %v8864_v6 = vpop.permute.xlu1 %2224  ;;  %v6696_v43 = vld [vmem:[#allocation2 + $0x310] sm:$0xf0]  ;;  %v5934_v19 = vld [vmem:[#allocation2 + $0x314] sm:$0xf0]  ;;  %v6220_v30 = vld [vmem:[#allocation2 + $0x8a8] sm:$0xf]  ;;  %v5373_v38 = vor.u32 %v6555_v13, %v5372_v45  ;;  %v5377_v15 = vor.u32 %v6551_v37, %v5374_v40  ;;  %s5232_s25 = scalar_lea.hbm %s9542_s2, %s6846_s21 }
 0x2e9   : > { %4380 = vmatpush.bf16.msra.mxu3 %v5997_v3  ;;  %2624 = vrot.lane.b32.xlu1 %v8823_v35, %s7119_s20  ;;  %v2144_v2 = vrot.slane %v8862_v63, 4  ;;  %v2241_v10 = vrot.slane %v8864_v6, 4  ;;  %v2127_v51 = vpop.permute.xlu0 %2126  ;;  %v6768_v14 = vld [vmem:[#allocation2 + $0x8f8] sm:$0xf0]  ;;  %v6222_v3 = vld [vmem:[#allocation2 + $0x8fc] sm:$0xf0] }
 0x2ea   : > { %3640 = vmatpush.bf16.msrb.mxu1 %v5437_v49  ;;  %3668 = vmatpush.bf16.msrb.mxu0 %v5441_v11  ;;  %v2143_v34 = vrot.slane %v2127_v51, 4  ;;  %v6764_v11 = vld [vmem:[#allocation2 + $0x8ac] sm:$0xf]  ;;  %v6692_v7 = vld [vmem:[#allocation2 + $0x2c4] sm:$0xf]  ;;  %v6221_v18 = vor.u32 %v6768_v14, %v6220_v30 }
 0x2eb   : > { %4408 = vmatpush.bf16.msra.mxu2 %v6001_v47  ;;  %2526 = vrot.lane.b32.xlu0 %v8823_v35, %s7120_s16  ;;  %v2256_v49 = vsel %vm283_vm0, %v2240_v27, %v2241_v10  ;;  %v5932_v27 = vld [vmem:[#allocation2 + $0x2c0] sm:$0xf]  ;;  %v5937_v55 = vor.u32 %v6692_v7, %v5934_v19  ;;  %v2692_v5 = vld [vmem:[%s7244_s28 + $0x64] sm:$0xf]  ;;  %v6225_v45 = vor.u32 %v6764_v11, %v6222_v3  ;;  %v6680_v30 = vld [vmem:[#allocation2 + $0x1c0] sm:$0xf0] }
 0x2ec   : > { %v2257_v59 = vsel %vm2248_vm8, %v8728_v21, %v2256_v49  ;;  %v2158_v8 = vsel %vm283_vm0, %v2142_v50, %v2143_v34  ;;  %v2160_v36 = vsel %vm283_vm0, %v2143_v34, %v2144_v2  ;;  %v5933_v47 = vor.u32 %v6696_v43, %v5932_v27  ;;  %v6688_v50 = vld [vmem:[#allocation2 + $0x268] sm:$0xf0]  ;;  %v6188_v33 = vld [vmem:[#allocation2 + $0x800] sm:$0xf]  ;;  %v6760_v61 = vld [vmem:[#allocation2 + $0x850] sm:$0xf0] }
 0x2ed   : > { %4381 = vmatpush.bf16.msra.mxu3 %v5965_v12  ;;  %2283 = vst [vmem:[#allocation2 + $0x704] sm:$0xff] %v2257_v59  ;;  %v2159_v57 = vsel %vm2150_vm9, %v8583_v39, %v2158_v8  ;;  %v2161_v21 = vsel %vm2150_vm9, %v2127_v51, %v2160_v36  ;;  %v5900_v51 = vld [vmem:[#allocation2 + $0x218] sm:$0xf]  ;;  %v6684_v40 = vld [vmem:[#allocation2 + $0x21c] sm:$0xf]  ;;  %v6189_v19 = vor.u32 %v6760_v61, %v6188_v33 }
 0x2ee   : > { %3641 = vmatpush.bf16.msrb.mxu1 %v5405_v25  ;;  %3669 = vmatpush.bf16.msrb.mxu0 %v5409_v44  ;;  %2185 = vst [vmem:[#allocation2 + $0x6b0] sm:$0xff] %v2159_v57  ;;  %v5902_v25 = vld [vmem:[#allocation2 + $0x26c] sm:$0xf0]  ;;  %v6756_v44 = vld [vmem:[#allocation2 + $0x804] sm:$0xf] }
 0x2ef   : > { %4409 = vmatpush.bf16.msra.mxu2 %v5969_v16  ;;  %2186 = vst [vmem:[#allocation2 + $0x6b8] sm:$0xff] %v2161_v21  ;;  %v6190_v12 = vld [vmem:[#allocation2 + $0x854] sm:$0xf0]  ;;  %v5901_v16 = vor.u32 %v6688_v50, %v5900_v51  ;;  %v5905_v49 = vor.u32 %v6684_v40, %v5902_v25  ;;  %v5870_v36 = vld [vmem:[#allocation2 + $0x1c4] sm:$0xf0] }
 0x2f0   : > { %v8889_v39 = vpop.permute.xlu2 %2030  ;;  %v8891_v37 = vpop.permute.xlu1 %1930  ;;  %2724 = vrot.lane.b32.xlu2 %v2692_v5, %s7118_s27  ;;  %v6193_v8 = vor.u32 %v6756_v44, %v6190_v12  ;;  %v6752_v27 = vld [vmem:[#allocation2 + $0x7a8] sm:$0xf0]  ;;  %v6748_v57 = vld [vmem:[#allocation2 + $0x75c] sm:$0xf]  ;;  %v6158_v21 = vld [vmem:[#allocation2 + $0x7ac] sm:$0xf0] }
 0x2f1   : > { %4382 = vmatpush.bf16.msra.mxu3 %v5933_v47  ;;  %v2046_v58 = vrot.slane %v8889_v39, 4  ;;  %v1947_v13 = vrot.slane %v8891_v37, 4  ;;  %v8896_v34 = vpop.permute.xlu0 %2618  ;;  %2428 = vrot.lane.b32.xlu1 %v8823_v35, %s7123_s6  ;;  %v6676_v47 = vld [vmem:[#allocation2 + $0x174] sm:$0xf]  ;;  %v5836_v33 = vld [vmem:[#allocation2 + $0xc8] sm:$0xf] }
 0x2f2   : > { %3642 = vmatpush.bf16.msrb.mxu1 %v5373_v38  ;;  %3670 = vmatpush.bf16.msrb.mxu0 %v5377_v15  ;;  %v2634_v43 = vrot.slane %v8896_v34, 4  ;;  %v6156_v38 = vld [vmem:[#allocation2 + $0x758] sm:$0xf]  ;;  %v5873_v7 = vor.u32 %v6676_v47, %v5870_v36  ;;  %v6660_v36 = vld [vmem:[#allocation2 + $0x24] sm:$0xf] }
 0x2f3   : > { %4410 = vmatpush.bf16.msra.mxu2 %v5937_v55  ;;  %2330 = vrot.lane.b32.xlu0 %v8823_v35, %s7121_s29  ;;  %v2062_v14 = vsel %vm283_vm0, %v2045_v62, %v2046_v58  ;;  %v1962_v59 = vsel %vm283_vm0, %v1946_v56, %v1947_v13  ;;  %v5868_v62 = vld [vmem:[#allocation2 + $0x170] sm:$0xf]  ;;  %v6157_v50 = vor.u32 %v6752_v27, %v6156_v38  ;;  %v2496_v55 = vld [vmem:[%s7244_s28 + $0x64] sm:$0xf] }
 0x2f4   : > { %v2063_v11 = vsel %vm2052_vm11, %v8791_v4, %v2062_v14  ;;  %v1963_v3 = vsel %vm1954_vm10, %v8722_v28, %v1962_v59  ;;  %v2650_v56 = vsel %vm283_vm0, %v2633_v23, %v2634_v43  ;;  %v5869_v4 = vor.u32 %v6680_v30, %v5868_v62  ;;  %v6672_v28 = vld [vmem:[#allocation2 + $0x118] sm:$0xf0]  ;;  %v6744_v25 = vld [vmem:[#allocation2 + $0x700] sm:$0xf0]  ;;  %v6126_v51 = vld [vmem:[#allocation2 + $0x704] sm:$0xf0] }
 0x2f5   : > { %4383 = vmatpush.bf16.msra.mxu3 %v5901_v16  ;;  %3643 = vmatmul.bf16.vlgmr.msrb.gmra.mxu1 %v8443_v52  ;;  %2088 = vst [vmem:[#allocation2 + $0x664] sm:$0xff] %v2063_v11  ;;  %v2651_v15 = vsel %vm2640_vm6, %v8793_v9, %v2650_v56  ;;  %v6161_v23 = vor.u32 %v6748_v57, %v6158_v21  ;;  %v6124_v5 = vld [vmem:[#allocation2 + $0x6b0] sm:$0xf]  ;;  %v6740_v61 = vld [vmem:[#allocation2 + $0x6b4] sm:$0xf] }
 0x2f6   : > { %4395 = vmatpush.bf16.msra.mxu1 %v6221_v18  ;;  %4423 = vmatpush.bf16.msra.mxu0 %v6225_v45  ;;  %1989 = vst [vmem:[#allocation2 + $0x608] sm:$0xff] %v1963_v3  ;;  %v5838_v18 = vld [vmem:[#allocation2 + $0x11c] sm:$0xf0]  ;;  %v5837_v40 = vor.u32 %v6672_v28, %v5836_v33  ;;  %v6125_v59 = vor.u32 %v6744_v25, %v6124_v5  ;;  %v5806_v3 = vld [vmem:[#allocation2 + $0x74] sm:$0xf0] }
 0x2f7   : > { %4411 = vmatpush.bf16.msra.mxu2 %v5905_v49  ;;  %3671 = vmatmul.bf16.vlgmr.msrb.gmra.mxu0 %v8443_v52  ;;  %2676 = vst [vmem:[#allocation2 + $0x85c] sm:$0xff] %v2651_v15  ;;  %v6668_v49 = vld [vmem:[#allocation2 + $0xcc] sm:$0xf]  ;;  %v6129_v11 = vor.u32 %v6740_v61, %v6126_v51  ;;  %v6228_v56 = vld [vmem:[#allocation2 + $0x8b0] sm:$0xf] }
 0x2f8   : > { %v8927_v45 = vpop.permute.xlu2 %2718  ;;  %v8929_v9 = vpop.permute.xlu1 %2324  ;;  %2528 = vrot.lane.b32.xlu2 %v2496_v55, %s7120_s16  ;;  %v5841_v14 = vor.u32 %v6668_v49, %v5838_v18  ;;  %v6769_v62 = vld [vmem:[#allocation2 + $0x900] sm:$0xf0]  ;;  %v6765_v15 = vld [vmem:[#allocation2 + $0x8b4] sm:$0xf]  ;;  %v6094_v55 = vld [vmem:[#allocation2 + $0x65c] sm:$0xf0] }
 0x2f9   : > { %4384 = vmatpush.bf16.msra.mxu3 %v5869_v4  ;;  %v2733_v44 = vrot.slane %v8927_v45, 4  ;;  %v2340_v12 = vrot.slane %v8929_v9, 4  ;;  %v8934_v16 = vpop.permute.xlu0 %1637  ;;  %2232 = vrot.lane.b32.xlu1 %v8823_v35, %s7124_s7  ;;  %v2594_v18 = vld [vmem:[%s7244_s28 + $0x64] sm:$0xf]  ;;  %s5219_s16 = scalar_lea.sflag [#allocation5], %s7240_s24 }
 0x2fa   : > { %4396 = vmatpush.bf16.msra.mxu1 %v6189_v19  ;;  %4424 = vmatpush.bf16.msra.mxu0 %v6193_v8  ;;  %v5804_v19 = vld [vmem:[#allocation2 + $0x20] sm:$0xf]  ;;  %v1652_v30 = vrot.slane %v8934_v16, 4  ;;  %v6664_v8 = vld [vmem:[#allocation2 + $0x70] sm:$0xf0] }
 0x2fb   : > { %4412 = vmatpush.bf16.msra.mxu2 %v5873_v7  ;;  %2134 = vrot.lane.b32.xlu0 %v8823_v35, %s7122_s30  ;;  %v2750_v38 = vsel %vm283_vm0, %v2732_v20, %v2733_v44  ;;  %v2356_v27 = vsel %vm283_vm0, %v2339_v22, %v2340_v12  ;;  %v6230_v22 = vld [vmem:[#allocation2 + $0x904] sm:$0xf0]  ;;  %v5805_v47 = vor.u32 %v6664_v8, %v5804_v19  ;;  %v6757_v8 = vld [vmem:[#allocation2 + $0x80c] sm:$0xf] }
 0x2fc   : > { %v2751_v57 = vsel %vm2738_vm3, %v8720_v32, %v2750_v38  ;;  %v2357_v21 = vsel %vm2346_vm5, %v8834_v24, %v2356_v27  ;;  %v1669_v20 = vsel %vm283_vm0, %v1651_v0, %v1652_v30  ;;  %v5809_v7 = vor.u32 %v6660_v36, %v5806_v3  ;;  %v6196_v19 = vld [vmem:[#allocation2 + $0x808] sm:$0xf]  ;;  %v6753_v3 = vld [vmem:[#allocation2 + $0x7b0] sm:$0xf0] }
 0x2fd   : > { %4385 = vmatpush.bf16.msra.mxu3 %v5837_v40  ;;  %2775 = vst [vmem:[#allocation2 + $0x8b8] sm:$0xff] %v2751_v57  ;;  %v1670_v4 = vsel %vm1657_vm1, %v8683_v31, %v1669_v20  ;;  %v6092_v28 = vld [vmem:[#allocation2 + $0x608] sm:$0xf]  ;;  %v6732_v32 = vld [vmem:[#allocation2 + $0x60c] sm:$0xf]  ;;  %v6229_v24 = vor.u32 %v6769_v62, %v6228_v56  ;;  %v6233_v0 = vor.u32 %v6765_v15, %v6230_v22 }
 0x2fe   : > { %4397 = vmatpush.bf16.msra.mxu1 %v6157_v50  ;;  %4425 = vmatpush.bf16.msra.mxu0 %v6161_v23  ;;  %2382 = vst [vmem:[#allocation2 + $0x760] sm:$0xff] %v2357_v21  ;;  %v6736_v50 = vld [vmem:[#allocation2 + $0x658] sm:$0xf0]  ;;  %v6097_v5 = vor.u32 %v6732_v32, %v6094_v55  ;;  %v6198_v61 = vld [vmem:[#allocation2 + $0x85c] sm:$0xf0] }
 0x2ff   : > { %4413 = vmatpush.bf16.msra.mxu2 %v5841_v14  ;;  %1695 = vst [vmem:[#allocation2 + $0x51c] sm:$0xff] %v1670_v4  ;;  %v6093_v23 = vor.u32 %v6736_v50, %v6092_v28  ;;  %v6761_v25 = vld [vmem:[#allocation2 + $0x858] sm:$0xf0]  ;;  %v6201_v27 = vor.u32 %v6757_v8, %v6198_v61  ;;  %v6166_v56 = vld [vmem:[#allocation2 + $0x7b4] sm:$0xf0] }
 0x300   : > { %v8961_v33 = vpop.permute.xlu2 %1639  ;;  %v8963_v31 = vpop.permute.xlu1 %1831  ;;  %2036 = vrot.lane.b32.xlu2 %v8823_v35, %s7125_s8  ;;  %v2300_v21 = vld [vmem:[%s7244_s28 + $0x64] sm:$0xf] }
 0x301   : > { %4386 = vmatpush.bf16.msra.mxu3 %v5805_v47  ;;  %v1653_v51 = vrot.slane %v8961_v33, 4  ;;  %v1848_v40 = vrot.slane %v8963_v31, 4  ;;  %v8969_v49 = vpop.permute.xlu0 %1732  ;;  %1938 = vrot.lane.b32.xlu1 %v8823_v35, %s7126_s17  ;;  %v2202_v50 = vld [vmem:[%s7244_s28 + $0x64] sm:$0xf] }
 0x302   : > { %4398 = vmatpush.bf16.msra.mxu1 %v6125_v59  ;;  %4426 = vmatpush.bf16.msra.mxu0 %v6129_v11  ;;  %v1749_v14 = vrot.slane %v8969_v49, 4  ;;  %v6197_v59 = vor.u32 %v6761_v25, %v6196_v19  ;;  %v6721_v55 = vld [vmem:[#allocation2 + $0x510] sm:$0xf0]  ;;  %v6038_v19 = vld [vmem:[#allocation2 + $0x514] sm:$0xf0] }
 0x303   : > { %4414 = vmatpush.bf16.msra.mxu2 %v5809_v7  ;;  %2626 = vrot.lane.b32.xlu0 %v2594_v18, %s7119_s20  ;;  %v1671_v36 = vsel %vm283_vm0, %v1652_v30, %v1653_v51  ;;  %v1863_v38 = vsel %vm283_vm0, %v1847_v60, %v1848_v40  ;;  %s5235_s20 = sshll.u32 %s5232_s25, 4  ;;  %s5236_s20 = int_to_ptr.hbm [resolvable:$true] %s5235_s20 }
 0x304   : > { %v1672_v35 = vsel %vm1657_vm1, %v8934_v16, %v1671_v36  ;;  %v1864_v11 = vsel %vm1855_vm12, %v8760_v17, %v1863_v38  ;;  %v1764_v30 = vsel %vm283_vm0, %v1748_v41, %v1749_v14  ;;  %4387 = vmatmul.bf16.vlgmr.msra.gmra.mxu3 %v8443_v52  ;;  %v2398_v41 = vld [vmem:[%s7244_s28 + $0x64] sm:$0xf]  ;;  %v6717_v38 = vld [vmem:[#allocation2 + $0x4c4] sm:$0xf]  ;;  %s7026_s12 = sshra.s32 %s5236_s20, 4  ;;  %s7027_s12 = int_to_ptr.hbm [resolvable:$true] %s7026_s12 }
 0x305   : > { %4451 = vmatpush.bf16.msrb.mxu3 %v6229_v24  ;;  %1696 = vst [vmem:[#allocation2 + $0x524] sm:$0xff] %v1672_v35  ;;  %v1765_v60 = vsel %vm1756_vm13, %v8765_v42, %v1764_v30  ;;  %v6164_v16 = vld [vmem:[#allocation2 + $0x760] sm:$0xf]  ;;  %v6749_v17 = vld [vmem:[#allocation2 + $0x764] sm:$0xf]  ;;  %v6041_v35 = vor.u32 %v6717_v38, %v6038_v19  ;;  %p7033_p10 = scmp.lt.s32.totalorder %s7027_s12, %s9542_s2 }
 0x306   : > { %4399 = vmatpush.bf16.msra.mxu1 %v6093_v23  ;;  %4427 = vmatpush.bf16.msra.mxu0 %v6097_v5  ;;  %1891 = vst [vmem:[#allocation2 + $0x5b4] sm:$0xff] %v1864_v11  ;;  %v6165_v62 = vor.u32 %v6753_v3, %v6164_v16  ;;  %v6169_v57 = vor.u32 %v6749_v17, %v6166_v56  ;;  %v2104_v5 = vld [vmem:[%s7244_s28 + $0x64] sm:$0xf]  ;;  %v6713_v11 = vld [vmem:[#allocation2 + $0x468] sm:$0xf0] }
 0x307   : > { %4479 = vmatpush.bf16.msrb.mxu2 %v6233_v0  ;;  %1792 = vst [vmem:[#allocation2 + $0x560] sm:$0xff] %v1765_v60  ;;  %v6006_v3 = vld [vmem:[#allocation2 + $0x46c] sm:$0xf0]  ;;  %v6004_v60 = vld [vmem:[#allocation2 + $0x418] sm:$0xf] }
 0x308   : > { %4415 = vmatmul.bf16.vlgmr.msra.gmra.mxu2 %v8443_v52  ;;  %v8998_v20 = vpop.permute.xlu1 %1932  ;;  %1740 = vrot.lane.b32.xlu2 %v8714_v46, %s7127_s15  ;;  %v9002_v42 = vpop.permute.xlu2 %2720  ;;  %v6709_v16 = vld [vmem:[#allocation2 + $0x41c] sm:$0xf]  ;;  %v6705_v17 = vld [vmem:[#allocation2 + $0x3c0] sm:$0xf0] }
 0x309   : > { %4452 = vmatpush.bf16.msrb.mxu3 %v6197_v59  ;;  %v1948_v15 = vrot.slane %v8998_v20, 4  ;;  %v9005_v22 = vpop.permute.xlu0 %2226  ;;  %2430 = vrot.lane.b32.xlu1 %v2398_v41, %s7123_s6  ;;  %v2734_v4 = vrot.slane %v9002_v42, 4  ;;  %v6036_v59 = vld [vmem:[#allocation2 + $0x4c0] sm:$0xf]  ;;  %v6009_v41 = vor.u32 %v6709_v16, %v6006_v3  ;;  %v6737_v38 = vld [vmem:[#allocation2 + $0x660] sm:$0xf0] }
 0x30a   : > { %v2242_v47 = vrot.slane %v9005_v22, 4  ;;  %v6037_v36 = vor.u32 %v6721_v55, %v6036_v59  ;;  %v5974_v55 = vld [vmem:[#allocation2 + $0x3c4] sm:$0xf0] }
 0x30b   : > { %4480 = vmatpush.bf16.msrb.mxu2 %v6201_v27  ;;  %2332 = vrot.lane.b32.xlu0 %v2300_v21, %s7121_s29  ;;  %v1964_v28 = vsel %vm283_vm0, %v1947_v13, %v1948_v15  ;;  %v2752_v32 = vsel %vm283_vm0, %v2733_v44, %v2734_v4  ;;  %v6102_v3 = vld [vmem:[#allocation2 + $0x664] sm:$0xf0]  ;;  %s7028_s29 = scalar_lea.hbm %s7027_s12, 336 }
 0x30c   : > { %v1965_v7 = vsel %vm1954_vm10, %v8891_v37, %v1964_v28  ;;  %v2258_v24 = vsel %vm283_vm0, %v2241_v10, %v2242_v47  ;;  %v2753_v13 = vsel %vm2738_vm3, %v8927_v45, %v2752_v32  ;;  %v6697_v28 = vld [vmem:[#allocation2 + $0x318] sm:$0xf0]  ;;  %p7029_p1 = scmp.ne.s32.totalorder %s7027_s12, %s7028_s29 }
 0x30d   : > { %4453 = vmatpush.bf16.msrb.mxu3 %v6165_v62  ;;  %1990 = vst [vmem:[#allocation2 + $0x610] sm:$0xff] %v1965_v7  ;;  %v2259_v0 = vsel %vm2248_vm8, %v8864_v6, %v2258_v24  ;;  %v6728_v18 = vld [vmem:[#allocation2 + $0x5b0] sm:$0xf0]  ;;  %v6062_v44 = vld [vmem:[#allocation2 + $0x5b4] sm:$0xf0] }
 0x30e   : > { %2776 = vst [vmem:[#allocation2 + $0x8c0] sm:$0xff] %v2753_v13  ;;  %v6060_v23 = vld [vmem:[#allocation2 + $0x560] sm:$0xf]  ;;  %v6724_v37 = vld [vmem:[#allocation2 + $0x564] sm:$0xf]  ;;  %p7030_p3 = pnand %p7029_p1, %p7218_p4 }
 0x30f   : > { %4481 = vmatpush.bf16.msrb.mxu2 %v6169_v57  ;;  %2284 = vst [vmem:[#allocation2 + $0x70c] sm:$0xff] %v2259_v0  ;;  %v6061_v25 = vor.u32 %v6728_v18, %v6060_v23  ;;  %v6065_v61 = vor.u32 %v6724_v37, %v6062_v44  ;;  %v6132_v62 = vld [vmem:[#allocation2 + $0x6b8] sm:$0xf]  ;;  %v6741_v57 = vld [vmem:[#allocation2 + $0x6bc] sm:$0xf] }
 0x310   : > { %v9034_v10 = vpop.permute.xlu1 %1833  ;;  %2234 = vrot.lane.b32.xlu2 %v2202_v50, %s7124_s7  ;;  %v2006_v32 = vld [vmem:[%s7244_s28 + $0x64] sm:$0xf]  ;;  %v5972_v13 = vld [vmem:[#allocation2 + $0x370] sm:$0xf]  ;;  %v5942_v0 = vld [vmem:[#allocation2 + $0x31c] sm:$0xf0]  ;;  %p7031_p8 = pneg %p7030_p3 }
 0x311   : > { %4400 = vmatpush.bf16.msra.mxu1 %v6061_v25  ;;  %v9037_v45 = vpop.permute.xlu2 %2524  ;;  %v1849_v6 = vrot.slane %v9034_v10, 4  ;;  %v9040_v8 = vpop.permute.xlu0 %1734  ;;  %2136 = vrot.lane.b32.xlu1 %v2104_v5, %s7122_s30  ;;  %v1908_v7 = vld [vmem:[%s7244_s28 + $0x64] sm:$0xf]  ;;  %v5973_v37 = vor.u32 %v6705_v17, %v5972_v13  ;;  %v6681_v13 = vld [vmem:[#allocation2 + $0x1c8] sm:$0xf0]  ;;  %s6845_s28 = smul.u32 336, %s7240_s24 }
 0x312   : > { %v1750_v27 = vrot.slane %v9040_v8, 4  ;;  %4428 = vmatpush.bf16.msra.mxu0 %v6065_v61  ;;  %v2538_v18 = vrot.slane %v9037_v45, 4  ;;  %v6701_v5 = vld [vmem:[#allocation2 + $0x374] sm:$0xf]  ;;  %s7032_s7 = scalar_lea.hbm %s9542_s2, 672 }
 0x313   : > { %1839 = vrot.lane.b32.xlu0 %v8714_v46, %s7128_s18  ;;  %v1865_v30 = vsel %vm283_vm0, %v1848_v40, %v1849_v6  ;;  %s9189_s19 = scalar_lea.vmem [#allocation8], %s6845_s28  ;;  %p7034_p11 = scmp.lt.s32.totalorder %s7032_s7, %s7028_s29 }
 0x314   : > { %v1866_v56 = vsel %vm1855_vm12, %v8963_v31, %v1865_v30  ;;  %v1766_v46 = vsel %vm283_vm0, %v1749_v14, %v1750_v27  ;;  %6250 = vmatmul.msk.bf16.vlgmr.msra.gmra.mxu1 %vm3463_vm14, %v8447_v53  ;;  %v6005_v31 = vor.u32 %v6713_v11, %v6004_v60  ;;  %v6733_v25 = vld [vmem:[#allocation2 + $0x614] sm:$0xf]  ;;  %s5233_s27 = sshll.u32 %s9189_s19, 4  ;;  %s5234_s27 = int_to_ptr.vmem [resolvable:$true] %s5233_s27 }
 0x315   : > { %4435 = vmatpush.bf16.msrb.mxu1 %v6037_v36  ;;  %1892 = vst [vmem:[#allocation2 + $0x5bc] sm:$0xff] %v1866_v56  ;;  %v1767_v40 = vsel %vm1756_vm13, %v8969_v49, %v1766_v46  ;;  %6251 = vmatmul.msk.bf16.vlgmr.msra.gmra.mxu0 %vm3463_vm14, %v8447_v53  ;;  %v6100_v49 = vld [vmem:[#allocation2 + $0x610] sm:$0xf]  ;;  %v5977_v36 = vor.u32 %v6701_v5, %v5974_v55  ;;  %v6693_v46 = vld [vmem:[#allocation2 + $0x2cc] sm:$0xf]  ;;  %p7035_p12 = por %p7034_p11, %p7033_p10 }
 0x316   : > { %4463 = vmatpush.bf16.msrb.mxu0 %v6041_v35  ;;  %1793 = vst [vmem:[#allocation2 + $0x568] sm:$0xff] %v1767_v40  ;;  %v6745_v21 = vld [vmem:[#allocation2 + $0x708] sm:$0xf0]  ;;  %v6134_v14 = vld [vmem:[#allocation2 + $0x70c] sm:$0xf0]  ;;  %v6101_v30 = vor.u32 %v6737_v38, %v6100_v49  ;;  %v6105_v17 = vor.u32 %v6733_v25, %v6102_v3  ;;  %v5945_v40 = vor.u32 %v6693_v46, %v5942_v0 }
 0x317   : > { %v6133_v24 = vor.u32 %v6745_v21, %v6132_v62  ;;  %v6137_v50 = vor.u32 %v6741_v57, %v6134_v14  ;;  %v5940_v35 = vld [vmem:[#allocation2 + $0x2c8] sm:$0xf]  ;;  %v6046_v55 = vld [vmem:[#allocation2 + $0x51c] sm:$0xf0]  ;;  %v6685_v49 = vld [vmem:[#allocation2 + $0x224] sm:$0xf]  ;;  %p7036_p13 = pnand %p7035_p12, %p7031_p8 }
 0x318   : > { %v9069_v23 = vpop.permute.xlu1 %2620  ;;  %v5941_v56 = vor.u32 %v6697_v28, %v5940_v35  ;;  %1742 = vrot.lane.b32.xlu2 %v8856_v29, %s7127_s15  ;;  %v6044_v0 = vld [vmem:[#allocation2 + $0x4c8] sm:$0xf]  ;;  %v6718_v25 = vld [vmem:[#allocation2 + $0x4cc] sm:$0xf]  ;;  %v5876_v3 = vld [vmem:[#allocation2 + $0x178] sm:$0xf] }
 0x319   : > { %4436 = vmatpush.bf16.msrb.mxu1 %v6005_v31  ;;  %4454 = vmatpush.bf16.msrb.mxu3 %v6133_v24  ;;  %v9067_v44 = vpop.permute.xlu2 %2032  ;;  %v2635_v19 = vrot.slane %v9069_v23, 4  ;;  %v2523_v59 = vpop.permute.xlu0 %2522  ;;  %v6722_v24 = vld [vmem:[#allocation2 + $0x518] sm:$0xf0] }
 0x31a   : > { %4464 = vmatpush.bf16.msrb.mxu0 %v6009_v41  ;;  %4482 = vmatpush.bf16.msrb.mxu2 %v6137_v50  ;;  %v2047_v61 = vrot.slane %v9067_v44, 4  ;;  %v2537_v11 = vrot.slane %v2523_v59, 4  ;;  %v5910_v50 = vld [vmem:[#allocation2 + $0x274] sm:$0xf0]  ;;  %v6045_v5 = vor.u32 %v6722_v24, %v6044_v0  ;;  %v5844_v24 = vld [vmem:[#allocation2 + $0xd0] sm:$0xf] }
 0x31b   : > { %2038 = vrot.lane.b32.xlu1 %v2006_v32, %s7125_s8  ;;  %1940 = vrot.lane.b32.xlu0 %v1908_v7, %s7126_s17  ;;  %v2652_v16 = vsel %vm283_vm0, %v2634_v43, %v2635_v19  ;;  %v6689_v7 = vld [vmem:[#allocation2 + $0x270] sm:$0xf0]  ;;  %v6661_v0 = vld [vmem:[#allocation2 + $0x2c] sm:$0xf] }
 0x31c   : > { %v2064_v60 = vsel %vm283_vm0, %v2046_v58, %v2047_v61  ;;  %v6729_v31 = vld [vmem:[#allocation2 + $0x5b8] sm:$0xf0]  ;;  %v6070_v62 = vld [vmem:[#allocation2 + $0x5bc] sm:$0xf0]  ;;  %v2653_v41 = vsel %vm2640_vm6, %v8896_v34, %v2652_v16  ;;  %v2554_v58 = vsel %vm283_vm0, %v2536_v54, %v2537_v11  ;;  %v2556_v21 = vsel %vm283_vm0, %v2537_v11, %v2538_v18 }
 0x31d   : > { %4437 = vmatpush.bf16.msrb.mxu1 %v5973_v37  ;;  %v2065_v57 = vsel %vm2052_vm11, %v8889_v39, %v2064_v60  ;;  %4455 = vmatpush.bf16.msrb.mxu3 %v6101_v30  ;;  %v6068_v43 = vld [vmem:[#allocation2 + $0x568] sm:$0xf]  ;;  %v6725_v14 = vld [vmem:[#allocation2 + $0x56c] sm:$0xf]  ;;  %v2555_v28 = vsel %vm2542_vm4, %v8758_v48, %v2554_v58  ;;  %v2557_v39 = vsel %vm2542_vm4, %v2523_v59, %v2556_v21  ;;  %v5908_v34 = vld [vmem:[#allocation2 + $0x220] sm:$0xf] }
 0x31e   : > { %4465 = vmatpush.bf16.msrb.mxu0 %v5977_v36  ;;  %2089 = vst [vmem:[#allocation2 + $0x66c] sm:$0xff] %v2065_v57  ;;  %4483 = vmatpush.bf16.msrb.mxu2 %v6105_v17  ;;  %v6069_v32 = vor.u32 %v6729_v31, %v6068_v43  ;;  %v6073_v54 = vor.u32 %v6725_v14, %v6070_v62  ;;  %v6714_v59 = vld [vmem:[#allocation2 + $0x470] sm:$0xf0]  ;;  %v6012_v16 = vld [vmem:[#allocation2 + $0x420] sm:$0xf] }
 0x31f   : > { %2677 = vst [vmem:[#allocation2 + $0x864] sm:$0xff] %v2653_v41  ;;  %v5909_v37 = vor.u32 %v6689_v7, %v5908_v34  ;;  %v5913_v11 = vor.u32 %v6685_v49, %v5910_v50  ;;  %v6049_v30 = vor.u32 %v6718_v25, %v6046_v55  ;;  %v6014_v17 = vld [vmem:[#allocation2 + $0x474] sm:$0xf0]  ;;  %v6013_v31 = vor.u32 %v6714_v59, %v6012_v16  ;;  %v6677_v58 = vld [vmem:[#allocation2 + $0x17c] sm:$0xf] }
 0x320   : > { %2579 = vst [vmem:[#allocation2 + $0x810] sm:$0xff] %v2555_v28  ;;  %v6710_v21 = vld [vmem:[#allocation2 + $0x424] sm:$0xf]  ;;  %v5812_v34 = vld [vmem:[#allocation2 + $0x28] sm:$0xf] }
 0x321   : > { %4438 = vmatpush.bf16.msrb.mxu1 %v5941_v56  ;;  %2580 = vst [vmem:[#allocation2 + $0x818] sm:$0xff] %v2557_v39  ;;  %4456 = vmatpush.bf16.msrb.mxu3 %v6069_v32  ;;  %v2425_v48 = vpop.permute.xlu1 %2424  ;;  %v9102_v36 = vpop.permute.xlu2 %2426  ;;  %v5878_v56 = vld [vmem:[#allocation2 + $0x1cc] sm:$0xf0]  ;;  %v6017_v14 = vor.u32 %v6710_v21, %v6014_v17  ;;  %v6673_v28 = vld [vmem:[#allocation2 + $0x120] sm:$0xf0] }
 0x322   : > { %4466 = vmatpush.bf16.msrb.mxu0 %v5945_v40  ;;  %4484 = vmatpush.bf16.msrb.mxu2 %v6073_v54  ;;  %v2439_v38 = vrot.slane %v2425_v48, 4  ;;  %v9104_v35 = vpop.permute.xlu0 %2326  ;;  %v2440_v46 = vrot.slane %v9102_v36, 4  ;;  %v5877_v40 = vor.u32 %v6681_v13, %v5876_v3  ;;  %v5881_v43 = vor.u32 %v6677_v58, %v5878_v56  ;;  %v6706_v39 = vld [vmem:[#allocation2 + $0x3c8] sm:$0xf0]  ;;  %v5982_v32 = vld [vmem:[#allocation2 + $0x3cc] sm:$0xf0] }
 0x323   : > { %1841 = vrot.lane.b32.xlu0 %v8856_v29, %s7128_s18  ;;  %v2341_v60 = vrot.slane %v9104_v35, 4  ;;  %v6665_v7 = vld [vmem:[#allocation2 + $0x78] sm:$0xf0]  ;;  %v5980_v54 = vld [vmem:[#allocation2 + $0x378] sm:$0xf]  ;;  %v5845_v55 = vor.u32 %v6673_v28, %v5844_v24 }
 0x324   : > { %v2456_v29 = vsel %vm283_vm0, %v2438_v26, %v2439_v38  ;;  %v2458_v57 = vsel %vm283_vm0, %v2439_v38, %v2440_v46  ;;  %6252 = vmatmul.msk.bf16.vlgmr.msrb.gmra.mxu3 %vm3463_vm14, %v8447_v53  ;;  %v5981_v13 = vor.u32 %v6706_v39, %v5980_v54  ;;  %v6702_v49 = vld [vmem:[#allocation2 + $0x37c] sm:$0xf]  ;;  %v5950_v16 = vld [vmem:[#allocation2 + $0x324] sm:$0xf0]  ;;  %v6770_v17 = vld [vmem:[#allocation2 + $0x908] sm:$0xf0] }
 0x325   : > { %4439 = vmatpush.bf16.msrb.mxu1 %v5909_v37  ;;  %4491 = vmatpush.bf16.msra.mxu3 %v6045_v5  ;;  %v2457_v62 = vsel %vm2444_vm7, %v8829_v1, %v2456_v29  ;;  %v2358_v41 = vsel %vm283_vm0, %v2340_v12, %v2341_v60  ;;  %v2459_v1 = vsel %vm2444_vm7, %v2425_v48, %v2458_v57  ;;  %v5846_v12 = vld [vmem:[#allocation2 + $0x124] sm:$0xf0]  ;;  %v5814_v48 = vld [vmem:[#allocation2 + $0x7c] sm:$0xf0]  ;;  %v6238_v57 = vld [vmem:[#allocation2 + $0x90c] sm:$0xf0] }
 0x326   : > { %4467 = vmatpush.bf16.msrb.mxu0 %v5913_v11  ;;  %4519 = vmatpush.bf16.msra.mxu2 %v6049_v30  ;;  %2481 = vst [vmem:[#allocation2 + $0x7bc] sm:$0xff] %v2457_v62  ;;  %v2359_v26 = vsel %vm2346_vm5, %v8929_v9, %v2358_v41  ;;  %v6669_v9 = vld [vmem:[#allocation2 + $0xd4] sm:$0xf]  ;;  %v5985_v38 = vor.u32 %v6702_v49, %v5982_v32  ;;  %v5948_v11 = vld [vmem:[#allocation2 + $0x2d0] sm:$0xf] }
 0x327   : > { %6253 = vmatmul.msk.bf16.vlgmr.msrb.gmra.mxu2 %vm3463_vm14, %v8447_v53  ;;  %2482 = vst [vmem:[#allocation2 + $0x7c4] sm:$0xff] %v2459_v1  ;;  %v5849_v59 = vor.u32 %v6669_v9, %v5846_v12  ;;  %v6698_v30 = vld [vmem:[#allocation2 + $0x320] sm:$0xf0]  ;;  %v6766_v62 = vld [vmem:[#allocation2 + $0x8bc] sm:$0xf] }
 0x328   : > { %2383 = vst [vmem:[#allocation2 + $0x768] sm:$0xff] %v2359_v26  ;;  %v5949_v1 = vor.u32 %v6698_v30, %v5948_v11  ;;  %v6694_v26 = vld [vmem:[#allocation2 + $0x2d4] sm:$0xf]  ;;  %v5916_v39 = vld [vmem:[#allocation2 + $0x228] sm:$0xf]  ;;  %v6241_v32 = vor.u32 %v6766_v62, %v6238_v57 }
 0x329   : > { %4440 = vmatpush.bf16.msrb.mxu1 %v5877_v40  ;;  %4492 = vmatpush.bf16.msra.mxu3 %v6013_v31  ;;  %v9128_v50 = vpop.permute.xlu1 %2228  ;;  %v9130_v37 = vpop.permute.xlu2 %2132  ;;  %v5813_v40 = vor.u32 %v6665_v7, %v5812_v34  ;;  %v6236_v31 = vld [vmem:[#allocation2 + $0x8b8] sm:$0xf]  ;;  %v5953_v28 = vor.u32 %v6694_v26, %v5950_v16  ;;  %v5918_v12 = vld [vmem:[#allocation2 + $0x27c] sm:$0xf0]  ;;  %v6762_v34 = vld [vmem:[#allocation2 + $0x860] sm:$0xf0] }
 0x32a   : > { %4468 = vmatpush.bf16.msrb.mxu0 %v5881_v43  ;;  %4520 = vmatpush.bf16.msra.mxu2 %v6017_v14  ;;  %v2243_v5 = vrot.slane %v9128_v50, 4  ;;  %v2131_v25 = vpop.permute.xlu0 %2130  ;;  %v2146_v3 = vrot.slane %v9130_v37, 4  ;;  %v5817_v14 = vor.u32 %v6661_v0, %v5814_v48  ;;  %v6206_v7 = vld [vmem:[#allocation2 + $0x864] sm:$0xf0]  ;;  %v6204_v24 = vld [vmem:[#allocation2 + $0x810] sm:$0xf] }
 0x32b   : > { %v2145_v56 = vrot.slane %v2131_v25, 4  ;;  %v6758_v54 = vld [vmem:[#allocation2 + $0x814] sm:$0xf]  ;;  %v6686_v9 = vld [vmem:[#allocation2 + $0x22c] sm:$0xf] }
 0x32c   : > { %v2260_v29 = vsel %vm283_vm0, %v2242_v47, %v2243_v5  ;;  %v6209_v16 = vor.u32 %v6758_v54, %v6206_v7  ;;  %v6666_v54 = vld [vmem:[#allocation2 + $0x80] sm:$0xf0] }
 0x32d   : > { %4441 = vmatpush.bf16.msrb.mxu1 %v5845_v55  ;;  %4493 = vmatpush.bf16.msra.mxu3 %v5981_v13  ;;  %v2261_v41 = vsel %vm2248_vm8, %v9005_v22, %v2260_v29  ;;  %v2162_v58 = vsel %vm283_vm0, %v2144_v2, %v2145_v56  ;;  %v2164_v21 = vsel %vm283_vm0, %v2145_v56, %v2146_v3  ;;  %v6690_v22 = vld [vmem:[#allocation2 + $0x278] sm:$0xf0]  ;;  %v6682_v13 = vld [vmem:[#allocation2 + $0x1d0] sm:$0xf0]  ;;  %v6174_v57 = vld [vmem:[#allocation2 + $0x7bc] sm:$0xf0] }
 0x32e   : > { %4469 = vmatpush.bf16.msrb.mxu0 %v5849_v59  ;;  %4521 = vmatpush.bf16.msra.mxu2 %v5985_v38  ;;  %2285 = vst [vmem:[#allocation2 + $0x714] sm:$0xff] %v2261_v41  ;;  %v2163_v47 = vsel %vm2150_vm9, %v8862_v63, %v2162_v58  ;;  %v2165_v43 = vsel %vm2150_vm9, %v2131_v25, %v2164_v21  ;;  %v5884_v59 = vld [vmem:[#allocation2 + $0x180] sm:$0xf]  ;;  %v5886_v38 = vld [vmem:[#allocation2 + $0x1d4] sm:$0xf0] }
 0x32f   : > { %2187 = vst [vmem:[#allocation2 + $0x6c0] sm:$0xff] %v2163_v47  ;;  %v6237_v2 = vor.u32 %v6770_v17, %v6236_v31  ;;  %v5917_v55 = vor.u32 %v6690_v22, %v5916_v39  ;;  %v5921_v25 = vor.u32 %v6686_v9, %v5918_v12  ;;  %v6205_v56 = vor.u32 %v6762_v34, %v6204_v24  ;;  %v6754_v17 = vld [vmem:[#allocation2 + $0x7b8] sm:$0xf0]  ;;  %v6172_v31 = vld [vmem:[#allocation2 + $0x768] sm:$0xf] }
 0x330   : > { %2188 = vst [vmem:[#allocation2 + $0x6c8] sm:$0xff] %v2165_v43  ;;  %v6750_v62 = vld [vmem:[#allocation2 + $0x76c] sm:$0xf]  ;;  %v6678_v21 = vld [vmem:[#allocation2 + $0x184] sm:$0xf] }
 0x331   : > { %4442 = vmatpush.bf16.msrb.mxu1 %v5813_v40  ;;  %4494 = vmatpush.bf16.msra.mxu3 %v5949_v1  ;;  %v9150_v63 = vpop.permute.xlu1 %1934  ;;  %v5885_v40 = vor.u32 %v6682_v13, %v5884_v59  ;;  %v5852_v47 = vld [vmem:[#allocation2 + $0xd8] sm:$0xf]  ;;  %v6674_v43 = vld [vmem:[#allocation2 + $0x128] sm:$0xf0]  ;;  %v5820_v22 = vld [vmem:[#allocation2 + $0x30] sm:$0xf] }
 0x332   : > { %4470 = vmatpush.bf16.msrb.mxu0 %v5817_v14  ;;  %4522 = vmatpush.bf16.msra.mxu2 %v5953_v28  ;;  %v9152_v49 = vpop.permute.xlu2 %2034  ;;  %v1949_v0 = vrot.slane %v9150_v63, 4  ;;  %v9155_v48 = vpop.permute.xlu0 %2622  ;;  %v6173_v14 = vor.u32 %v6754_v17, %v6172_v31  ;;  %v6177_v28 = vor.u32 %v6750_v62, %v6174_v57  ;;  %v6662_v12 = vld [vmem:[#allocation2 + $0x34] sm:$0xf]  ;;  %v5853_v7 = vor.u32 %v6674_v43, %v5852_v47  ;;  %v6670_v24 = vld [vmem:[#allocation2 + $0xdc] sm:$0xf] }
 0x333   : > { %v2048_v11 = vrot.slane %v9152_v49, 4  ;;  %v2636_v30 = vrot.slane %v9155_v48, 4  ;;  %v6244_v59 = vld [vmem:[#allocation2 + $0x8c0] sm:$0xf]  ;;  %v5821_v62 = vor.u32 %v6666_v54, %v5820_v22 }
 0x334   : > { %4443 = vmatmul.bf16.vlgmr.msrb.gmra.mxu1 %v8443_v52  ;;  %v1966_v29 = vsel %vm283_vm0, %v1948_v15, %v1949_v0 }
 0x335   : > { %4507 = vmatpush.bf16.msra.mxu1 %v6237_v2  ;;  %4495 = vmatpush.bf16.msra.mxu3 %v5917_v55  ;;  %v2066_v41 = vsel %vm283_vm0, %v2047_v61, %v2048_v11  ;;  %v1967_v58 = vsel %vm1954_vm10, %v8998_v20, %v1966_v29  ;;  %v2654_v15 = vsel %vm283_vm0, %v2635_v19, %v2636_v30  ;;  %v5854_v20 = vld [vmem:[#allocation2 + $0x12c] sm:$0xf0]  ;;  %v6746_v39 = vld [vmem:[#allocation2 + $0x710] sm:$0xf0]  ;;  %v6142_v19 = vld [vmem:[#allocation2 + $0x714] sm:$0xf0]  ;;  %v3504_v2 = vpop.f32.mrf.mxu2 }
 0x336   : > { %4535 = vmatpush.bf16.msra.mxu0 %v6241_v32  ;;  %4523 = vmatpush.bf16.msra.mxu2 %v5921_v25  ;;  %v2067_v1 = vsel %vm2052_vm11, %v9067_v44, %v2066_v41  ;;  %1991 = vst [vmem:[#allocation2 + $0x618] sm:$0xff] %v1967_v58  ;;  %v2655_v26 = vsel %vm2640_vm6, %v9069_v23, %v2654_v15  ;;  %v3518_v32 = vpop.f32.mrf.mxu3  ;;  %v6140_v44 = vld [vmem:[#allocation2 + $0x6c0] sm:$0xf]  ;;  %v6742_v34 = vld [vmem:[#allocation2 + $0x6c4] sm:$0xf] }
 0x337   : > { %4471 = vmatmul.bf16.vlgmr.msrb.gmra.mxu0 %v8443_v52  ;;  %v5889_v61 = vor.u32 %v6678_v21, %v5886_v38  ;;  %2090 = vst [vmem:[#allocation2 + $0x674] sm:$0xff] %v2067_v1  ;;  %v3519_v23 = vadd.f32 %v3518_v32, %v3504_v2  ;;  %v5822_v55 = vld [vmem:[#allocation2 + $0x84] sm:$0xf0]  ;;  %v5857_v25 = vor.u32 %v6670_v24, %v5854_v20  ;;  %v6771_v38 = vld [vmem:[#allocation2 + $0x910] sm:$0xf0] }
 0x338   : > { %2678 = vst [vmem:[#allocation2 + $0x86c] sm:$0xff] %v2655_v26  ;;  %v6141_v29 = vor.u32 %v6746_v39, %v6140_v44  ;;  %v5825_v57 = vor.u32 %v6662_v12, %v5822_v55  ;;  %v6767_v41 = vld [vmem:[#allocation2 + $0x8c4] sm:$0xf]  ;;  %v6246_v58 = vld [vmem:[#allocation2 + $0x914] sm:$0xf0]  ;;  %v6245_v1 = vor.u32 %v6771_v38, %v6244_v59  ;;  %v3476_v12 = vpop.f32.mrf.mxu0 }
 0x339   : > { %4508 = vmatpush.bf16.msra.mxu1 %v6205_v56  ;;  %4496 = vmatpush.bf16.msra.mxu3 %v5885_v40  ;;  %v9185_v13 = vpop.permute.xlu1 %2328  ;;  %3692 = vst [vmem:[%s9189_s19 + $0x8] sm:$0xff] %v3519_v23  ;;  %v6145_v40 = vor.u32 %v6742_v34, %v6142_v19  ;;  %v6249_v39 = vor.u32 %v6767_v41, %v6246_v58  ;;  %v6755_v41 = vld [vmem:[#allocation2 + $0x7c0] sm:$0xf0]  ;;  %v6182_v58 = vld [vmem:[#allocation2 + $0x7c4] sm:$0xf0] }
 0x33a   : > { %4536 = vmatpush.bf16.msra.mxu0 %v6209_v16  ;;  %4524 = vmatpush.bf16.msra.mxu2 %v5889_v61  ;;  %v9183_v9 = vpop.permute.xlu2 %2722  ;;  %v2342_v16 = vrot.slane %v9185_v13, 4  ;;  %v1642_v17 = vpop.permute.xlu0 %1641  ;;  %v6738_v61 = vld [vmem:[#allocation2 + $0x668] sm:$0xf0] }
 0x33b   : > { %v2735_v56 = vrot.slane %v9183_v9, 4  ;;  %v1654_v31 = vrot.slane %v1642_v17, 4 }
 0x33c   : > { %v2360_v21 = vsel %vm283_vm0, %v2341_v60, %v2342_v16 }
 0x33d   : > { %4509 = vmatpush.bf16.msra.mxu1 %v6173_v14  ;;  %4497 = vmatpush.bf16.msra.mxu3 %v5853_v7  ;;  %v2754_v15 = vsel %vm283_vm0, %v2734_v4, %v2735_v56  ;;  %v6108_v26 = vld [vmem:[#allocation2 + $0x618] sm:$0xf]  ;;  %v6734_v47 = vld [vmem:[#allocation2 + $0x61c] sm:$0xf]  ;;  %v2361_v20 = vsel %vm2346_vm5, %v9104_v35, %v2360_v21  ;;  %v1673_v4 = vsel %vm283_vm0, %v1653_v51, %v1654_v31  ;;  %v3490_v51 = vpop.f32.mrf.mxu1  ;;  %v3506_v55 = vpop.f32.mrf.mxu2 }
 0x33e   : > { %4537 = vmatpush.bf16.msra.mxu0 %v6177_v28  ;;  %4525 = vmatpush.bf16.msra.mxu2 %v5857_v25  ;;  %v2755_v43 = vsel %vm2738_vm3, %v9002_v42, %v2754_v15  ;;  %v6109_v14 = vor.u32 %v6738_v61, %v6108_v26  ;;  %v6110_v28 = vld [vmem:[#allocation2 + $0x66c] sm:$0xf0]  ;;  %v1674_v60 = vsel %vm1657_vm1, %v8961_v33, %v1673_v4  ;;  %v6212_v35 = vld [vmem:[#allocation2 + $0x818] sm:$0xf]  ;;  %v6759_v33 = vld [vmem:[#allocation2 + $0x81c] sm:$0xf]  ;;  %v3520_v59 = vpop.f32.mrf.mxu3 }
 0x33f   : > { %2777 = vst [vmem:[#allocation2 + $0x8c8] sm:$0xff] %v2755_v43  ;;  %v6113_v19 = vor.u32 %v6734_v47, %v6110_v28  ;;  %v6763_v22 = vld [vmem:[#allocation2 + $0x868] sm:$0xf0]  ;;  %v6214_v42 = vld [vmem:[#allocation2 + $0x86c] sm:$0xf0]  ;;  %v3491_v54 = vadd.f32 %v3490_v51, %v3476_v12  ;;  %v3521_v15 = vadd.f32 %v3520_v59, %v3506_v55 }
 0x340   : > { %2384 = vst [vmem:[#allocation2 + $0x770] sm:$0xff] %v2361_v20  ;;  %v6213_v44 = vor.u32 %v6763_v22, %v6212_v35  ;;  %v6217_v24 = vor.u32 %v6759_v33, %v6214_v42  ;;  %v6723_v22 = vld [vmem:[#allocation2 + $0x520] sm:$0xf0]  ;;  %v6054_v42 = vld [vmem:[#allocation2 + $0x524] sm:$0xf0] }
 0x341   : > { %4510 = vmatpush.bf16.msra.mxu1 %v6141_v29  ;;  %4498 = vmatpush.bf16.msra.mxu3 %v5821_v62  ;;  %1697 = vst [vmem:[#allocation2 + $0x52c] sm:$0xff] %v1674_v60  ;;  %v9213_v32 = vpop.permute.xlu1 %1835  ;;  %v6052_v33 = vld [vmem:[#allocation2 + $0x4d0] sm:$0xf]  ;;  %v6715_v55 = vld [vmem:[#allocation2 + $0x478] sm:$0xf0] }
 0x342   : > { %4538 = vmatpush.bf16.msra.mxu0 %v6145_v40  ;;  %4526 = vmatpush.bf16.msra.mxu2 %v5825_v57  ;;  %v1644_v2 = vpop.permute.xlu2 %1643  ;;  %v1850_v23 = vrot.slane %v9213_v32, 4  ;;  %v9217_v7 = vpop.permute.xlu0 %1736  ;;  %3691 = vst [vmem:[%s9189_s19] sm:$0xff] %v3491_v54 }
 0x343   : > { %v1655_v34 = vrot.slane %v1644_v2, 4  ;;  %v1751_v25 = vrot.slane %v9217_v7, 4  ;;  %3700 = vst [vmem:[%s9189_s19 + $0xb0] sm:$0xff] %v3521_v15 }
 0x344   : > { %4499 = vmatmul.bf16.vlgmr.msra.gmra.mxu3 %v8443_v52  ;;  %v1867_v40 = vsel %vm283_vm0, %v1849_v6, %v1850_v23 }
 0x345   : > { %4563 = vmatpush.bf16.msrb.mxu3 %v6245_v1  ;;  %4511 = vmatpush.bf16.msra.mxu1 %v6109_v14  ;;  %v1675_v38 = vsel %vm283_vm0, %v1654_v31, %v1655_v34  ;;  %v1677_v29 = vsel %vm1657_vm1, %v1644_v2, %v1655_v34  ;;  %v1868_v57 = vsel %vm1855_vm12, %v9034_v10, %v1867_v40  ;;  %v3478_v10 = vpop.f32.mrf.mxu0  ;;  %v3492_v61 = vpop.f32.mrf.mxu1  ;;  %v6719_v34 = vld [vmem:[#allocation2 + $0x4d4] sm:$0xf]  ;;  %v6020_v40 = vld [vmem:[#allocation2 + $0x428] sm:$0xf] }
 0x346   : > { %4591 = vmatpush.bf16.msrb.mxu2 %v6249_v39  ;;  %4539 = vmatpush.bf16.msra.mxu0 %v6113_v19  ;;  %v1676_v62 = vsel %vm1657_vm1, %v1642_v17, %v1675_v38  ;;  %1699 = vst.msk [vmem:[#allocation2 + $0x53c] sm:$0xf] %vm204_vm2, %v1677_v29  ;;  %v1768_v31 = vsel %vm283_vm0, %v1750_v27, %v1751_v25  ;;  %v6022_v38 = vld [vmem:[#allocation2 + $0x47c] sm:$0xf0] }
 0x347   : > { %4527 = vmatmul.bf16.vlgmr.msra.gmra.mxu2 %v8443_v52  ;;  %1698 = vst [vmem:[#allocation2 + $0x534] sm:$0xff] %v1676_v62  ;;  %v1769_v6 = vsel %vm1756_vm13, %v9040_v8, %v1768_v31  ;;  %v6180_v17 = vld [vmem:[#allocation2 + $0x770] sm:$0xf]  ;;  %v6751_v21 = vld [vmem:[#allocation2 + $0x774] sm:$0xf]  ;;  %v3493_v47 = vadd.f32 %v3492_v61, %v3478_v10  ;;  %v6057_v54 = vor.u32 %v6719_v34, %v6054_v42 }
 0x348   : > { %1893 = vst [vmem:[#allocation2 + $0x5c4] sm:$0xff] %v1868_v57  ;;  %v6181_v1 = vor.u32 %v6755_v41, %v6180_v17  ;;  %v6185_v26 = vor.u32 %v6751_v21, %v6182_v58  ;;  %v6021_v57 = vor.u32 %v6715_v55, %v6020_v40  ;;  %v6711_v31 = vld [vmem:[#allocation2 + $0x42c] sm:$0xf]  ;;  %v5990_v17 = vld [vmem:[#allocation2 + $0x3d4] sm:$0xf0]  ;;  %v3546_v21 = vpop.f32.mrf.mxu3 }
 0x349   : > { %4564 = vmatpush.bf16.msrb.mxu3 %v6213_v44  ;;  %1794 = vst [vmem:[#allocation2 + $0x570] sm:$0xff] %v1769_v6  ;;  %v6025_v15 = vor.u32 %v6711_v31, %v6022_v38  ;;  %v6707_v6 = vld [vmem:[#allocation2 + $0x3d0] sm:$0xf0]  ;;  %v6695_v55 = vld [vmem:[#allocation2 + $0x2dc] sm:$0xf] }
 0x34a   : > { %4592 = vmatpush.bf16.msrb.mxu2 %v6217_v24  ;;  %v9240_v27 = vpop.permute.xlu1 %1936  ;;  %v2725_v43 = vpop.permute.xlu2 %2724  ;;  %3699 = vst [vmem:[%s9189_s19 + $0xa8] sm:$0xff] %v3493_v47  ;;  %v6053_v24 = vor.u32 %v6723_v22, %v6052_v33  ;;  %v6699_v22 = vld [vmem:[#allocation2 + $0x328] sm:$0xf0] }
 0x34b   : > { %v1950_v20 = vrot.slane %v9240_v27, 4  ;;  %v9244_v4 = vpop.permute.xlu0 %2230  ;;  %v2736_v8 = vrot.slane %v2725_v43, 4  ;;  %2779 = vst.msk [vmem:[#allocation2 + $0x8d8] sm:$0xf] %vm204_vm2, %v2725_v43  ;;  %v5988_v43 = vld [vmem:[#allocation2 + $0x380] sm:$0xf] }
 0x34c   : > { %v2244_v14 = vrot.slane %v9244_v4, 4 }
 0x34d   : > { %4565 = vmatpush.bf16.msrb.mxu3 %v6181_v1  ;;  %v1968_v28 = vsel %vm283_vm0, %v1949_v0, %v1950_v20  ;;  %v2756_v60 = vsel %vm283_vm0, %v2735_v56, %v2736_v8  ;;  %v6148_v1 = vld [vmem:[#allocation2 + $0x6c8] sm:$0xf]  ;;  %v6703_v8 = vld [vmem:[#allocation2 + $0x384] sm:$0xf] }
 0x34e   : > { %4593 = vmatpush.bf16.msrb.mxu2 %v6185_v26  ;;  %v1969_v39 = vsel %vm1954_vm10, %v9150_v63, %v1968_v28  ;;  %v2262_v19 = vsel %vm283_vm0, %v2243_v5, %v2244_v14  ;;  %v2757_v35 = vsel %vm2738_vm3, %v9183_v9, %v2756_v60  ;;  %v6743_v26 = vld [vmem:[#allocation2 + $0x6cc] sm:$0xf]  ;;  %v5989_v28 = vor.u32 %v6707_v6, %v5988_v43 }
 0x34f   : > { %1992 = vst [vmem:[#allocation2 + $0x620] sm:$0xff] %v1969_v39  ;;  %v2263_v0 = vsel %vm2248_vm8, %v9128_v50, %v2262_v19  ;;  %v6730_v12 = vld [vmem:[#allocation2 + $0x5c0] sm:$0xf0]  ;;  %v6078_v56 = vld [vmem:[#allocation2 + $0x5c4] sm:$0xf0]  ;;  %v5993_v60 = vor.u32 %v6703_v8, %v5990_v17 }
 0x350   : > { %2778 = vst [vmem:[#allocation2 + $0x8d0] sm:$0xff] %v2757_v35  ;;  %v6076_v51 = vld [vmem:[#allocation2 + $0x570] sm:$0xf]  ;;  %v6726_v63 = vld [vmem:[#allocation2 + $0x574] sm:$0xf] }
 0x351   : > { %2286 = vst [vmem:[#allocation2 + $0x71c] sm:$0xff] %v2263_v0  ;;  %v6077_v2 = vor.u32 %v6730_v12, %v6076_v51  ;;  %v6081_v44 = vor.u32 %v6726_v63, %v6078_v56  ;;  %v5956_v19 = vld [vmem:[#allocation2 + $0x2d8] sm:$0xf]  ;;  %v5958_v56 = vld [vmem:[#allocation2 + $0x32c] sm:$0xf0] }
 0x352   : > { %v9268_v5 = vpop.permute.xlu1 %1837  ;;  %v9270_v9 = vpop.permute.xlu2 %2528  ;;  %v6687_v8 = vld [vmem:[#allocation2 + $0x234] sm:$0xf] }
 0x353   : > { %4512 = vmatpush.bf16.msra.mxu1 %v6077_v2  ;;  %4540 = vmatpush.bf16.msra.mxu0 %v6081_v44  ;;  %v1851_v50 = vrot.slane %v9268_v5, 4  ;;  %v9273_v59 = vpop.permute.xlu0 %1738  ;;  %2583 = vst.msk [vmem:[#allocation2 + $0x830] sm:$0xf] %vm204_vm2, %v9270_v9  ;;  %v6739_v44 = vld [vmem:[#allocation2 + $0x670] sm:$0xf0] }
 0x354   : > { %v1752_v29 = vrot.slane %v9273_v59, 4 }
 0x355   : > { %v1869_v62 = vsel %vm283_vm0, %v1850_v23, %v1851_v50  ;;  %v3532_v23 = vpop.f32.mrf.mxu1 }
 0x356   : > { %v1870_v41 = vsel %vm1855_vm12, %v9213_v32, %v1869_v62  ;;  %v1770_v58 = vsel %vm283_vm0, %v1751_v25, %v1752_v29  ;;  %6254 = vmatmul.msk.bf16.vlgmr.msra.gmra.mxu1 %vm3463_vm14, %v8447_v53  ;;  %6255 = vmatmul.msk.bf16.vlgmr.msra.gmra.mxu0 %vm3463_vm14, %v8447_v53  ;;  %v6116_v39 = vld [vmem:[#allocation2 + $0x620] sm:$0xf]  ;;  %v3547_v42 = vadd.f32 %v3546_v21, %v3532_v23  ;;  %v6735_v12 = vld [vmem:[#allocation2 + $0x624] sm:$0xf] }
 0x357   : > { %4547 = vmatpush.bf16.msrb.mxu1 %v6053_v24  ;;  %4575 = vmatpush.bf16.msrb.mxu0 %v6057_v54  ;;  %1894 = vst [vmem:[#allocation2 + $0x5cc] sm:$0xff] %v1870_v41  ;;  %v1771_v32 = vsel %vm1756_vm13, %v9217_v7, %v1770_v58  ;;  %v2540_v7 = vrot.slane %v9270_v9, 4  ;;  %v6117_v34 = vor.u32 %v6739_v44, %v6116_v39  ;;  %v6118_v24 = vld [vmem:[#allocation2 + $0x674] sm:$0xf0]  ;;  %v3548_v58 = vpop.f32.mrf.mxu3  ;;  %v6691_v21 = vld [vmem:[#allocation2 + $0x280] sm:$0xf0] }
 0x358   : > { %1795 = vst [vmem:[#allocation2 + $0x578] sm:$0xff] %v1771_v32  ;;  %v6747_v25 = vld [vmem:[#allocation2 + $0x718] sm:$0xf0]  ;;  %v6150_v10 = vld [vmem:[#allocation2 + $0x71c] sm:$0xf0]  ;;  %v5957_v54 = vor.u32 %v6699_v22, %v5956_v19  ;;  %v6121_v40 = vor.u32 %v6735_v12, %v6118_v24  ;;  %v5961_v62 = vor.u32 %v6695_v55, %v5958_v56 }
 0x359   : > { %v6149_v61 = vor.u32 %v6747_v25, %v6148_v1  ;;  %v6153_v47 = vor.u32 %v6743_v26, %v6150_v10  ;;  %3693 = vst [vmem:[%s9189_s19 + $0x10] sm:$0xff] %v3547_v42  ;;  %v6809_v26 = vld [vmem:[#allocation2 + $0x528] sm:$0xf0]  ;;  %v5924_v25 = vld [vmem:[#allocation2 + $0x230] sm:$0xf] }
 0x35a   : > { %v9297_v35 = vpop.permute.xlu2 %2036  ;;  %v6402_v10 = vld [vmem:[#allocation2 + $0x52c] sm:$0xf0]  ;;  %v5925_v43 = vor.u32 %v6691_v21, %v5924_v25  ;;  %v6807_v19 = vld [vmem:[#allocation2 + $0x4dc] sm:$0xf]  ;;  %v5894_v22 = vld [vmem:[#allocation2 + $0x1dc] sm:$0xf0] }
 0x35b   : > { %4548 = vmatpush.bf16.msrb.mxu1 %v6021_v57  ;;  %4576 = vmatpush.bf16.msrb.mxu0 %v6025_v15  ;;  %v9299_v0 = vpop.permute.xlu1 %2624  ;;  %v2049_v51 = vrot.slane %v9297_v35, 4  ;;  %v6405_v56 = vor.u32 %v6807_v19, %v6402_v10  ;;  %v6804_v44 = vld [vmem:[#allocation2 + $0x480] sm:$0xf0]  ;;  %v6679_v24 = vld [vmem:[#allocation2 + $0x18c] sm:$0xf] }
 0x35c   : > { %4566 = vmatpush.bf16.msrb.mxu3 %v6149_v61  ;;  %4594 = vmatpush.bf16.msrb.mxu2 %v6153_v47  ;;  %v2637_v63 = vrot.slane %v9299_v0, 4  ;;  %v6683_v61 = vld [vmem:[#allocation2 + $0x1d8] sm:$0xf0]  ;;  %v6362_v21 = vld [vmem:[#allocation2 + $0x3dc] sm:$0xf0] }
 0x35d   : > { %v2527_v2 = vpop.permute.xlu0 %2526  ;;  %v2068_v9 = vsel %vm283_vm0, %v2048_v11, %v2049_v51  ;;  %v3534_v41 = vpop.f32.mrf.mxu1  ;;  %v6797_v10 = vld [vmem:[#allocation2 + $0x38c] sm:$0xf] }
 0x35e   : > { %v2539_v33 = vrot.slane %v2527_v2, 4  ;;  %v2656_v38 = vsel %vm283_vm0, %v2636_v30, %v2637_v63  ;;  %v6731_v57 = vld [vmem:[#allocation2 + $0x5c8] sm:$0xf0]  ;;  %v6086_v31 = vld [vmem:[#allocation2 + $0x5cc] sm:$0xf0]  ;;  %v2069_v15 = vsel %vm2052_vm11, %v9152_v49, %v2068_v9  ;;  %v3549_v47 = vadd.f32 %v3548_v58, %v3534_v41 }
 0x35f   : > { %4549 = vmatpush.bf16.msrb.mxu1 %v5989_v28  ;;  %4577 = vmatpush.bf16.msrb.mxu0 %v5993_v60  ;;  %v2657_v6 = vsel %vm2640_vm6, %v9155_v48, %v2656_v38  ;;  %v6084_v30 = vld [vmem:[#allocation2 + $0x578] sm:$0xf]  ;;  %v6727_v23 = vld [vmem:[#allocation2 + $0x57c] sm:$0xf]  ;;  %2091 = vst [vmem:[#allocation2 + $0x67c] sm:$0xff] %v2069_v15  ;;  %v5897_v38 = vor.u32 %v6679_v24, %v5894_v22 }
 0x360   : > { %v2558_v11 = vsel %vm283_vm0, %v2538_v18, %v2539_v33  ;;  %v2560_v17 = vsel %vm283_vm0, %v2539_v33, %v2540_v7  ;;  %4567 = vmatpush.bf16.msrb.mxu3 %v6117_v34  ;;  %4595 = vmatpush.bf16.msrb.mxu2 %v6121_v40  ;;  %v6085_v49 = vor.u32 %v6731_v57, %v6084_v30  ;;  %v5926_v48 = vld [vmem:[#allocation2 + $0x284] sm:$0xf0]  ;;  %v6400_v28 = vld [vmem:[#allocation2 + $0x4d8] sm:$0xf]  ;;  %v6380_v40 = vld [vmem:[#allocation2 + $0x430] sm:$0xf] }
 0x361   : > { %v2559_v32 = vsel %vm2542_vm4, %v9037_v45, %v2558_v11  ;;  %v2561_v1 = vsel %vm2542_vm4, %v2527_v2, %v2560_v17  ;;  %2679 = vst [vmem:[#allocation2 + $0x874] sm:$0xff] %v2657_v6  ;;  %v6089_v18 = vor.u32 %v6727_v23, %v6086_v31  ;;  %v5929_v60 = vor.u32 %v6687_v8, %v5926_v48  ;;  %v5892_v2 = vld [vmem:[#allocation2 + $0x188] sm:$0xf]  ;;  %v6802_v41 = vld [vmem:[#allocation2 + $0x434] sm:$0xf] }
 0x362   : > { %2581 = vst [vmem:[#allocation2 + $0x820] sm:$0xff] %v2559_v32  ;;  %v9325_v45 = vpop.permute.xlu2 %1740  ;;  %v6401_v39 = vor.u32 %v6809_v26, %v6400_v28  ;;  %v5893_v9 = vor.u32 %v6683_v61, %v5892_v2  ;;  %v6381_v31 = vor.u32 %v6804_v44, %v6380_v40  ;;  %v5860_v58 = vld [vmem:[#allocation2 + $0xe0] sm:$0xf]  ;;  %v6675_v15 = vld [vmem:[#allocation2 + $0x130] sm:$0xf0]  ;;  %v3560_v26 = vpop.f32.mrf.mxu0  ;;  %v6365_v22 = vor.u32 %v6797_v10, %v6362_v21 }
 0x363   : > { %4550 = vmatpush.bf16.msrb.mxu1 %v5957_v54  ;;  %4578 = vmatpush.bf16.msrb.mxu0 %v5961_v62  ;;  %2582 = vst [vmem:[#allocation2 + $0x828] sm:$0xff] %v2561_v1  ;;  %v1753_v42 = vrot.slane %v9325_v45, 4  ;;  %v9328_v7 = vpop.permute.xlu1 %2428  ;;  %v6382_v54 = vld [vmem:[#allocation2 + $0x484] sm:$0xf0]  ;;  %v5862_v11 = vld [vmem:[#allocation2 + $0x134] sm:$0xf0] }
 0x364   : > { %4568 = vmatpush.bf16.msrb.mxu3 %v6085_v49  ;;  %4596 = vmatpush.bf16.msrb.mxu2 %v6089_v18  ;;  %3701 = vst [vmem:[%s9189_s19 + $0xb8] sm:$0xff] %v3549_v47  ;;  %v2441_v33 = vrot.slane %v9328_v7, 4  ;;  %v6385_v6 = vor.u32 %v6802_v41, %v6382_v54  ;;  %v6799_v17 = vld [vmem:[#allocation2 + $0x3d8] sm:$0xf0]  ;;  %v5828_v30 = vld [vmem:[#allocation2 + $0x38] sm:$0xf]  ;;  %v5861_v49 = vor.u32 %v6675_v15, %v5860_v58 }
 0x365   : > { %v9330_v12 = vpop.permute.xlu0 %2330  ;;  %v1772_v55 = vsel %vm283_vm0, %v1752_v29, %v1753_v42  ;;  %v6671_v23 = vld [vmem:[#allocation2 + $0xe4] sm:$0xf]  ;;  %v6663_v32 = vld [vmem:[#allocation2 + $0x3c] sm:$0xf]  ;;  %v5830_v1 = vld [vmem:[#allocation2 + $0x8c] sm:$0xf0] }
 0x366   : > { %v2343_v34 = vrot.slane %v9330_v12, 4  ;;  %v1773_v62 = vsel %vm1756_vm13, %v9273_v59, %v1772_v55  ;;  %v2460_v57 = vsel %vm283_vm0, %v2440_v46, %v2441_v33  ;;  %v6794_v48 = vld [vmem:[#allocation2 + $0x330] sm:$0xf0]  ;;  %v5865_v18 = vor.u32 %v6671_v23, %v5862_v11  ;;  %v6340_v47 = vld [vmem:[#allocation2 + $0x2e0] sm:$0xf] }
 0x367   : > { %4551 = vmatpush.bf16.msrb.mxu1 %v5925_v43  ;;  %4579 = vmatpush.bf16.msrb.mxu0 %v5929_v60  ;;  %1796 = vst [vmem:[#allocation2 + $0x580] sm:$0xff] %v1773_v62  ;;  %v2461_v59 = vsel %vm2444_vm7, %v9102_v36, %v2460_v57  ;;  %v6360_v36 = vld [vmem:[#allocation2 + $0x388] sm:$0xf]  ;;  %v6342_v43 = vld [vmem:[#allocation2 + $0x334] sm:$0xf0]  ;;  %v3588_v60 = vpop.f32.mrf.mxu3  ;;  %v6341_v40 = vor.u32 %v6794_v48, %v6340_v47 }
 0x368   : > { %5067 = vmatpush.bf16.msra.mxu3 %v6401_v39  ;;  %5095 = vmatpush.bf16.msra.mxu2 %v6405_v56  ;;  %v2362_v29 = vsel %vm283_vm0, %v2342_v16, %v2343_v34  ;;  %v6667_v16 = vld [vmem:[#allocation2 + $0x88] sm:$0xf0]  ;;  %2483 = vst [vmem:[#allocation2 + $0x7cc] sm:$0xff] %v2461_v59  ;;  %v6361_v25 = vor.u32 %v6799_v17, %v6360_v36  ;;  %v6839_v8 = vld [vmem:[#allocation2 + $0x918] sm:$0xf0] }
 0x369   : > { %6256 = vmatmul.msk.bf16.vlgmr.msrb.gmra.mxu3 %vm3463_vm14, %v8447_v53  ;;  %6257 = vmatmul.msk.bf16.vlgmr.msrb.gmra.mxu2 %vm3463_vm14, %v8447_v53  ;;  %v2363_v46 = vsel %vm2346_vm5, %v9185_v13, %v2362_v29  ;;  %v3574_v13 = vpop.f32.mrf.mxu2  ;;  %v6520_v2 = vld [vmem:[#allocation2 + $0x8c8] sm:$0xf]  ;;  %v5829_v54 = vor.u32 %v6667_v16, %v5828_v30  ;;  %v6792_v55 = vld [vmem:[#allocation2 + $0x2e4] sm:$0xf]  ;;  %v6837_v57 = vld [vmem:[#allocation2 + $0x8cc] sm:$0xf] }
 0x36a   : > { %2385 = vst [vmem:[#allocation2 + $0x778] sm:$0xff] %v2363_v46  ;;  %v2235_v61 = vpop.permute.xlu2 %2234  ;;  %v3575_v28 = vadd.f32 %v3574_v13, %v3560_v26  ;;  %v6345_v62 = vor.u32 %v6792_v55, %v6342_v43  ;;  %v6522_v29 = vld [vmem:[#allocation2 + $0x91c] sm:$0xf0]  ;;  %v6521_v59 = vor.u32 %v6839_v8, %v6520_v2  ;;  %v6320_v17 = vld [vmem:[#allocation2 + $0x238] sm:$0xf] }
 0x36b   : > { %4552 = vmatpush.bf16.msrb.mxu1 %v5893_v9  ;;  %4580 = vmatpush.bf16.msrb.mxu0 %v5897_v38  ;;  %v2233_v39 = vpop.permute.xlu1 %2232  ;;  %v2246_v56 = vrot.slane %v2235_v61, 4  ;;  %2289 = vst.msk [vmem:[#allocation2 + $0x734] sm:$0xf] %vm204_vm2, %v2235_v61  ;;  %v3602_v9 = vpop.f32.mrf.mxu1  ;;  %v5833_v38 = vor.u32 %v6663_v32, %v5830_v1  ;;  %v6322_v30 = vld [vmem:[#allocation2 + $0x28c] sm:$0xf0] }
 0x36c   : > { %5068 = vmatpush.bf16.msra.mxu3 %v6381_v31  ;;  %5096 = vmatpush.bf16.msra.mxu2 %v6385_v6  ;;  %v2245_v44 = vrot.slane %v2233_v39, 4  ;;  %3694 = vst [vmem:[%s9189_s19 + $0x18] sm:$0xff] %v3575_v28  ;;  %v3603_v31 = vadd.f32 %v3602_v9, %v3588_v60  ;;  %v6500_v16 = vld [vmem:[#allocation2 + $0x820] sm:$0xf]  ;;  %v6834_v23 = vld [vmem:[#allocation2 + $0x870] sm:$0xf0]  ;;  %v3562_v32 = vpop.f32.mrf.mxu0 }
 0x36d   : > { %v9360_v19 = vpop.permute.xlu0 %2134  ;;  %v6502_v21 = vld [vmem:[#allocation2 + $0x874] sm:$0xf0]  ;;  %v6300_v10 = vld [vmem:[#allocation2 + $0x190] sm:$0xf]  ;;  %v6784_v61 = vld [vmem:[#allocation2 + $0x1e0] sm:$0xf0] }
 0x36e   : > { %v2147_v24 = vrot.slane %v9360_v19, 4  ;;  %v2264_v41 = vsel %vm283_vm0, %v2244_v14, %v2245_v44  ;;  %v2266_v15 = vsel %vm283_vm0, %v2245_v44, %v2246_v56  ;;  %v6789_v14 = vld [vmem:[#allocation2 + $0x288] sm:$0xf0]  ;;  %3695 = vst [vmem:[%s9189_s19 + $0x20] sm:$0xff] %v3603_v31  ;;  %v6782_v47 = vld [vmem:[#allocation2 + $0x194] sm:$0xf] }
 0x36f   : > { %4553 = vmatpush.bf16.msrb.mxu1 %v5861_v49  ;;  %4581 = vmatpush.bf16.msrb.mxu0 %v5865_v18  ;;  %v2265_v46 = vsel %vm2248_vm8, %v9244_v4, %v2264_v41  ;;  %v2267_v11 = vsel %vm2248_vm8, %v2233_v39, %v2266_v15  ;;  %v6832_v4 = vld [vmem:[#allocation2 + $0x824] sm:$0xf]  ;;  %v6321_v1 = vor.u32 %v6789_v14, %v6320_v17  ;;  %v6787_v49 = vld [vmem:[#allocation2 + $0x23c] sm:$0xf]  ;;  %v3590_v48 = vpop.f32.mrf.mxu3  ;;  %v6302_v43 = vld [vmem:[#allocation2 + $0x1e4] sm:$0xf0] }
 0x370   : > { %5069 = vmatpush.bf16.msra.mxu3 %v6361_v25  ;;  %5097 = vmatpush.bf16.msra.mxu2 %v6365_v22  ;;  %v2166_v58 = vsel %vm283_vm0, %v2146_v3, %v2147_v24  ;;  %2287 = vst [vmem:[#allocation2 + $0x724] sm:$0xff] %v2265_v46  ;;  %v6525_v3 = vor.u32 %v6837_v57, %v6522_v29  ;;  %v6829_v8 = vld [vmem:[#allocation2 + $0x7c8] sm:$0xf0]  ;;  %v6779_v15 = vld [vmem:[#allocation2 + $0x138] sm:$0xf0] }
 0x371   : > { %v2167_v6 = vsel %vm2150_vm9, %v9130_v37, %v2166_v58  ;;  %v3576_v37 = vpop.f32.mrf.mxu2  ;;  %2288 = vst [vmem:[#allocation2 + $0x72c] sm:$0xff] %v2267_v11  ;;  %v6325_v18 = vor.u32 %v6787_v49, %v6322_v30  ;;  %v6501_v25 = vor.u32 %v6834_v23, %v6500_v16  ;;  %v6505_v39 = vor.u32 %v6832_v4, %v6502_v21  ;;  %v6480_v22 = vld [vmem:[#allocation2 + $0x778] sm:$0xf]  ;;  %v6827_v44 = vld [vmem:[#allocation2 + $0x77c] sm:$0xf] }
 0x372   : > { %2189 = vst [vmem:[#allocation2 + $0x6d0] sm:$0xff] %v2167_v6  ;;  %v3577_v36 = vadd.f32 %v3576_v37, %v3562_v32  ;;  %v1743_v56 = vpop.permute.xlu2 %1742  ;;  %v6305_v57 = vor.u32 %v6782_v47, %v6302_v43  ;;  %v6481_v41 = vor.u32 %v6829_v8, %v6480_v22  ;;  %v6280_v58 = vld [vmem:[#allocation2 + $0xe8] sm:$0xf]  ;;  %v6260_v14 = vld [vmem:[#allocation2 + $0x40] sm:$0xf] }
 0x373   : > { %4554 = vmatpush.bf16.msrb.mxu1 %v5829_v54  ;;  %4582 = vmatpush.bf16.msrb.mxu0 %v5833_v38  ;;  %v9381_v26 = vpop.permute.xlu1 %1938  ;;  %v3604_v2 = vpop.f32.mrf.mxu1  ;;  %v6482_v54 = vld [vmem:[#allocation2 + $0x7cc] sm:$0xf0]  ;;  %v1754_v55 = vrot.slane %v1743_v56, 4  ;;  %v6281_v30 = vor.u32 %v6779_v15, %v6280_v58  ;;  %v6772_v16 = vld [vmem:[#allocation2 + $0x44] sm:$0xf] }
 0x374   : > { %5070 = vmatpush.bf16.msra.mxu3 %v6341_v40  ;;  %5098 = vmatpush.bf16.msra.mxu2 %v6345_v62  ;;  %v1951_v28 = vrot.slane %v9381_v26, 4  ;;  %3702 = vst [vmem:[%s9189_s19 + $0xc0] sm:$0xff] %v3577_v36  ;;  %v3605_v9 = vadd.f32 %v3604_v2, %v3590_v48  ;;  %v6301_v62 = vor.u32 %v6784_v61, %v6300_v10  ;;  %v6262_v37 = vld [vmem:[#allocation2 + $0x94] sm:$0xf0]  ;;  %v6528_v48 = vld [vmem:[#allocation2 + $0x8d0] sm:$0xf] }
 0x375   : > { %v2627_v13 = vpop.permute.xlu0 %2626  ;;  %v1776_v11 = vsel %vm1756_vm13, %v1743_v56, %v1754_v55  ;;  %v6819_v47 = vld [vmem:[#allocation2 + $0x678] sm:$0xf0]  ;;  %v6442_v2 = vld [vmem:[#allocation2 + $0x67c] sm:$0xf0] }
 0x376   : > { %4555 = vmatmul.bf16.vlgmr.msrb.gmra.mxu1 %v8443_v52  ;;  %4583 = vmatmul.bf16.vlgmr.msrb.gmra.mxu0 %v8443_v52  ;;  %v2638_v60 = vrot.slane %v2627_v13, 4  ;;  %2681 = vst.msk [vmem:[#allocation2 + $0x884] sm:$0xf] %vm204_vm2, %v2627_v13  ;;  %v1970_v38 = vsel %vm283_vm0, %v1950_v20, %v1951_v28  ;;  %v1774_v20 = vsel %vm283_vm0, %v1753_v42, %v1754_v55  ;;  %v6777_v42 = vld [vmem:[#allocation2 + $0xec] sm:$0xf] }
 0x377   : > { %5083 = vmatpush.bf16.msra.mxu1 %v6521_v59  ;;  %5111 = vmatpush.bf16.msra.mxu0 %v6525_v3  ;;  %v1971_v29 = vsel %vm1954_vm10, %v9240_v27, %v1970_v38  ;;  %v6282_v59 = vld [vmem:[#allocation2 + $0x13c] sm:$0xf0]  ;;  %3703 = vst [vmem:[%s9189_s19 + $0xc8] sm:$0xff] %v3605_v9  ;;  %v6824_v6 = vld [vmem:[#allocation2 + $0x720] sm:$0xf0]  ;;  %v1775_v27 = vsel %vm1756_vm13, %v9325_v45, %v1774_v20 }
 0x378   : > { %5071 = vmatpush.bf16.msra.mxu3 %v6321_v1  ;;  %5099 = vmatpush.bf16.msra.mxu2 %v6325_v18  ;;  %v2658_v40 = vsel %vm283_vm0, %v2637_v63, %v2638_v60  ;;  %1993 = vst [vmem:[#allocation2 + $0x628] sm:$0xff] %v1971_v29  ;;  %v6485_v63 = vor.u32 %v6827_v44, %v6482_v54  ;;  %v6462_v17 = vld [vmem:[#allocation2 + $0x724] sm:$0xf0]  ;;  %v6774_v3 = vld [vmem:[#allocation2 + $0x90] sm:$0xf0] }
 0x379   : > { %v2659_v31 = vsel %vm2640_vm6, %v9299_v0, %v2658_v40  ;;  %v6460_v46 = vld [vmem:[#allocation2 + $0x6d0] sm:$0xf]  ;;  %v6822_v0 = vld [vmem:[#allocation2 + $0x6d4] sm:$0xf]  ;;  %1797 = vst [vmem:[#allocation2 + $0x588] sm:$0xff] %v1775_v27  ;;  %v6285_v21 = vor.u32 %v6777_v42, %v6282_v59  ;;  %v6261_v61 = vor.u32 %v6774_v3, %v6260_v14  ;;  %v6265_v60 = vor.u32 %v6772_v16, %v6262_v37  ;;  %v3658_v59 = vpop.f32.mrf.mxu3 }
 0x37a   : > { %2680 = vst [vmem:[#allocation2 + $0x87c] sm:$0xff] %v2659_v31  ;;  %v6461_v32 = vor.u32 %v6824_v6, %v6460_v46  ;;  %v6840_v45 = vld [vmem:[#allocation2 + $0x920] sm:$0xf0]  ;;  %v6465_v36 = vor.u32 %v6822_v0, %v6462_v17  ;;  %v6838_v13 = vld [vmem:[#allocation2 + $0x8d4] sm:$0xf]  ;;  %v3616_v31 = vpop.f32.mrf.mxu2 }
 0x37b   : > { %5084 = vmatpush.bf16.msra.mxu1 %v6501_v25  ;;  %5112 = vmatpush.bf16.msra.mxu0 %v6505_v39  ;;  %v2431_v23 = vpop.permute.xlu1 %2430  ;;  %1798 = vst.msk [vmem:[#allocation2 + $0x590] sm:$0xf] %vm204_vm2, %v1776_v11  ;;  %v6530_v18 = vld [vmem:[#allocation2 + $0x924] sm:$0xf0]  ;;  %v6529_v39 = vor.u32 %v6840_v45, %v6528_v48  ;;  %v6833_v40 = vld [vmem:[#allocation2 + $0x82c] sm:$0xf]  ;;  %v3644_v15 = vpop.f32.mrf.mxu1 }
 0x37c   : > { %5072 = vmatpush.bf16.msra.mxu3 %v6301_v62  ;;  %5100 = vmatpush.bf16.msra.mxu2 %v6305_v57  ;;  %v2442_v1 = vrot.slane %v2431_v23, 4  ;;  %2485 = vst.msk [vmem:[#allocation2 + $0x7dc] sm:$0xf] %vm204_vm2, %v2431_v23  ;;  %v3659_v46 = vadd.f32 %v3658_v59, %v3644_v15  ;;  %v6810_v23 = vld [vmem:[#allocation2 + $0x530] sm:$0xf0] }
 0x37d   : > { %v2333_v4 = vpop.permute.xlu0 %2332  ;;  %v6825_v48 = vld [vmem:[#allocation2 + $0x728] sm:$0xf0] }
 0x37e   : > { %v2344_v49 = vrot.slane %v2333_v4, 4  ;;  %2387 = vst.msk [vmem:[#allocation2 + $0x788] sm:$0xf] %vm204_vm2, %v2333_v4  ;;  %v2462_v25 = vsel %vm283_vm0, %v2441_v33, %v2442_v1  ;;  %v6533_v33 = vor.u32 %v6838_v13, %v6530_v18  ;;  %v6410_v4 = vld [vmem:[#allocation2 + $0x534] sm:$0xf0] }
 0x37f   : > { %5085 = vmatpush.bf16.msra.mxu1 %v6481_v41  ;;  %5113 = vmatpush.bf16.msra.mxu0 %v6485_v63  ;;  %v2463_v43 = vsel %vm2444_vm7, %v9328_v7, %v2462_v25  ;;  %v6440_v22 = vld [vmem:[#allocation2 + $0x628] sm:$0xf]  ;;  %v6817_v56 = vld [vmem:[#allocation2 + $0x62c] sm:$0xf]  ;;  %v3630_v41 = vpop.f32.mrf.mxu0  ;;  %3697 = vst [vmem:[%s9189_s19 + $0x30] sm:$0xff] %v3659_v46 }
 0x380   : > { %5073 = vmatpush.bf16.msra.mxu3 %v6281_v30  ;;  %5101 = vmatpush.bf16.msra.mxu2 %v6285_v21  ;;  %v2364_v10 = vsel %vm283_vm0, %v2343_v34, %v2344_v49  ;;  %2484 = vst [vmem:[#allocation2 + $0x7d4] sm:$0xff] %v2463_v43  ;;  %v6441_v44 = vor.u32 %v6819_v47, %v6440_v22  ;;  %v6508_v7 = vld [vmem:[#allocation2 + $0x828] sm:$0xf]  ;;  %v6420_v49 = vld [vmem:[#allocation2 + $0x580] sm:$0xf] }
 0x381   : > { %v2365_v8 = vsel %vm2346_vm5, %v9330_v12, %v2364_v10  ;;  %v6445_v54 = vor.u32 %v6817_v56, %v6442_v2  ;;  %v6835_v34 = vld [vmem:[#allocation2 + $0x878] sm:$0xf0]  ;;  %v6510_v55 = vld [vmem:[#allocation2 + $0x87c] sm:$0xf0]  ;;  %v3631_v58 = vadd.f32 %v3630_v41, %v3616_v31  ;;  %v3660_v37 = vpop.f32.mrf.mxu3  ;;  %v6470_v13 = vld [vmem:[#allocation2 + $0x72c] sm:$0xf0] }
 0x382   : > { %2386 = vst [vmem:[#allocation2 + $0x780] sm:$0xff] %v2365_v8  ;;  %v6509_v38 = vor.u32 %v6835_v34, %v6508_v7  ;;  %v6513_v29 = vor.u32 %v6833_v40, %v6510_v55  ;;  %v3618_v16 = vpop.f32.mrf.mxu2  ;;  %v6408_v22 = vld [vmem:[#allocation2 + $0x4e0] sm:$0xf]  ;;  %v6808_v56 = vld [vmem:[#allocation2 + $0x4e4] sm:$0xf] }
 0x383   : > { %5086 = vmatpush.bf16.msra.mxu1 %v6461_v32  ;;  %5114 = vmatpush.bf16.msra.mxu0 %v6465_v36  ;;  %v2137_v12 = vpop.permute.xlu1 %2136  ;;  %3696 = vst [vmem:[%s9189_s19 + $0x28] sm:$0xff] %v3631_v58  ;;  %v3646_v32 = vpop.f32.mrf.mxu1  ;;  %v6812_v36 = vld [vmem:[#allocation2 + $0x584] sm:$0xf]  ;;  %v6413_v2 = vor.u32 %v6808_v56, %v6410_v4  ;;  %v6388_v34 = vld [vmem:[#allocation2 + $0x438] sm:$0xf] }
 0x384   : > { %5074 = vmatpush.bf16.msra.mxu3 %v6261_v61  ;;  %5102 = vmatpush.bf16.msra.mxu2 %v6265_v60  ;;  %v2148_v62 = vrot.slane %v2137_v12, 4  ;;  %2191 = vst.msk [vmem:[#allocation2 + $0x6e0] sm:$0xf] %vm204_vm2, %v2137_v12  ;;  %v3661_v18 = vadd.f32 %v3660_v37, %v3646_v32  ;;  %v6803_v7 = vld [vmem:[#allocation2 + $0x43c] sm:$0xf] }
 0x385   : > { %v9419_v9 = vpop.permute.xlu0 %1839  ;;  %v6798_v46 = vld [vmem:[#allocation2 + $0x394] sm:$0xf]  ;;  %v6330_v4 = vld [vmem:[#allocation2 + $0x294] sm:$0xf0]  ;;  %v6813_v37 = vld [vmem:[#allocation2 + $0x58c] sm:$0xf] }
 0x386   : > { %v1852_v57 = vrot.slane %v9419_v9, 4  ;;  %v2168_v20 = vsel %vm283_vm0, %v2147_v24, %v2148_v62  ;;  %3705 = vst [vmem:[%s9189_s19 + $0xd8] sm:$0xff] %v3661_v18  ;;  %v6800_v62 = vld [vmem:[#allocation2 + $0x3e0] sm:$0xf0]  ;;  %v6396_v56 = vld [vmem:[#allocation2 + $0x440] sm:$0xf] }
 0x387   : > { %5087 = vmatpush.bf16.msra.mxu1 %v6441_v44  ;;  %5115 = vmatpush.bf16.msra.mxu0 %v6445_v54  ;;  %v2169_v6 = vsel %vm2150_vm9, %v9360_v19, %v2168_v20  ;;  %v6830_v11 = vld [vmem:[#allocation2 + $0x7d0] sm:$0xf0]  ;;  %v6490_v0 = vld [vmem:[#allocation2 + $0x7d4] sm:$0xf0]  ;;  %v6390_v44 = vld [vmem:[#allocation2 + $0x48c] sm:$0xf0] }
 0x388   : > { %5139 = vmatpush.bf16.msrb.mxu3 %v6529_v39  ;;  %5167 = vmatpush.bf16.msrb.mxu2 %v6533_v33  ;;  %v1871_v63 = vsel %vm283_vm0, %v1851_v50, %v1852_v57  ;;  %2190 = vst [vmem:[#allocation2 + $0x6d8] sm:$0xff] %v2169_v6  ;;  %v6805_v33 = vld [vmem:[#allocation2 + $0x488] sm:$0xf0]  ;;  %v6393_v40 = vor.u32 %v6803_v7, %v6390_v44  ;;  %v6376_v7 = vld [vmem:[#allocation2 + $0x398] sm:$0xf] }
 0x389   : > { %5075 = vmatmul.bf16.vlgmr.msra.gmra.mxu3 %v8443_v52  ;;  %5103 = vmatmul.bf16.vlgmr.msra.gmra.mxu2 %v8443_v52  ;;  %v1872_v27 = vsel %vm1855_vm12, %v9268_v5, %v1871_v63  ;;  %v6488_v17 = vld [vmem:[#allocation2 + $0x780] sm:$0xf]  ;;  %v6828_v24 = vld [vmem:[#allocation2 + $0x784] sm:$0xf]  ;;  %v3632_v5 = vpop.f32.mrf.mxu0  ;;  %v6389_v55 = vor.u32 %v6805_v33, %v6388_v34  ;;  %v6368_v63 = vld [vmem:[#allocation2 + $0x390] sm:$0xf] }
 0x38a   : > { %1895 = vst [vmem:[#allocation2 + $0x5d4] sm:$0xff] %v1872_v27  ;;  %v6489_v14 = vor.u32 %v6830_v11, %v6488_v17  ;;  %v6493_v30 = vor.u32 %v6828_v24, %v6490_v0  ;;  %v3633_v21 = vadd.f32 %v3632_v5, %v3618_v16  ;;  %v3686_v27 = vpop.f32.mrf.mxu2  ;;  %v6369_v11 = vor.u32 %v6800_v62, %v6368_v63  ;;  %v4388_v17 = vpop.f32.mrf.mxu3  ;;  %v6780_v34 = vld [vmem:[#allocation2 + $0x140] sm:$0xf0]  ;;  %v6775_v63 = vld [vmem:[#allocation2 + $0x98] sm:$0xf0] }
 0x38c   : > { %5140 = vmatpush.bf16.msrb.mxu3 %v6509_v38  ;;  %5168 = vmatpush.bf16.msrb.mxu2 %v6513_v29  ;;  %3704 = vst [vmem:[%s9189_s19 + $0xd0] sm:$0xff] %v3633_v21  ;;  %v6370_v29 = vld [vmem:[#allocation2 + $0x3e4] sm:$0xf0]  ;;  %v6811_v21 = vld [vmem:[#allocation2 + $0x538] sm:$0xf0] }
 0x38d   : > { %v2039_v50 = vpop.permute.xlu1 %2038  ;;  %v1941_v42 = vpop.permute.xlu0 %1940  ;;  %v6373_v0 = vor.u32 %v6798_v46, %v6370_v29  ;;  %v6773_v46 = vld [vmem:[#allocation2 + $0x4c] sm:$0xf] }
 0x38e   : > { %v2050_v3 = vrot.slane %v2039_v50, 4  ;;  %2093 = vst.msk [vmem:[#allocation2 + $0x68c] sm:$0xf] %vm204_vm2, %v2039_v50  ;;  %v1952_v19 = vrot.slane %v1941_v42, 4 }
 0x38f   : > { %1995 = vst.msk [vmem:[#allocation2 + $0x638] sm:$0xf] %vm204_vm2, %v1941_v42  ;;  %v6468_v61 = vld [vmem:[#allocation2 + $0x6d8] sm:$0xf]  ;;  %v6823_v47 = vld [vmem:[#allocation2 + $0x6dc] sm:$0xf] }
 0x390   : > { %5141 = vmatpush.bf16.msrb.mxu3 %v6489_v14  ;;  %5169 = vmatpush.bf16.msrb.mxu2 %v6493_v30  ;;  %v2070_v45 = vsel %vm283_vm0, %v2049_v51, %v2050_v3  ;;  %v1972_v1 = vsel %vm283_vm0, %v1951_v28, %v1952_v19  ;;  %v6469_v8 = vor.u32 %v6825_v48, %v6468_v61  ;;  %v6795_v14 = vld [vmem:[#allocation2 + $0x338] sm:$0xf0]  ;;  %v6350_v30 = vld [vmem:[#allocation2 + $0x33c] sm:$0xf0]  ;;  %v6348_v42 = vld [vmem:[#allocation2 + $0x2e8] sm:$0xf] }
 0x391   : > { %v2071_v25 = vsel %vm2052_vm11, %v9297_v35, %v2070_v45  ;;  %v1973_v10 = vsel %vm1954_vm10, %v9381_v26, %v1972_v1  ;;  %v6814_v51 = vld [vmem:[#allocation2 + $0x5d0] sm:$0xf0]  ;;  %v6422_v43 = vld [vmem:[#allocation2 + $0x5d4] sm:$0xf0]  ;;  %v6473_v28 = vor.u32 %v6823_v47, %v6470_v13  ;;  %v6409_v35 = vor.u32 %v6810_v23, %v6408_v22  ;;  %v3672_v6 = vpop.f32.mrf.mxu0  ;;  %v4402_v24 = vpop.f32.mrf.mxu1  ;;  %v6793_v3 = vld [vmem:[#allocation2 + $0x2ec] sm:$0xf] }
 0x392   : > { %2092 = vst [vmem:[#allocation2 + $0x684] sm:$0xff] %v2071_v25  ;;  %v6421_v60 = vor.u32 %v6814_v51, %v6420_v49  ;;  %v6425_v39 = vor.u32 %v6812_v36, %v6422_v43  ;;  %v4403_v50 = vadd.f32 %v4402_v24, %v4388_v17  ;;  %v6790_v19 = vld [vmem:[#allocation2 + $0x290] sm:$0xf0]  ;;  %v6349_v16 = vor.u32 %v6795_v14, %v6348_v42  ;;  %v6428_v23 = vld [vmem:[#allocation2 + $0x588] sm:$0xf] }
 0x393   : > { %1994 = vst [vmem:[#allocation2 + $0x630] sm:$0xff] %v1973_v10  ;;  %v6353_v5 = vor.u32 %v6793_v3, %v6350_v30  ;;  %v6416_v36 = vld [vmem:[#allocation2 + $0x4e8] sm:$0xf]  ;;  %v6328_v48 = vld [vmem:[#allocation2 + $0x240] sm:$0xf]  ;;  %v3688_v10 = vpop.f32.mrf.mxu2 }
 0x394   : > { %5142 = vmatpush.bf16.msrb.mxu3 %v6469_v8  ;;  %5170 = vmatpush.bf16.msrb.mxu2 %v6473_v28  ;;  %4603 = vst [vmem:[%s9189_s19 + $0x40] sm:$0xff] %v4403_v50  ;;  %v6788_v13 = vld [vmem:[#allocation2 + $0x244] sm:$0xf]  ;;  %v6417_v18 = vor.u32 %v6811_v21, %v6416_v36  ;;  %v6329_v61 = vor.u32 %v6790_v19, %v6328_v48  ;;  %v6806_v51 = vld [vmem:[#allocation2 + $0x490] sm:$0xf0]  ;;  %v4390_v8 = vpop.f32.mrf.mxu3 }
 0x395   : > { %5088 = vmatpush.bf16.msra.mxu1 %v6421_v60  ;;  %5116 = vmatpush.bf16.msra.mxu0 %v6425_v39  ;;  %v1842_v26 = vpop.permute.xlu0 %1841  ;;  %v6333_v47 = vor.u32 %v6788_v13, %v6330_v4  ;;  %v6785_v60 = vld [vmem:[#allocation2 + $0x1e8] sm:$0xf0]  ;;  %v6310_v39 = vld [vmem:[#allocation2 + $0x1ec] sm:$0xf0]  ;;  %v6397_v33 = vor.u32 %v6806_v51, %v6396_v56  ;;  %v6791_v24 = vld [vmem:[#allocation2 + $0x298] sm:$0xf0] }
 0x396   : > { %v1853_v54 = vrot.slane %v1842_v26, 4  ;;  %v6336_v42 = vld [vmem:[#allocation2 + $0x248] sm:$0xf]  ;;  %v6516_v3 = vld [vmem:[#allocation2 + $0x830] sm:$0xf] }
 0x397   : > { %v6836_v19 = vld [vmem:[#allocation2 + $0x880] sm:$0xf0]  ;;  %v6786_v4 = vld [vmem:[#allocation2 + $0x1f0] sm:$0xf0]  ;;  %v6296_v48 = vld [vmem:[#allocation2 + $0xf8] sm:$0xf] }
 0x398   : > { %v1873_v12 = vsel %vm283_vm0, %v1852_v57, %v1853_v54  ;;  %v1875_v38 = vsel %vm1855_vm12, %v1842_v26, %v1853_v54  ;;  %6538 = vmatmul.msk.bf16.vlgmr.msra.gmra.mxu1 %vm3463_vm14, %v8447_v53  ;;  %6539 = vmatmul.msk.bf16.vlgmr.msra.gmra.mxu0 %vm3463_vm14, %v8447_v53  ;;  %v6801_v54 = vld [vmem:[#allocation2 + $0x3e8] sm:$0xf0]  ;;  %v6456_v56 = vld [vmem:[#allocation2 + $0x638] sm:$0xf]  ;;  %vm5211_vm0 = vcmask 261120  }
 0x399   : > { %5123 = vmatpush.bf16.msrb.mxu1 %v6409_v35  ;;  %5151 = vmatpush.bf16.msrb.mxu0 %v6413_v2  ;;  %v1874_v31 = vsel %vm1855_vm12, %v9419_v9, %v1873_v12  ;;  %1897 = vst.msk [vmem:[#allocation2 + $0x5e4] sm:$0xf] %vm204_vm2, %v1875_v38  ;;  %v6820_v41 = vld [vmem:[#allocation2 + $0x680] sm:$0xf0]  ;;  %v6450_v58 = vld [vmem:[#allocation2 + $0x684] sm:$0xf0]  ;;  %v3687_v9 = vadd.f32 %v3686_v27, %v3672_v6  ;;  %v3674_v25 = vpop.f32.mrf.mxu0  ;;  %v4404_v28 = vpop.f32.mrf.mxu1 }
 0x39a   : > { %1896 = vst [vmem:[#allocation2 + $0x5dc] sm:$0xff] %v1874_v31  ;;  %v6448_v57 = vld [vmem:[#allocation2 + $0x630] sm:$0xf]  ;;  %v6818_v15 = vld [vmem:[#allocation2 + $0x634] sm:$0xf]  ;;  %v3689_v43 = vadd.f32 %v3688_v10, %v3674_v25  ;;  %v4405_v22 = vadd.f32 %v4404_v28, %v4390_v8 }
 0x39b   : > { %v6449_v59 = vor.u32 %v6820_v41, %v6448_v57  ;;  %v6453_v20 = vor.u32 %v6818_v15, %v6450_v58  ;;  %3698 = vst [vmem:[%s9189_s19 + $0x38] sm:$0xff] %v3687_v9  ;;  %v6308_v35 = vld [vmem:[#allocation2 + $0x198] sm:$0xf]  ;;  %v6783_v2 = vld [vmem:[#allocation2 + $0x19c] sm:$0xf]  ;;  %v4416_v62 = vpop.f32.mrf.mxu2 }
 0x39c   : > { %3706 = vst [vmem:[%s9189_s19 + $0xe0] sm:$0xff] %v3689_v43  ;;  %v6309_v26 = vor.u32 %v6785_v60, %v6308_v35  ;;  %v6313_v44 = vor.u32 %v6783_v2, %v6310_v39  ;;  %v6288_v12 = vld [vmem:[#allocation2 + $0xf0] sm:$0xf]  ;;  %v6778_v38 = vld [vmem:[#allocation2 + $0xf4] sm:$0xf] }
 0x39d   : > { %5124 = vmatpush.bf16.msrb.mxu1 %v6389_v55  ;;  %5152 = vmatpush.bf16.msrb.mxu0 %v6393_v40  ;;  %4611 = vst [vmem:[%s9189_s19 + $0xe8] sm:$0xff] %v4405_v22  ;;  %v6290_v55 = vld [vmem:[#allocation2 + $0x144] sm:$0xf0]  ;;  %v6377_v40 = vor.u32 %v6801_v54, %v6376_v7  ;;  %v6289_v31 = vor.u32 %v6780_v34, %v6288_v12  ;;  %v6356_v57 = vld [vmem:[#allocation2 + $0x2f0] sm:$0xf] }
 0x39e   : > { %5143 = vmatpush.bf16.msrb.mxu3 %v6449_v59  ;;  %5171 = vmatpush.bf16.msrb.mxu2 %v6453_v20  ;;  %v6293_v41 = vor.u32 %v6778_v38, %v6290_v55  ;;  %v6268_v58 = vld [vmem:[#allocation2 + $0x48] sm:$0xf]  ;;  %v6796_v15 = vld [vmem:[#allocation2 + $0x340] sm:$0xf0]  ;;  %v6270_v6 = vld [vmem:[#allocation2 + $0x9c] sm:$0xf0] }
 0x39f   : > { %v6536_v27 = vld [vmem:[#allocation2 + $0x8d8] sm:$0xf]  ;;  %v6269_v9 = vor.u32 %v6775_v63, %v6268_v58  ;;  %v6273_v17 = vor.u32 %v6773_v46, %v6270_v6  ;;  %v6781_v13 = vld [vmem:[#allocation2 + $0x148] sm:$0xf0]  ;;  %v6276_v28 = vld [vmem:[#allocation2 + $0x50] sm:$0xf] }
 0x3a0   : > { %v6297_v51 = vor.u32 %v6781_v13, %v6296_v48  ;;  %v6776_v60 = vld [vmem:[#allocation2 + $0xa0] sm:$0xf0]  ;;  %v6821_v35 = vld [vmem:[#allocation2 + $0x688] sm:$0xf0]  ;;  %v6436_v34 = vld [vmem:[#allocation2 + $0x590] sm:$0xf] }
 0x3a1   : > { %5125 = vmatpush.bf16.msrb.mxu1 %v6369_v11  ;;  %5153 = vmatpush.bf16.msrb.mxu0 %v6373_v0  ;;  %v6815_v32 = vld [vmem:[#allocation2 + $0x5d8] sm:$0xf0]  ;;  %v6430_v45 = vld [vmem:[#allocation2 + $0x5dc] sm:$0xf0]  ;;  %v4430_v29 = vpop.f32.mrf.mxu0  ;;  %v6841_v11 = vld [vmem:[#allocation2 + $0x928] sm:$0xf0]  ;;  %v6357_v0 = vor.u32 %v6796_v15, %v6356_v57  ;;  %v6277_v2 = vor.u32 %v6776_v60, %v6276_v28 }
 0x3a2   : > { %v6429_v1 = vor.u32 %v6815_v32, %v6428_v23  ;;  %v6433_v49 = vor.u32 %v6813_v37, %v6430_v45  ;;  %v4431_v59 = vadd.f32 %v4430_v29, %v4416_v62  ;;  %v6537_v30 = vor.u32 %v6841_v11, %v6536_v27  ;;  %v6316_v37 = vld [vmem:[#allocation2 + $0x1a0] sm:$0xf]  ;;  %v6496_v45 = vld [vmem:[#allocation2 + $0x788] sm:$0xf] }
 0x3a3   : > { %v6517_v32 = vor.u32 %v6836_v19, %v6516_v3  ;;  %v6317_v36 = vor.u32 %v6786_v4, %v6316_v37 }
 0x3a4   : > { %5144 = vmatpush.bf16.msrb.mxu3 %v6429_v1  ;;  %5172 = vmatpush.bf16.msrb.mxu2 %v6433_v49  ;;  %4604 = vst [vmem:[%s9189_s19 + $0x48] sm:$0xff] %v4431_v59  ;;  %v6831_v1 = vld [vmem:[#allocation2 + $0x7d8] sm:$0xf0] }
 0x3a5   : > { %5126 = vmatpush.bf16.msrb.mxu1 %v6349_v16  ;;  %5154 = vmatpush.bf16.msrb.mxu0 %v6353_v5  ;;  %v6337_v16 = vor.u32 %v6791_v24, %v6336_v42  ;;  %v4418_v5 = vpop.f32.mrf.mxu2  ;;  %v6497_v25 = vor.u32 %v6831_v1, %v6496_v45 }
 0x3a7   : > { %6540 = vmatmul.msk.bf16.vlgmr.msrb.gmra.mxu3 %vm3463_vm14, %v8447_v53  ;;  %6541 = vmatmul.msk.bf16.vlgmr.msrb.gmra.mxu2 %vm3463_vm14, %v8447_v53  ;;  %v4458_v20 = vpop.f32.mrf.mxu3 }
 0x3a8   : > { %5179 = vmatpush.bf16.msra.mxu3 %v6417_v18 }
 0x3a9   : > { %5127 = vmatpush.bf16.msrb.mxu1 %v6329_v61  ;;  %5155 = vmatpush.bf16.msrb.mxu0 %v6333_v47  ;;  %v4432_v23 = vpop.f32.mrf.mxu0  ;;  %v6476_v61 = vld [vmem:[#allocation2 + $0x6e0] sm:$0xf]  ;;  %v6826_v47 = vld [vmem:[#allocation2 + $0x730] sm:$0xf0] }
 0x3aa   : > { %v4433_v21 = vadd.f32 %v4432_v23, %v4418_v5  ;;  %v6477_v22 = vor.u32 %v6826_v47, %v6476_v61 }
 0x3ac   : > { %5180 = vmatpush.bf16.msra.mxu3 %v6397_v33  ;;  %4612 = vst [vmem:[%s9189_s19 + $0xf0] sm:$0xff] %v4433_v21  ;;  %v6457_v33 = vor.u32 %v6821_v35, %v6456_v56 }
 0x3ad   : > { %5128 = vmatpush.bf16.msrb.mxu1 %v6309_v26  ;;  %5156 = vmatpush.bf16.msrb.mxu0 %v6313_v44  ;;  %v4486_v8 = vpop.f32.mrf.mxu2  ;;  %v6816_v26 = vld [vmem:[#allocation2 + $0x5e0] sm:$0xf0] }
 0x3ae   : > { %v6437_v7 = vor.u32 %v6816_v26, %v6436_v34 }
 0x3af   : > { %v4460_v49 = vpop.f32.mrf.mxu3 }
 0x3b0   : > { %5181 = vmatpush.bf16.msra.mxu3 %v6377_v40 }
 0x3b1   : > { %5129 = vmatpush.bf16.msrb.mxu1 %v6289_v31  ;;  %5157 = vmatpush.bf16.msrb.mxu0 %v6293_v41  ;;  %v4444_v14 = vpop.f32.mrf.mxu1 }
 0x3b2   : > { %v4459_v50 = vadd.f32 %v4458_v20, %v4444_v14 }
 0x3b4   : > { %5182 = vmatpush.bf16.msra.mxu3 %v6357_v0  ;;  %4605 = vst [vmem:[%s9189_s19 + $0x50] sm:$0xff] %v4459_v50  ;;  %v4472_v43 = vpop.f32.mrf.mxu0 }
 0x3b5   : > { %5130 = vmatpush.bf16.msrb.mxu1 %v6269_v9  ;;  %5158 = vmatpush.bf16.msrb.mxu0 %v6273_v17  ;;  %v4487_v39 = vadd.f32 %v4486_v8, %v4472_v43  ;;  %v4488_v54 = vpop.f32.mrf.mxu2 }
 0x3b7   : > { %4606 = vst [vmem:[%s9189_s19 + $0x58] sm:$0xff] %v4487_v39 }
 0x3b8   : > { %5131 = vmatmul.bf16.vlgmr.msrb.gmra.mxu1 %v8443_v52  ;;  %5183 = vmatpush.bf16.msra.mxu3 %v6337_v16 }
 0x3b9   : > { %5195 = vmatpush.bf16.msra.mxu1 %v6537_v30  ;;  %5159 = vmatmul.bf16.vlgmr.msrb.gmra.mxu0 %v8443_v52  ;;  %v4446_v18 = vpop.f32.mrf.mxu1 }
 0x3ba   : > { %v4461_v10 = vadd.f32 %v4460_v49, %v4446_v18 }
 0x3bc   : > { %5184 = vmatpush.bf16.msra.mxu3 %v6317_v36  ;;  %4613 = vst [vmem:[%s9189_s19 + $0xf8] sm:$0xff] %v4461_v10  ;;  %v4474_v44 = vpop.f32.mrf.mxu0 }
 0x3bd   : > { %5196 = vmatpush.bf16.msra.mxu1 %v6517_v32  ;;  %v4489_v55 = vadd.f32 %v4488_v54, %v4474_v44 }
 0x3bf   : > { %4614 = vst [vmem:[%s9189_s19 + $0x100] sm:$0xff] %v4489_v55 }
 0x3c0   : > { %5185 = vmatpush.bf16.msra.mxu3 %v6297_v51 }
 0x3c1   : > { %5197 = vmatpush.bf16.msra.mxu1 %v6497_v25 }
 0x3c4   : > { %5186 = vmatpush.bf16.msra.mxu3 %v6277_v2 }
 0x3c5   : > { %5198 = vmatpush.bf16.msra.mxu1 %v6477_v22 }
 0x3c7   : > { %5187 = vmatmul.bf16.vlgmr.msra.gmra.mxu3 %v8443_v52  ;;  %v4500_v12 = vpop.f32.mrf.mxu3 }
 0x3c9   : > { %5199 = vmatpush.bf16.msra.mxu1 %v6457_v33 }
 0x3ca   : > { %v4528_v38 = vpop.f32.mrf.mxu2 }
 0x3cd   : > { %5200 = vmatpush.bf16.msra.mxu1 %v6437_v7 }
 0x3cf   : > { %v4502_v52 = vpop.f32.mrf.mxu3 }
 0x3d0   : > { %6542 = vmatmul.msk.bf16.vlgmr.msra.gmra.mxu1 %vm3463_vm14, %v8447_v53 }
 0x3d2   : > { %v4530_v41 = vpop.f32.mrf.mxu2 }
 0x3d3   : > { %v4514_v40 = vpop.f32.mrf.mxu1  ;;  %v4542_v62 = vpop.f32.mrf.mxu0 }
 0x3d4   : > { %v4515_v29 = vadd.f32 %v4514_v40, %v4500_v12  ;;  %v4543_v31 = vadd.f32 %v4542_v62, %v4528_v38 }
 0x3d6   : > { %4607 = vst [vmem:[%s9189_s19 + $0x60] sm:$0xff] %v4515_v29 }
 0x3d7   : > { %4608 = vst [vmem:[%s9189_s19 + $0x68] sm:$0xff] %v4543_v31 }
 0x3db   : > { %v4516_v58 = vpop.f32.mrf.mxu1  ;;  %v4544_v57 = vpop.f32.mrf.mxu0 }
 0x3dc   : > { %v4517_v15 = vadd.f32 %v4516_v58, %v4502_v52  ;;  %v4545_v59 = vadd.f32 %v4544_v57, %v4530_v41 }
 0x3de   : > { %4615 = vst [vmem:[%s9189_s19 + $0x108] sm:$0xff] %v4517_v15 }
 0x3df   : > { %4616 = vst [vmem:[%s9189_s19 + $0x110] sm:$0xff] %v4545_v59 }
 0x3ec   : > { %v4570_v53 = vpop.f32.mrf.mxu3  ;;  %v4598_v20 = vpop.f32.mrf.mxu2 }
 0x3f3   : > { %v4556_v63 = vpop.f32.mrf.mxu1  ;;  %v4584_v6 = vpop.f32.mrf.mxu0 }
 0x3f4   : > { %v4571_v46 = vadd.f32 %v4570_v53, %v4556_v63  ;;  %v4599_v27 = vadd.f32 %v4598_v20, %v4584_v6  ;;  %v4572_v11 = vpop.f32.mrf.mxu3  ;;  %v4600_v0 = vpop.f32.mrf.mxu2 }
 0x3f6   : > { %4609 = vst [vmem:[%s9189_s19 + $0x70] sm:$0xff] %v4571_v46 }
 0x3f7   : > { %4610 = vst [vmem:[%s9189_s19 + $0x78] sm:$0xff] %v4599_v27 }
 0x3fb   : > { %v4558_v9 = vpop.f32.mrf.mxu1  ;;  %v4586_v24 = vpop.f32.mrf.mxu0 }
 0x3fc   : > { %v4573_v17 = vadd.f32 %v4572_v11, %v4558_v9  ;;  %v4601_v14 = vadd.f32 %v4600_v0, %v4586_v24 }
 0x3fe   : > { %4617 = vst [vmem:[%s9189_s19 + $0x118] sm:$0xff] %v4573_v17 }
 0x3ff   : > { %4618 = vst [vmem:[%s9189_s19 + $0x120] sm:$0xff] %v4601_v14 }
 0x40c   : > { %v5076_v30 = vpop.f32.mrf.mxu3  ;;  %v5104_v50 = vpop.f32.mrf.mxu2 }
 0x414   : > { %v5078_v5 = vpop.f32.mrf.mxu3  ;;  %v5106_v23 = vpop.f32.mrf.mxu2 }
 0x415   : > { %v5090_v42 = vpop.f32.mrf.mxu1  ;;  %v5118_v3 = vpop.f32.mrf.mxu0 }
 0x416   : > { %v5091_v19 = vadd.f32 %v5090_v42, %v5076_v30  ;;  %v5119_v16 = vadd.f32 %v5118_v3, %v5104_v50 }
 0x418   : > { %5207 = vst [vmem:[%s9189_s19 + $0x80] sm:$0xff] %v5091_v19 }
 0x419   : > { %5208 = vst [vmem:[%s9189_s19 + $0x88] sm:$0xff] %v5119_v16 }
 0x41d   : > { %v5092_v4 = vpop.f32.mrf.mxu1  ;;  %v5120_v21 = vpop.f32.mrf.mxu0 }
 0x41e   : > { %v5093_v32 = vadd.f32 %v5092_v4, %v5078_v5  ;;  %v5121_v37 = vadd.f32 %v5120_v21, %v5106_v23 }
 0x420   : > { %5213 = vst [vmem:[%s9189_s19 + $0x128] sm:$0xff] %v5093_v32 }
 0x421   : > { %5214 = vst [vmem:[%s9189_s19 + $0x130] sm:$0xff] %v5121_v37 }
 0x42a   : > { %v5174_v45 = vpop.f32.mrf.mxu2  ;;  %v5146_v1 = vpop.f32.mrf.mxu3 }
 0x432   : > { %v5176_v18 = vpop.f32.mrf.mxu2  ;;  %v5148_v25 = vpop.f32.mrf.mxu3 }
 0x435   : > { %v5132_v49 = vpop.f32.mrf.mxu1 }
 0x436   : > { %v5147_v36 = vadd.f32 %v5146_v1, %v5132_v49  ;;  %v5160_v48 = vpop.f32.mrf.mxu0 }
 0x437   : > { %v5175_v13 = vadd.f32 %v5174_v45, %v5160_v48 }
 0x438   : > { %5209 = vst [vmem:[%s9189_s19 + $0x90] sm:$0xff] %v5147_v36 }
 0x439   : > { %5210 = vst [vmem:[%s9189_s19 + $0x98] sm:$0xff] %v5175_v13 }
 0x43d   : > { %v5134_v10 = vpop.f32.mrf.mxu1 }
 0x43e   : > { %v5149_v61 = vadd.f32 %v5148_v25, %v5134_v10  ;;  %v5162_v47 = vpop.f32.mrf.mxu0 }
 0x43f   : > { %v5177_v51 = vadd.f32 %v5176_v18, %v5162_v47 }
 0x440   : > { %5215 = vst [vmem:[%s9189_s19 + $0x138] sm:$0xff] %v5149_v61 }
 0x441   : > { %5216 = vst [vmem:[%s9189_s19 + $0x140] sm:$0xff] %v5177_v51 }
 0x44a   : > { %v5188_v8 = vpop.f32.mrf.mxu3 }
 0x44d   : > { %v5202_v43 = vpop.f32.mrf.mxu1 }
 0x44e   : > { %v5203_v28 = vadd.f32 %v5202_v43, %v5188_v8 }
 0x450   : > { %5212 = vst.msk [vmem:[%s9189_s19 + $0xa0] sm:$0xff] %vm5211_vm0, %v5203_v28 }
 0x452   : > { %v5190_v39 = vpop.f32.mrf.mxu3 }
 0x455   : > { %v5204_v60 = vpop.f32.mrf.mxu1 }
 0x456   : > { %v5205_v22 = vadd.f32 %v5204_v60, %v5190_v39 }
 0x458   : > { %5217 = vst.msk [vmem:[%s9189_s19 + $0x148] sm:$0xff] %vm5211_vm0, %v5205_v22 }
 0x459   : > { %7039 = shalt.err (!%p7036_p13)
}
 0x45a   : > { %s7130_s24 = smov 2688   ;;  %s7131_s15 = smov 168  }
 0x45b   : > { %6853 = dma.vmem_to_hbm [thread:$0]  (%p7218_p4), %s5234_s27, 5376, %s5236_s20, %s5219_s16, %s7130_s24, %s7130_s24, %s7131_s15  }
 0x45c PF: > { %s5250_s18 = sand.u32 1, %s7078_s9   ;;  %p6864_p0 = pnand %p5334_p6, %p7226_p7 }
 0x45d   : > { %s5251_s28 = scalar_lea.sflag [#allocation5], %s5250_s18 }
 0x45e   : > { %p6865_p2 = pneg %p6864_p0 }
 0x460   : > { %7073 = dma.done.wait (%p6865_p2), %s5251_s28, 5376  }
 0x461   : > { %7075 = vsyncadd (%p6865_p2), %s5251_s28, 4294961920  ;;  %s19_s14 = sadd.s32 1, %s7098_s14   ;;  %s9549_s9 = smov %s7082_s10 }
 0x462   : > { %p16_p5 = scmp.ge.s32.totalorder %s19_s14, 4   ;;  %s9550_s10 = smov %s7086_s11 }
 0x463   : > { %s9551_s11 = smov %s7224_s4  ;;  %s9552_s12 = smov %s7094_s13 }
 0x464   : > { %s9553_s13 = smov %s9555_s26  ;;  %18 = sbr.rel (!%p16_p5) target bundleno = 7 (0x7), region = 77 }
 0x469   :  { %5257 = vsyncpa [#allocation4], 1 }
 0x46a   :  { %5259 = vsyncpa [#allocation4 + $0x1], 1 }
 0x46b   :  { %5260 = vsyncpa [#allocation7], 1 }
 0x46c   :  { %5261 = vsyncpa [#allocation5], 1 }
 0x46d   :  { %5263 = vsyncpa [#allocation5 + $0x1], 1 }

</bundles_post_ra>
